<compile_context>
chip_gen: v5e
topology: v5e:2x2
jax: 0.10.0
libtpu: 0.0.40
codegen_flags: <defaults>
</compile_context>

<pallas_src>
import jax
import jax.numpy as jnp
from jax.experimental import pallas as pl
from jax.experimental.pallas import tpu as pltpu


# ---------------------------------------------------------------------------
# Fused SPPF kernel: cv1 -> 3x maxpool5 -> cv2 (split weights), per batch image
# ---------------------------------------------------------------------------
def _sppf_fused_kernel(x_ref, w1_ref, s1_ref, b1_ref, w2_ref, s2_ref, b2_ref,
                       o_ref, ph_ref):
    Hp4, W, c_ = ph_ref.shape
    H = Hp4 - 4
    HW = x_ref.shape[1]
    f32 = jnp.float32

    # -inf halo rows of the H-pass scratch (re-written every step; see header).
    ph_ref[0:2, :, :] = jnp.full((2, W, c_), -jnp.inf, f32)
    ph_ref[H + 2:H + 4, :, :] = jnp.full((2, W, c_), -jnp.inf, f32)

    def silu(t):
        return t * jax.nn.sigmoid(t)

    # cv1: 1x1 conv as (HW, C1) @ (C1, c_) on the MXU, folded BN, SiLU.
    t = jnp.dot(x_ref[0], w1_ref[...], preferred_element_type=f32)   # bf16 in, f32 acc
    y1 = silu(t * s1_ref[...] + b1_ref[...])                         # (HW, c_) f32

    # Edge-validity masks for the W-direction rolls (hoisted; reused by all 3 pools).
    w_idx = jax.lax.broadcasted_iota(jnp.int32, (H, W, c_), 1)
    m_ge1, m_ge2 = w_idx >= 1, w_idx >= 2
    m_lt1, m_lt2 = w_idx < W - 1, w_idx < W - 2
    neg = jnp.float32(-jnp.inf)

    def pool5(y):
        """Separable 5x5, stride-1, pad-2 max pool of a (H, W, c_) f32 block."""
        # W pass: 5-tap max via static sublane rolls (XLU) + wrap-around masking —
        # no VMEM scratch round trip, no sublane-unaligned loads.
        ym1 = jnp.where(m_ge1, pltpu.roll(y, shift=1, axis=1), neg)      # y[:, w-1]
        ym2 = jnp.where(m_ge2, pltpu.roll(y, shift=2, axis=1), neg)      # y[:, w-2]
        yp1 = jnp.where(m_lt1, pltpu.roll(y, shift=W - 1, axis=1), neg)  # y[:, w+1]
        yp2 = jnp.where(m_lt2, pltpu.roll(y, shift=W - 2, axis=1), neg)  # y[:, w+2]
        xw = jnp.maximum(jnp.maximum(jnp.maximum(ym2, ym1),
                                     jnp.maximum(yp1, yp2)), y)
        # H pass: halo-padded scratch; slices run along the non-tiled leading axis.
        ph_ref[2:H + 2, :, :] = xw
        a = jnp.maximum(ph_ref[0:H, :, :], ph_ref[1:H + 1, :, :])
        b = jnp.maximum(ph_ref[2:H + 2, :, :], ph_ref[3:H + 3, :, :])
        return jnp.maximum(jnp.maximum(a, b), ph_ref[4:H + 4, :, :])

    def split_dot(y2d, k):
        # cv2 partial product with the k-th concat group's weights (concat never built).
        return jnp.dot(y2d.astype(jnp.bfloat16), w2_ref[k],
                       preferred_element_type=f32)

    # Interleave the cv2 split dots (MXU) with the pool chain (VPU/XLU): the dot on
    # y_k overlaps the pool producing y_{k+1}, and only one y is live at a time.
    acc = split_dot(y1, 0)
    y2 = pool5(y1.reshape(H, W, c_))
    acc = acc + split_dot(y2.reshape(HW, c_), 1)
    y3 = pool5(y2)
    acc = acc + split_dot(y3.reshape(HW, c_), 2)
    y4 = pool5(y3)
    acc = acc + split_dot(y4.reshape(HW, c_), 3)

    z = silu(acc * s2_ref[...] + b2_ref[...])
    o_ref[0] = z                                                      # (HW, c2) f32


# ---------------------------------------------------------------------------
# VMEM budget helpers (rough Mosaic footprint: lane dim -> 128, sublane dim -> 8)
# ---------------------------------------------------------------------------
def _padded_vmem_bytes(shape, itemsize):
    s = list(shape)
    s[-1] = -(-s[-1] // 128) * 128
    if len(s) >= 2:
        s[-2] = -(-s[-2] // 8) * 8
    n = 1
    for d in s:
        n *= d
    return n * itemsize


def _vmem_capacity_bytes():
    try:
        return int(pltpu.get_tpu_info().vmem_capacity_bytes)
    except Exception:
        return 64 * 1024 * 1024   # conservative fallback (v7x per-core VMEM)


# ---------------------------------------------------------------------------
# Parameter setup (deterministic, in-script; BN folded into scale/bias)
# ---------------------------------------------------------------------------
def _fold_bn(gamma, beta, mean, var, eps=1e-5):
    scale = gamma / jnp.sqrt(var + eps)
    bias = beta - mean * scale
    return scale, bias


def init_sppf_params(key, c1, c2):
    c_ = c1 // 2
    ks = jax.random.split(key, 8)
    # Conv2d weights (out, in, 1, 1) stored squeezed as (out, in)
    w1 = 0.1 * jax.random.normal(ks[0], (c_, c1), jnp.float32)
    w2 = 0.1 * jax.random.normal(ks[1], (c2, 4 * c_), jnp.float32)
    # BatchNorm params (inference-style, deterministic)
    g1 = 1.0 + 0.1 * jax.random.normal(ks[2], (c_,), jnp.float32)
    b1 = 0.1 * jax.random.normal(ks[3], (c_,), jnp.float32)
    m1 = 0.1 * jax.random.normal(ks[4], (c_,), jnp.float32)
    v1 = jnp.abs(jax.random.normal(ks[5], (c_,), jnp.float32)) + 0.5
    g2 = 1.0 + 0.1 * jax.random.normal(ks[6], (c2,), jnp.float32)
    b2 = 0.1 * jax.random.normal(ks[7], (c2,), jnp.float32)
    m2 = jnp.zeros((c2,), jnp.float32)
    v2 = jnp.ones((c2,), jnp.float32)
    s1, bb1 = _fold_bn(g1, b1, m1, v1)
    s2, bb2 = _fold_bn(g2, b2, m2, v2)
    return dict(w1=w1, w2=w2, scale1=s1, bias1=bb1, scale2=s2, bias2=bb2,
                c_=c_, c2=c2)


# ---------------------------------------------------------------------------
# SPPF forward (wrapper: NCHW <-> NHWC glue + one fused pallas_call)
# ---------------------------------------------------------------------------
def sppf_forward(x_nchw, p):
    N, C1, H, W = x_nchw.shape
    c_, c2 = p["c_"], p["c2"]
    HW = H * W

    # Interface glue only; in a full NHWC model these transposes disappear.
    x_flat = (jnp.transpose(x_nchw, (0, 2, 3, 1))
              .astype(jnp.bfloat16).reshape(N, HW, C1))

    w1 = p["w1"].T.astype(jnp.bfloat16)                      # (C1, c_)
    w2 = p["w2"].T.reshape(4, c_, c2).astype(jnp.bfloat16)   # split by concat group
    s1 = p["scale1"].reshape(1, c_).astype(jnp.float32)
    b1 = p["bias1"].reshape(1, c_).astype(jnp.float32)
    s2 = p["scale2"].reshape(1, c2).astype(jnp.float32)
    b2 = p["bias2"].reshape(1, c2).astype(jnp.float32)

    # Chip-aware VMEM budget: double-buffered blocks + scratch + headroom, floored
    # at the default scoped limit and capped at 90% of this chip's physical VMEM.
    blk_bytes = (
        _padded_vmem_bytes((1, HW, C1), 2) +
        _padded_vmem_bytes((1, HW, c2), 4) +
        _padded_vmem_bytes((C1, c_), 2) +
        2 * _padded_vmem_bytes((1, c_), 4) +
        _padded_vmem_bytes((4, c_, c2), 2) +
        2 * _padded_vmem_bytes((1, c2), 4))
    scratch_bytes = _padded_vmem_bytes((H + 4, W, c_), 4)
    needed = 2 * blk_bytes + scratch_bytes + 8 * 1024 * 1024
    cap = _vmem_capacity_bytes()
    vmem_limit = int(min(max(needed, 32 * 1024 * 1024), int(0.9 * cap)))

    out_flat = pl.pallas_call(
        _sppf_fused_kernel,
        out_shape=jax.ShapeDtypeStruct((N, HW, c2), jnp.float32),
        grid_spec=pltpu.PrefetchScalarGridSpec(
            num_scalar_prefetch=0,
            grid=(N,),
            in_specs=[
                pl.BlockSpec((1, HW, C1), lambda n: (n, 0, 0)),
                # Grid-invariant operands below; single-buffering them
                # (pipeline_mode=pl.Buffered(1)) is a VMEM follow-up at real sizes.
                pl.BlockSpec((C1, c_), lambda n: (0, 0)),
                pl.BlockSpec((1, c_), lambda n: (0, 0)),
                pl.BlockSpec((1, c_), lambda n: (0, 0)),
                pl.BlockSpec((4, c_, c2), lambda n: (0, 0, 0)),
                pl.BlockSpec((1, c2), lambda n: (0, 0)),
                pl.BlockSpec((1, c2), lambda n: (0, 0)),
            ],
            out_specs=pl.BlockSpec((1, HW, c2), lambda n: (n, 0, 0)),
            scratch_shapes=[
                pltpu.VMEM((H + 4, W, c_), jnp.float32),   # H-pass halo scratch
            ],
        ),
        compiler_params=pltpu.CompilerParams(
            dimension_semantics=("parallel",),
            vmem_limit_bytes=vmem_limit),
    )(x_flat, w1, s1, b1, w2, s2, b2)

    out_nhwc = out_flat.reshape(N, H, W, c2)
    return jnp.transpose(out_nhwc, (0, 3, 1, 2))


# ---------------------------------------------------------------------------
# Pure-JAX f32 reference for correctness checking
# ---------------------------------------------------------------------------
def sppf_reference(x_nchw, p):
    def pconv(x_nhwc, w_oi, scale, bias):
        y = jnp.einsum("nhwc,oc->nhwo", x_nhwc, w_oi)
        y = y * scale + bias
        return y * jax.nn.sigmoid(y)

    def mp(x):
        H, W = x.shape[1], x.shape[2]
        xp = jnp.pad(x, ((0, 0), (2, 2), (2, 2), (0, 0)),
                     constant_values=-jnp.inf)
        acc = xp[:, 0:H, 0:W, :]
        for dy in range(5):
            for dx in range(5):
                acc = jnp.maximum(acc, xp[:, dy:dy + H, dx:dx + W, :])
        return acc

    x_nhwc = jnp.transpose(x_nchw, (0, 2, 3, 1)).astype(jnp.float32)
    y1 = pconv(x_nhwc, p["w1"], p["scale1"], p["bias1"])
    y2 = mp(y1)
    y3 = mp(y2)
    y4 = mp(y3)
    cat = jnp.concatenate([y1, y2, y3, y4], axis=-1)
    out = pconv(cat, p["w2"], p["scale2"], p["bias2"])
    return jnp.transpose(out, (0, 3, 1, 2))


if __name__ == "__main__":
    key = jax.random.PRNGKey(0)
    k_x, k_p = jax.random.split(key)

    N, c1, H, W = 2, 4, 16, 16
    c2 = 8
    x = jax.random.normal(k_x, (N, c1, H, W), jnp.float32)
    params = init_sppf_params(k_p, c1, c2)

    out = jax.jit(lambda a: sppf_forward(a, params))(x)
    out = jax.block_until_ready(out)

    ref = jax.block_until_ready(sppf_reference(x, params))

    assert out.shape == (N, c2, H, W), out.shape
    # bf16 matmul inputs in the kernel vs. pure-f32 reference -> loosened tolerance.
    assert jnp.allclose(out, ref, rtol=2e-2, atol=2e-2), \
        float(jnp.max(jnp.abs(out - ref)))

    print("KERNEL_OK")
</pallas_src>

<mosaic_0001>
module attributes {stable_mosaic.version = 11 : i64} {
  func.func @_sppf_fused_kernel(%arg0: i32, %arg1: memref<1x256x4xbf16, #tpu.memory_space<vmem>>, %arg2: memref<4x2xbf16, #tpu.memory_space<vmem>>, %arg3: memref<1x2xf32, #tpu.memory_space<vmem>>, %arg4: memref<1x2xf32, #tpu.memory_space<vmem>>, %arg5: memref<4x2x8xbf16, #tpu.memory_space<vmem>>, %arg6: memref<1x8xf32, #tpu.memory_space<vmem>>, %arg7: memref<1x8xf32, #tpu.memory_space<vmem>>, %arg8: memref<1x256x8xf32, #tpu.memory_space<vmem>>, %arg9: memref<20x16x2xf32, #tpu.memory_space<vmem>>) attributes {dimension_semantics = [#tpu.dimension_semantics<parallel>], iteration_bounds = array<i64: 2>, scalar_prefetch = 0 : i64, scratch_operands = 1 : i64, tpu.core_type = #tpu.core_type<tc>, window_params = [{transform_indices = @transform_0, window_bounds = array<i64: 1, 256, 4>}, {pipeline_mode = #tpu.pipeline_mode<synchronous>, transform_indices = @transform_1, window_bounds = array<i64: 4, 2>}, {pipeline_mode = #tpu.pipeline_mode<synchronous>, transform_indices = @transform_2, window_bounds = array<i64: 1, 2>}, {pipeline_mode = #tpu.pipeline_mode<synchronous>, transform_indices = @transform_3, window_bounds = array<i64: 1, 2>}, {pipeline_mode = #tpu.pipeline_mode<synchronous>, transform_indices = @transform_4, window_bounds = array<i64: 4, 2, 8>}, {pipeline_mode = #tpu.pipeline_mode<synchronous>, transform_indices = @transform_5, window_bounds = array<i64: 1, 8>}, {pipeline_mode = #tpu.pipeline_mode<synchronous>, transform_indices = @transform_6, window_bounds = array<i64: 1, 8>}, {transform_indices = @transform_7, window_bounds = array<i64: 1, 256, 8>}]} {
    %cst = arith.constant 0xFF800000 : f32
    %0 = vector.broadcast %cst : f32 to vector<2x16x2xf32>
    %c0 = arith.constant 0 : index
    %c0_0 = arith.constant 0 : index
    %c0_1 = arith.constant 0 : index
    %1 = vector.load %arg9[%c0, %c0_0, %c0_1] : memref<20x16x2xf32, #tpu.memory_space<vmem>>, vector<2x16x2xf32>
    tpu.vector_store %arg9[%c0, %c0_0, %c0_1], %0 {strides = array<i32>} : memref<20x16x2xf32, #tpu.memory_space<vmem>>, vector<2x16x2xf32>,
    %cst_2 = arith.constant 0xFF800000 : f32
    %2 = vector.broadcast %cst_2 : f32 to vector<2x16x2xf32>
    %c18 = arith.constant 18 : index
    %c0_3 = arith.constant 0 : index
    %c0_4 = arith.constant 0 : index
    %3 = vector.load %arg9[%c18, %c0_3, %c0_4] : memref<20x16x2xf32, #tpu.memory_space<vmem>>, vector<2x16x2xf32>
    tpu.vector_store %arg9[%c18, %c0_3, %c0_4], %2 {strides = array<i32>} : memref<20x16x2xf32, #tpu.memory_space<vmem>>, vector<2x16x2xf32>,
    %c0_5 = arith.constant 0 : index
    %c0_6 = arith.constant 0 : index
    %c0_7 = arith.constant 0 : index
    %4 = vector.load %arg1[%c0_5, %c0_6, %c0_7] : memref<1x256x4xbf16, #tpu.memory_space<vmem>>, vector<1x256x4xbf16>
    %5 = vector.shape_cast %4 : vector<1x256x4xbf16> to vector<256x4xbf16>
    %c0_8 = arith.constant 0 : index
    %c0_9 = arith.constant 0 : index
    %6 = vector.load %arg2[%c0_8, %c0_9] : memref<4x2xbf16, #tpu.memory_space<vmem>>, vector<4x2xbf16>
    %cst_10 = arith.constant dense<0.000000e+00> : vector<256x2xf32>
    %7 = tpu.matmul %5, %6, %cst_10 {dimension_numbers = #tpu.dot_dimension_numbers<[1], [0], [0], [1], [0, 0, 1, 1], [], []>} : vector<256x4xbf16>, vector<4x2xbf16>, vector<256x2xf32> -> vector<256x2xf32>
    %c0_11 = arith.constant 0 : index
    %c0_12 = arith.constant 0 : index
    %8 = vector.load %arg3[%c0_11, %c0_12] : memref<1x2xf32, #tpu.memory_space<vmem>>, vector<1x2xf32>
    %9 = vector.broadcast %8 : vector<1x2xf32> to vector<256x2xf32>
    %10 = arith.mulf %7, %9 : vector<256x2xf32>
    %c0_13 = arith.constant 0 : index
    %c0_14 = arith.constant 0 : index
    %11 = vector.load %arg4[%c0_13, %c0_14] : memref<1x2xf32, #tpu.memory_space<vmem>>, vector<1x2xf32>
    %12 = vector.broadcast %11 : vector<1x2xf32> to vector<256x2xf32>
    %13 = arith.addf %10, %12 : vector<256x2xf32>
    %14 = arith.negf %13 : vector<256x2xf32>
    %15 = math.exp %14 : vector<256x2xf32>
    %cst_15 = arith.constant 1.000000e+00 : f32
    %16 = vector.broadcast %cst_15 : f32 to vector<256x2xf32>
    %17 = arith.addf %16, %15 : vector<256x2xf32>
    %18 = arith.divf %16, %17 : vector<256x2xf32>
    %19 = arith.mulf %13, %18 : vector<256x2xf32>
    %20 = tpu.iota {dimensions = array<i32: 1>} : vector<16x16x2xi32>
    %c1_i32 = arith.constant 1 : i32
    %21 = vector.broadcast %c1_i32 : i32 to vector<16x16x2xi32>
    %22 = arith.cmpi sge, %20, %21 : vector<16x16x2xi32>
    %c2_i32 = arith.constant 2 : i32
    %23 = vector.broadcast %c2_i32 : i32 to vector<16x16x2xi32>
    %24 = arith.cmpi sge, %20, %23 : vector<16x16x2xi32>
    %c15_i32 = arith.constant 15 : i32
    %25 = vector.broadcast %c15_i32 : i32 to vector<16x16x2xi32>
    %26 = arith.cmpi slt, %20, %25 : vector<16x16x2xi32>
    %c14_i32 = arith.constant 14 : i32
    %27 = vector.broadcast %c14_i32 : i32 to vector<16x16x2xi32>
    %28 = arith.cmpi slt, %20, %27 : vector<16x16x2xi32>
    %29 = arith.truncf %19 : vector<256x2xf32> to vector<256x2xbf16>
    %c0_16 = arith.constant 0 : index
    %c0_17 = arith.constant 0 : index
    %c0_18 = arith.constant 0 : index
    %30 = vector.load %arg5[%c0_16, %c0_17, %c0_18] : memref<4x2x8xbf16, #tpu.memory_space<vmem>>, vector<1x2x8xbf16>
    %31 = vector.shape_cast %30 : vector<1x2x8xbf16> to vector<2x8xbf16>
    %cst_19 = arith.constant dense<0.000000e+00> : vector<256x8xf32>
    %32 = tpu.matmul %29, %31, %cst_19 {dimension_numbers = #tpu.dot_dimension_numbers<[1], [0], [0], [1], [0, 0, 1, 1], [], []>} : vector<256x2xbf16>, vector<2x8xbf16>, vector<256x8xf32> -> vector<256x8xf32>
    %33 = vector.shape_cast %19 : vector<256x2xf32> to vector<16x16x2xf32>
    %c1_i32_20 = arith.constant 1 : i32
    %34 = tpu.dynamic_rotate %33 by %c1_i32_20 dim 1 : vector<16x16x2xf32>, i32 -> vector<16x16x2xf32>
    %cst_21 = arith.constant 0xFF800000 : f32
    %35 = vector.broadcast %cst_21 : f32 to vector<16x16x2xf32>
    %36 = arith.select %22, %34, %35 : vector<16x16x2xi1>, vector<16x16x2xf32>
    %c2_i32_22 = arith.constant 2 : i32
    %37 = tpu.dynamic_rotate %33 by %c2_i32_22 dim 1 : vector<16x16x2xf32>, i32 -> vector<16x16x2xf32>
    %cst_23 = arith.constant 0xFF800000 : f32
    %38 = vector.broadcast %cst_23 : f32 to vector<16x16x2xf32>
    %39 = arith.select %24, %37, %38 : vector<16x16x2xi1>, vector<16x16x2xf32>
    %c15_i32_24 = arith.constant 15 : i32
    %40 = tpu.dynamic_rotate %33 by %c15_i32_24 dim 1 : vector<16x16x2xf32>, i32 -> vector<16x16x2xf32>
    %cst_25 = arith.constant 0xFF800000 : f32
    %41 = vector.broadcast %cst_25 : f32 to vector<16x16x2xf32>
    %42 = arith.select %26, %40, %41 : vector<16x16x2xi1>, vector<16x16x2xf32>
    %c14_i32_26 = arith.constant 14 : i32
    %43 = tpu.dynamic_rotate %33 by %c14_i32_26 dim 1 : vector<16x16x2xf32>, i32 -> vector<16x16x2xf32>
    %cst_27 = arith.constant 0xFF800000 : f32
    %44 = vector.broadcast %cst_27 : f32 to vector<16x16x2xf32>
    %45 = arith.select %28, %43, %44 : vector<16x16x2xi1>, vector<16x16x2xf32>
    %46 = arith.maximumf %39, %36 : vector<16x16x2xf32>
    %47 = arith.maximumf %42, %45 : vector<16x16x2xf32>
    %48 = arith.maximumf %46, %47 : vector<16x16x2xf32>
    %49 = arith.maximumf %48, %33 : vector<16x16x2xf32>
    %c2 = arith.constant 2 : index
    %c0_28 = arith.constant 0 : index
    %c0_29 = arith.constant 0 : index
    %50 = vector.load %arg9[%c2, %c0_28, %c0_29] : memref<20x16x2xf32, #tpu.memory_space<vmem>>, vector<16x16x2xf32>
    tpu.vector_store %arg9[%c2, %c0_28, %c0_29], %49 {strides = array<i32>} : memref<20x16x2xf32, #tpu.memory_space<vmem>>, vector<16x16x2xf32>,
    %c0_30 = arith.constant 0 : index
    %c0_31 = arith.constant 0 : index
    %c0_32 = arith.constant 0 : index
    %51 = vector.load %arg9[%c0_30, %c0_31, %c0_32] : memref<20x16x2xf32, #tpu.memory_space<vmem>>, vector<16x16x2xf32>
    %c1 = arith.constant 1 : index
    %c0_33 = arith.constant 0 : index
    %c0_34 = arith.constant 0 : index
    %52 = vector.load %arg9[%c1, %c0_33, %c0_34] : memref<20x16x2xf32, #tpu.memory_space<vmem>>, vector<16x16x2xf32>
    %53 = arith.maximumf %51, %52 : vector<16x16x2xf32>
    %c2_35 = arith.constant 2 : index
    %c0_36 = arith.constant 0 : index
    %c0_37 = arith.constant 0 : index
    %54 = vector.load %arg9[%c2_35, %c0_36, %c0_37] : memref<20x16x2xf32, #tpu.memory_space<vmem>>, vector<16x16x2xf32>
    %c3 = arith.constant 3 : index
    %c0_38 = arith.constant 0 : index
    %c0_39 = arith.constant 0 : index
    %55 = vector.load %arg9[%c3, %c0_38, %c0_39] : memref<20x16x2xf32, #tpu.memory_space<vmem>>, vector<16x16x2xf32>
    %56 = arith.maximumf %54, %55 : vector<16x16x2xf32>
    %57 = arith.maximumf %53, %56 : vector<16x16x2xf32>
    %c4 = arith.constant 4 : index
    %c0_40 = arith.constant 0 : index
    %c0_41 = arith.constant 0 : index
    %58 = vector.load %arg9[%c4, %c0_40, %c0_41] : memref<20x16x2xf32, #tpu.memory_space<vmem>>, vector<16x16x2xf32>
    %59 = arith.maximumf %57, %58 : vector<16x16x2xf32>
    %60 = vector.shape_cast %59 : vector<16x16x2xf32> to vector<256x2xf32>
    %61 = arith.truncf %60 : vector<256x2xf32> to vector<256x2xbf16>
    %c1_42 = arith.constant 1 : index
    %c0_43 = arith.constant 0 : index
    %c0_44 = arith.constant 0 : index
    %62 = vector.load %arg5[%c1_42, %c0_43, %c0_44] : memref<4x2x8xbf16, #tpu.memory_space<vmem>>, vector<1x2x8xbf16>
    %63 = vector.shape_cast %62 : vector<1x2x8xbf16> to vector<2x8xbf16>
    %cst_45 = arith.constant dense<0.000000e+00> : vector<256x8xf32>
    %64 = tpu.matmul %61, %63, %cst_45 {dimension_numbers = #tpu.dot_dimension_numbers<[1], [0], [0], [1], [0, 0, 1, 1], [], []>} : vector<256x2xbf16>, vector<2x8xbf16>, vector<256x8xf32> -> vector<256x8xf32>
    %65 = arith.addf %32, %64 : vector<256x8xf32>
    %c1_i32_46 = arith.constant 1 : i32
    %66 = tpu.dynamic_rotate %59 by %c1_i32_46 dim 1 : vector<16x16x2xf32>, i32 -> vector<16x16x2xf32>
    %cst_47 = arith.constant 0xFF800000 : f32
    %67 = vector.broadcast %cst_47 : f32 to vector<16x16x2xf32>
    %68 = arith.select %22, %66, %67 : vector<16x16x2xi1>, vector<16x16x2xf32>
    %c2_i32_48 = arith.constant 2 : i32
    %69 = tpu.dynamic_rotate %59 by %c2_i32_48 dim 1 : vector<16x16x2xf32>, i32 -> vector<16x16x2xf32>
    %cst_49 = arith.constant 0xFF800000 : f32
    %70 = vector.broadcast %cst_49 : f32 to vector<16x16x2xf32>
    %71 = arith.select %24, %69, %70 : vector<16x16x2xi1>, vector<16x16x2xf32>
    %c15_i32_50 = arith.constant 15 : i32
    %72 = tpu.dynamic_rotate %59 by %c15_i32_50 dim 1 : vector<16x16x2xf32>, i32 -> vector<16x16x2xf32>
    %cst_51 = arith.constant 0xFF800000 : f32
    %73 = vector.broadcast %cst_51 : f32 to vector<16x16x2xf32>
    %74 = arith.select %26, %72, %73 : vector<16x16x2xi1>, vector<16x16x2xf32>
    %c14_i32_52 = arith.constant 14 : i32
    %75 = tpu.dynamic_rotate %59 by %c14_i32_52 dim 1 : vector<16x16x2xf32>, i32 -> vector<16x16x2xf32>
    %cst_53 = arith.constant 0xFF800000 : f32
    %76 = vector.broadcast %cst_53 : f32 to vector<16x16x2xf32>
    %77 = arith.select %28, %75, %76 : vector<16x16x2xi1>, vector<16x16x2xf32>
    %78 = arith.maximumf %71, %68 : vector<16x16x2xf32>
    %79 = arith.maximumf %74, %77 : vector<16x16x2xf32>
    %80 = arith.maximumf %78, %79 : vector<16x16x2xf32>
    %81 = arith.maximumf %80, %59 : vector<16x16x2xf32>
    %c2_54 = arith.constant 2 : index
    %c0_55 = arith.constant 0 : index
    %c0_56 = arith.constant 0 : index
    %82 = vector.load %arg9[%c2_54, %c0_55, %c0_56] : memref<20x16x2xf32, #tpu.memory_space<vmem>>, vector<16x16x2xf32>
    tpu.vector_store %arg9[%c2_54, %c0_55, %c0_56], %81 {strides = array<i32>} : memref<20x16x2xf32, #tpu.memory_space<vmem>>, vector<16x16x2xf32>,
    %c0_57 = arith.constant 0 : index
    %c0_58 = arith.constant 0 : index
    %c0_59 = arith.constant 0 : index
    %83 = vector.load %arg9[%c0_57, %c0_58, %c0_59] : memref<20x16x2xf32, #tpu.memory_space<vmem>>, vector<16x16x2xf32>
    %c1_60 = arith.constant 1 : index
    %c0_61 = arith.constant 0 : index
    %c0_62 = arith.constant 0 : index
    %84 = vector.load %arg9[%c1_60, %c0_61, %c0_62] : memref<20x16x2xf32, #tpu.memory_space<vmem>>, vector<16x16x2xf32>
    %85 = arith.maximumf %83, %84 : vector<16x16x2xf32>
    %c2_63 = arith.constant 2 : index
    %c0_64 = arith.constant 0 : index
    %c0_65 = arith.constant 0 : index
    %86 = vector.load %arg9[%c2_63, %c0_64, %c0_65] : memref<20x16x2xf32, #tpu.memory_space<vmem>>, vector<16x16x2xf32>
    %c3_66 = arith.constant 3 : index
    %c0_67 = arith.constant 0 : index
    %c0_68 = arith.constant 0 : index
    %87 = vector.load %arg9[%c3_66, %c0_67, %c0_68] : memref<20x16x2xf32, #tpu.memory_space<vmem>>, vector<16x16x2xf32>
    %88 = arith.maximumf %86, %87 : vector<16x16x2xf32>
    %89 = arith.maximumf %85, %88 : vector<16x16x2xf32>
    %c4_69 = arith.constant 4 : index
    %c0_70 = arith.constant 0 : index
    %c0_71 = arith.constant 0 : index
    %90 = vector.load %arg9[%c4_69, %c0_70, %c0_71] : memref<20x16x2xf32, #tpu.memory_space<vmem>>, vector<16x16x2xf32>
    %91 = arith.maximumf %89, %90 : vector<16x16x2xf32>
    %92 = vector.shape_cast %91 : vector<16x16x2xf32> to vector<256x2xf32>
    %93 = arith.truncf %92 : vector<256x2xf32> to vector<256x2xbf16>
    %c2_72 = arith.constant 2 : index
    %c0_73 = arith.constant 0 : index
    %c0_74 = arith.constant 0 : index
    %94 = vector.load %arg5[%c2_72, %c0_73, %c0_74] : memref<4x2x8xbf16, #tpu.memory_space<vmem>>, vector<1x2x8xbf16>
    %95 = vector.shape_cast %94 : vector<1x2x8xbf16> to vector<2x8xbf16>
    %cst_75 = arith.constant dense<0.000000e+00> : vector<256x8xf32>
    %96 = tpu.matmul %93, %95, %cst_75 {dimension_numbers = #tpu.dot_dimension_numbers<[1], [0], [0], [1], [0, 0, 1, 1], [], []>} : vector<256x2xbf16>, vector<2x8xbf16>, vector<256x8xf32> -> vector<256x8xf32>
    %97 = arith.addf %65, %96 : vector<256x8xf32>
    %c1_i32_76 = arith.constant 1 : i32
    %98 = tpu.dynamic_rotate %91 by %c1_i32_76 dim 1 : vector<16x16x2xf32>, i32 -> vector<16x16x2xf32>
    %cst_77 = arith.constant 0xFF800000 : f32
    %99 = vector.broadcast %cst_77 : f32 to vector<16x16x2xf32>
    %100 = arith.select %22, %98, %99 : vector<16x16x2xi1>, vector<16x16x2xf32>
    %c2_i32_78 = arith.constant 2 : i32
    %101 = tpu.dynamic_rotate %91 by %c2_i32_78 dim 1 : vector<16x16x2xf32>, i32 -> vector<16x16x2xf32>
    %cst_79 = arith.constant 0xFF800000 : f32
    %102 = vector.broadcast %cst_79 : f32 to vector<16x16x2xf32>
    %103 = arith.select %24, %101, %102 : vector<16x16x2xi1>, vector<16x16x2xf32>
    %c15_i32_80 = arith.constant 15 : i32
    %104 = tpu.dynamic_rotate %91 by %c15_i32_80 dim 1 : vector<16x16x2xf32>, i32 -> vector<16x16x2xf32>
    %cst_81 = arith.constant 0xFF800000 : f32
    %105 = vector.broadcast %cst_81 : f32 to vector<16x16x2xf32>
    %106 = arith.select %26, %104, %105 : vector<16x16x2xi1>, vector<16x16x2xf32>
    %c14_i32_82 = arith.constant 14 : i32
    %107 = tpu.dynamic_rotate %91 by %c14_i32_82 dim 1 : vector<16x16x2xf32>, i32 -> vector<16x16x2xf32>
    %cst_83 = arith.constant 0xFF800000 : f32
    %108 = vector.broadcast %cst_83 : f32 to vector<16x16x2xf32>
    %109 = arith.select %28, %107, %108 : vector<16x16x2xi1>, vector<16x16x2xf32>
    %110 = arith.maximumf %103, %100 : vector<16x16x2xf32>
    %111 = arith.maximumf %106, %109 : vector<16x16x2xf32>
    %112 = arith.maximumf %110, %111 : vector<16x16x2xf32>
    %113 = arith.maximumf %112, %91 : vector<16x16x2xf32>
    %c2_84 = arith.constant 2 : index
    %c0_85 = arith.constant 0 : index
    %c0_86 = arith.constant 0 : index
    %114 = vector.load %arg9[%c2_84, %c0_85, %c0_86] : memref<20x16x2xf32, #tpu.memory_space<vmem>>, vector<16x16x2xf32>
    tpu.vector_store %arg9[%c2_84, %c0_85, %c0_86], %113 {strides = array<i32>} : memref<20x16x2xf32, #tpu.memory_space<vmem>>, vector<16x16x2xf32>,
    %c0_87 = arith.constant 0 : index
    %c0_88 = arith.constant 0 : index
    %c0_89 = arith.constant 0 : index
    %115 = vector.load %arg9[%c0_87, %c0_88, %c0_89] : memref<20x16x2xf32, #tpu.memory_space<vmem>>, vector<16x16x2xf32>
    %c1_90 = arith.constant 1 : index
    %c0_91 = arith.constant 0 : index
    %c0_92 = arith.constant 0 : index
    %116 = vector.load %arg9[%c1_90, %c0_91, %c0_92] : memref<20x16x2xf32, #tpu.memory_space<vmem>>, vector<16x16x2xf32>
    %117 = arith.maximumf %115, %116 : vector<16x16x2xf32>
    %c2_93 = arith.constant 2 : index
    %c0_94 = arith.constant 0 : index
    %c0_95 = arith.constant 0 : index
    %118 = vector.load %arg9[%c2_93, %c0_94, %c0_95] : memref<20x16x2xf32, #tpu.memory_space<vmem>>, vector<16x16x2xf32>
    %c3_96 = arith.constant 3 : index
    %c0_97 = arith.constant 0 : index
    %c0_98 = arith.constant 0 : index
    %119 = vector.load %arg9[%c3_96, %c0_97, %c0_98] : memref<20x16x2xf32, #tpu.memory_space<vmem>>, vector<16x16x2xf32>
    %120 = arith.maximumf %118, %119 : vector<16x16x2xf32>
    %121 = arith.maximumf %117, %120 : vector<16x16x2xf32>
    %c4_99 = arith.constant 4 : index
    %c0_100 = arith.constant 0 : index
    %c0_101 = arith.constant 0 : index
    %122 = vector.load %arg9[%c4_99, %c0_100, %c0_101] : memref<20x16x2xf32, #tpu.memory_space<vmem>>, vector<16x16x2xf32>
    %123 = arith.maximumf %121, %122 : vector<16x16x2xf32>
    %124 = vector.shape_cast %123 : vector<16x16x2xf32> to vector<256x2xf32>
    %125 = arith.truncf %124 : vector<256x2xf32> to vector<256x2xbf16>
    %c3_102 = arith.constant 3 : index
    %c0_103 = arith.constant 0 : index
    %c0_104 = arith.constant 0 : index
    %126 = vector.load %arg5[%c3_102, %c0_103, %c0_104] : memref<4x2x8xbf16, #tpu.memory_space<vmem>>, vector<1x2x8xbf16>
    %127 = vector.shape_cast %126 : vector<1x2x8xbf16> to vector<2x8xbf16>
    %cst_105 = arith.constant dense<0.000000e+00> : vector<256x8xf32>
    %128 = tpu.matmul %125, %127, %cst_105 {dimension_numbers = #tpu.dot_dimension_numbers<[1], [0], [0], [1], [0, 0, 1, 1], [], []>} : vector<256x2xbf16>, vector<2x8xbf16>, vector<256x8xf32> -> vector<256x8xf32>
    %129 = arith.addf %97, %128 : vector<256x8xf32>
    %c0_106 = arith.constant 0 : index
    %c0_107 = arith.constant 0 : index
    %130 = vector.load %arg6[%c0_106, %c0_107] : memref<1x8xf32, #tpu.memory_space<vmem>>, vector<1x8xf32>
    %131 = vector.broadcast %130 : vector<1x8xf32> to vector<256x8xf32>
    %132 = arith.mulf %129, %131 : vector<256x8xf32>
    %c0_108 = arith.constant 0 : index
    %c0_109 = arith.constant 0 : index
    %133 = vector.load %arg7[%c0_108, %c0_109] : memref<1x8xf32, #tpu.memory_space<vmem>>, vector<1x8xf32>
    %134 = vector.broadcast %133 : vector<1x8xf32> to vector<256x8xf32>
    %135 = arith.addf %132, %134 : vector<256x8xf32>
    %136 = arith.negf %135 : vector<256x8xf32>
    %137 = math.exp %136 : vector<256x8xf32>
    %cst_110 = arith.constant 1.000000e+00 : f32
    %138 = vector.broadcast %cst_110 : f32 to vector<256x8xf32>
    %139 = arith.addf %138, %137 : vector<256x8xf32>
    %140 = arith.divf %138, %139 : vector<256x8xf32>
    %141 = arith.mulf %135, %140 : vector<256x8xf32>
    %c0_111 = arith.constant 0 : index
    %c0_112 = arith.constant 0 : index
    %c0_113 = arith.constant 0 : index
    %142 = vector.load %arg8[%c0_111, %c0_112, %c0_113] : memref<1x256x8xf32, #tpu.memory_space<vmem>>, vector<1x256x8xf32>
    %143 = vector.shape_cast %142 : vector<1x256x8xf32> to vector<256x8xf32>
    %144 = vector.shape_cast %141 : vector<256x8xf32> to vector<1x256x8xf32>
    tpu.vector_store %arg8[%c0_111, %c0_112, %c0_113], %144 {strides = array<i32>} : memref<1x256x8xf32, #tpu.memory_space<vmem>>, vector<1x256x8xf32>,
    return
  }
  func.func @transform_0(%arg0: i32) -> (i32, i32, i32) {
    %c0_i32 = arith.constant 0 : i32
    %c0_i32_0 = arith.constant 0 : i32
    %c0_i32_1 = arith.constant 0 : i32
    return %arg0, %c0_i32, %c0_i32_0 : i32, i32, i32
  }
  func.func @transform_1(%arg0: i32) -> (i32, i32) {
    %c0_i32 = arith.constant 0 : i32
    %c0_i32_0 = arith.constant 0 : i32
    %c0_i32_1 = arith.constant 0 : i32
    return %c0_i32, %c0_i32_0 : i32, i32
  }
  func.func @transform_2(%arg0: i32) -> (i32, i32) {
    %c0_i32 = arith.constant 0 : i32
    %c0_i32_0 = arith.constant 0 : i32
    %c0_i32_1 = arith.constant 0 : i32
    return %c0_i32, %c0_i32_0 : i32, i32
  }
  func.func @transform_3(%arg0: i32) -> (i32, i32) {
    %c0_i32 = arith.constant 0 : i32
    %c0_i32_0 = arith.constant 0 : i32
    %c0_i32_1 = arith.constant 0 : i32
    return %c0_i32, %c0_i32_0 : i32, i32
  }
  func.func @transform_4(%arg0: i32) -> (i32, i32, i32) {
    %c0_i32 = arith.constant 0 : i32
    %c0_i32_0 = arith.constant 0 : i32
    %c0_i32_1 = arith.constant 0 : i32
    %c0_i32_2 = arith.constant 0 : i32
    return %c0_i32, %c0_i32_0, %c0_i32_1 : i32, i32, i32
  }
  func.func @transform_5(%arg0: i32) -> (i32, i32) {
    %c0_i32 = arith.constant 0 : i32
    %c0_i32_0 = arith.constant 0 : i32
    %c0_i32_1 = arith.constant 0 : i32
    return %c0_i32, %c0_i32_0 : i32, i32
  }
  func.func @transform_6(%arg0: i32) -> (i32, i32) {
    %c0_i32 = arith.constant 0 : i32
    %c0_i32_0 = arith.constant 0 : i32
    %c0_i32_1 = arith.constant 0 : i32
    return %c0_i32, %c0_i32_0 : i32, i32
  }
  func.func @transform_7(%arg0: i32) -> (i32, i32, i32) {
    %c0_i32 = arith.constant 0 : i32
    %c0_i32_0 = arith.constant 0 : i32
    %c0_i32_1 = arith.constant 0 : i32
    return %arg0, %c0_i32, %c0_i32_0 : i32, i32, i32
  }
}

</mosaic_0001>

<bundles_post_ra>
// kernel: _lambda_.1
= control target key start
LH: loop header
LB: loop body
LE: loop exit
PB: predicated region body
PF: predicated region fallthrough
CT: control target
= control target key end

     0   :  { %s5835_s24 = smov 0   ;;  %s10704_s0 = inlined_call_operand.vmem [shape: bf16[2,256,4], index: 0, kind: input, shape index: {}]   ;;  %s10705_s1 = inlined_call_operand.vmem [shape: bf16[4,2], index: 1, kind: input, shape index: {}]   ;;  %s10706_s2 = inlined_call_operand.vmem [shape: f32[1,2], index: 2, kind: input, shape index: {}]   ;;  %s10707_s3 = inlined_call_operand.vmem [shape: f32[1,2], index: 3, kind: input, shape index: {}]   ;;  %s10708_s4 = inlined_call_operand.vmem [shape: bf16[4,2,8], index: 4, kind: input, shape index: {}]   ;;  %s10709_s5 = inlined_call_operand.vmem [shape: f32[1,8], index: 5, kind: input, shape index: {}]   ;;  %s10710_s6 = inlined_call_operand.vmem [shape: f32[1,8], index: 6, kind: input, shape index: {}]   ;;  %s10711_s7 = inlined_call_operand.vmem [shape: f32[2,256,8], index: 7, kind: output, shape index: {}]  }
   0x1 LB: > { %s5268_s25 = sadd.s32 4294967295, %s5792_s24   ;;  %p5272_p0 = scmp.ge.s32.totalorder %s5792_s24, 1  ;;  %s5792_s24 = sphi %s5835_s24, %s17_s24  }
   0x2   : > { %p237_p1 = scmp.lt.s32.totalorder %s5792_s24, 3 }
   0x4   : > { %p238_p2 = pnand %p5272_p0, %p237_p1 }
   0x6   : > { %241 = sbr.rel (%p238_p2) target bundleno = 1038 (0x40e), region = 48 }
   0xb   : > { %v322_v0 = vld [vmem:[%s10705_s1] sm:$0x3]  ;;  %vm452_vm0 = vcmask 1041408   ;;  %p269_p3 = scmp.lt.s32.totalorder %s5268_s25, 1  ;;  %vm403_vm1 = vcmask 31744   ;;  %v1257_v57 = vlaneseq }
   0xc   : > { %v454_v1 = vsel %vm452_vm0, %v322_v0, 0  ;;  %v5871_v18 = vld [vmem:[%s10706_s2] ss:$0 sm:$0xff] }
   0xd   : > { %463 = vmatpush.bf16.msra.mxu0 %v454_v1  ;;  %5508 = vmatpush.bf16.msra.mxu1 %v454_v1  ;;  %s11019_s25 = smov (!%p269_p3, %s5268_s25), 1  ;;  %v5876_v19 = vld [vmem:[%s10707_s3] ss:$0 sm:$0xff] }
   0xe   : > { %5509 = vmatpush.bf16.msra.mxu2 %v454_v1  ;;  %5510 = vmatpush.bf16.msra.mxu3 %v454_v1  ;;  %s5490_s28 = sshll.u32 %s11019_s25, 7 }
   0xf   : > { %s273_s8 = scalar_lea.vmem %s10704_s0, %s5490_s28 }
  0x10   : > { %v5492_v2 = vld [vmem:[%s273_s8] sm:$0xff]  ;;  %v5493_v6 = vld [vmem:[%s273_s8 + $0x8] sm:$0xff]  ;;  %v5494_v10 = vld [vmem:[%s273_s8 + $0x10] sm:$0xff] }
  0x11   : > { %v5496_v3 = vld [vmem:[%s273_s8 + $0x20] sm:$0xff]  ;;  %5341 = vmatmul.msk.bf16.vlgmr.msra.gmra.mxu0 %vm403_vm1, %v5492_v2  ;;  %v5497_v7 = vld [vmem:[%s273_s8 + $0x28] sm:$0xff]  ;;  %v5498_v11 = vld [vmem:[%s273_s8 + $0x30] sm:$0xff] }
  0x12   : > { %v5500_v4 = vld [vmem:[%s273_s8 + $0x40] sm:$0xff]  ;;  %5345 = vmatmul.msk.bf16.vlgmr.msra.gmra.mxu1 %vm403_vm1, %v5496_v3  ;;  %v5501_v8 = vld [vmem:[%s273_s8 + $0x48] sm:$0xff]  ;;  %v5502_v12 = vld [vmem:[%s273_s8 + $0x50] sm:$0xff] }
  0x13   : > { %v5504_v5 = vld [vmem:[%s273_s8 + $0x60] sm:$0xff]  ;;  %5349 = vmatmul.msk.bf16.vlgmr.msra.gmra.mxu2 %vm403_vm1, %v5500_v4  ;;  %v5505_v9 = vld [vmem:[%s273_s8 + $0x68] sm:$0xff]  ;;  %v5506_v13 = vld [vmem:[%s273_s8 + $0x70] sm:$0xff] }
  0x14   : > { %5353 = vmatmul.msk.bf16.vlgmr.msra.gmra.mxu3 %vm403_vm1, %v5504_v5  ;;  %v5495_v14 = vld [vmem:[%s273_s8 + $0x18] sm:$0xff]  ;;  %v5916_v5 = vshrl.u32 %v1257_v57, 7 }
  0x15   : > { %v5499_v15 = vld [vmem:[%s273_s8 + $0x38] sm:$0xff] }
  0x16   : > { %v5503_v16 = vld [vmem:[%s273_s8 + $0x58] sm:$0xff] }
  0x17   : > { %v5507_v17 = vld [vmem:[%s273_s8 + $0x78] sm:$0xff]  ;;  %s5491_s8 = sshll.u32 %s11019_s25, 8 }
  0x18   : > { %s9709_s10 = scalar_lea.vmem %s10711_s7, %s5491_s8 }
  0x21   : > { %5342 = vmatmul.msk.bf16.gmra.mxu0 %vm403_vm1, %v5493_v6 }
  0x22   : > { %5346 = vmatmul.msk.bf16.gmra.mxu1 %vm403_vm1, %v5497_v7 }
  0x23   : > { %5350 = vmatmul.msk.bf16.gmra.mxu2 %vm403_vm1, %v5501_v8 }
  0x24   : > { %5354 = vmatmul.msk.bf16.gmra.mxu3 %vm403_vm1, %v5505_v9 }
  0x31   : > { %5343 = vmatmul.msk.bf16.gmra.mxu0 %vm403_vm1, %v5494_v10 }
  0x32   : > { %5347 = vmatmul.msk.bf16.gmra.mxu1 %vm403_vm1, %v5498_v11 }
  0x33   : > { %5351 = vmatmul.msk.bf16.gmra.mxu2 %vm403_vm1, %v5502_v12 }
  0x34   : > { %5355 = vmatmul.msk.bf16.gmra.mxu3 %vm403_vm1, %v5506_v13 }
  0x41   : > { %5344 = vmatmul.msk.bf16.gmra.mxu0 %vm403_vm1, %v5495_v14 }
  0x42   : > { %5348 = vmatmul.msk.bf16.gmra.mxu1 %vm403_vm1, %v5499_v15 }
  0x43   : > { %5352 = vmatmul.msk.bf16.gmra.mxu2 %vm403_vm1, %v5503_v16 }
  0x44   : > { %5356 = vmatmul.msk.bf16.gmra.mxu3 %vm403_vm1, %v5507_v17  ;;  %vm10728_vm1 = vcmp.lt.s32.totalorder %v5916_v5, 1 }
  0x8e   : > { %v465_v20 = vpop.f32.mrf.mxu0 }
  0x8f   : > { %v485_v21 = vpop.f32.mrf.mxu1  ;;  %v549_v22 = vmul.f32 %v5871_v18, %v465_v20 }
  0x90   : > { %v557_v23 = vmul.f32 %v5871_v18, %v485_v21 }
  0x91   : > { %v5881_v24 = vadd.f32 %v5876_v19, %v549_v22 }
  0x92   : > { %v5884_v25 = vadd.f32 %v5876_v19, %v557_v23 }
  0x93   : > { %v5357_v26 = vmul.f32 -1.442695, %v5881_v24 }
  0x94   : > { %v5365_v27 = vmul.f32 -1.442695, %v5884_v25 }
  0x95   : > { %5524 = vpow2.f32 %v5357_v26 }
  0x96   : > { %v505_v28 = vpop.f32.mrf.mxu2  ;;  %5526 = vpow2.f32 %v5365_v27  ;;  %v467_v30 = vpop.f32.mrf.mxu0 }
  0x97   : > { %v565_v29 = vmul.f32 %v5871_v18, %v505_v28  ;;  %v487_v31 = vpop.f32.mrf.mxu1  ;;  %v550_v32 = vmul.f32 %v5871_v18, %v467_v30  ;;  %v525_v35 = vpop.f32.mrf.mxu3 }
  0x98   : > { %v558_v33 = vmul.f32 %v5871_v18, %v487_v31  ;;  %v573_v36 = vmul.f32 %v5871_v18, %v525_v35  ;;  %v5962_v35 = vadd.s32 8, %v5916_v5 }
  0x99   : > { %v5892_v34 = vadd.f32 %v5876_v19, %v565_v29  ;;  %v5896_v37 = vadd.f32 %v5876_v19, %v550_v32 }
  0x9a   : > { %v5900_v40 = vadd.f32 %v5876_v19, %v573_v36  ;;  %v5904_v42 = vadd.f32 %v5876_v19, %v558_v33 }
  0x9b   : > { %v5373_v38 = vmul.f32 -1.442695, %v5892_v34  ;;  %v5525_v39 = vpop.eup %5524  ;;  %v5358_v41 = vmul.f32 -1.442695, %v5896_v37 }
  0x9c   : > { %v5527_v43 = vpop.eup %5526  ;;  %v713_v44 = vadd.f32 1.0, %v5525_v39  ;;  %v5381_v46 = vmul.f32 -1.442695, %v5900_v40  ;;  %v5366_v47 = vmul.f32 -1.442695, %v5904_v42 }
  0x9d   : > { %5528 = vpow2.f32 %v5373_v38  ;;  %v721_v45 = vadd.f32 1.0, %v5527_v43 }
  0x9e   : > { %5530 = vpow2.f32 %v5358_v41  ;;  %v754_v59 = vand.u32 2147483647, %v713_v44  ;;  %v756_v61 = vand.u32 2147483648, %v713_v44  ;;  %v470_v2 = vpop.f32.mrf.mxu0  ;;  %vm750_vm5 = vweird.f32 %v713_v44  ;;  %v507_v57 = vpop.f32.mrf.mxu2 }
  0x9f   : > { %5532 = vrcp.f32 %v713_v44  ;;  %vm870_vm3 = vweird.f32 %v721_v45  ;;  %v874_v1 = vand.u32 2147483647, %v721_v45  ;;  %v876_v4 = vand.u32 2147483648, %v721_v45  ;;  %v490_v22 = vpop.f32.mrf.mxu1 }
  0xa0   : > { %5534 = vrcp.f32 %v721_v45  ;;  %vm5925_vm7 = vcmp.eq.f32.partialorder %v754_v59, 8.507059e+37  ;;  %v757_v11 = vor.u32 1.1754944e-38, %v756_v61  ;;  %v551_v15 = vmul.f32 %v5871_v18, %v470_v2 }
  0xa1   : > { %5536 = vpow2.f32 %v5381_v46  ;;  %vm5945_vm9 = vcmp.eq.f32.partialorder %v874_v1, 8.507059e+37  ;;  %v877_v23 = vor.u32 1.1754944e-38, %v876_v4  ;;  %v559_v38 = vmul.f32 %v5871_v18, %v490_v22  ;;  %v527_v22 = vpop.f32.mrf.mxu3 }
  0xa2   : > { %5538 = vpow2.f32 %v5366_v47  ;;  %v5965_v36 = vadd.f32 %v5876_v19, %v551_v15 }
  0xa3   : > { %v5529_v48 = vpop.eup %5528 }
  0xa4   : > { %v5531_v49 = vpop.eup %5530  ;;  %v5908_v50 = vadd.f32 1.0, %v5529_v48 }
  0xa5   : > { %v5533_v51 = vpop.eup %5532  ;;  %v5910_v52 = vadd.f32 1.0, %v5531_v49 }
  0xa6   : > { %v5535_v53 = vpop.eup %5534  ;;  %v746_v54 = vmul.f32 %v5533_v51, %v713_v44  ;;  %5540 = vrcp.f32 %v5908_v50  ;;  %vm751_vm2 = vweird.f32 %v5533_v51  ;;  %v996_v21 = vand.u32 2147483648, %v5908_v50 }
  0xa7   : > { %v5537_v55 = vpop.eup %5536  ;;  %v866_v56 = vmul.f32 %v5535_v53, %v721_v45  ;;  %5542 = vrcp.f32 %v5910_v52  ;;  %vm871_vm4 = vweird.f32 %v5535_v53  ;;  %vm5921_vm6 = vmor %vm750_vm5, %vm751_vm2  ;;  %v769_v27 = vand.u32 2147483647, %v5910_v52 }
  0xa8   : > { %v747_v58 = vsub.f32 1.0, %v746_v54  ;;  %v5913_v60 = vadd.f32 1.0, %v5537_v55  ;;  %v5539_v63 = vpop.eup %5538  ;;  %vm5934_vm8 = vmor %vm870_vm3, %vm871_vm4  ;;  %v771_v28 = vand.u32 2147483648, %v5910_v52  ;;  %v994_v31 = vand.u32 2147483647, %v5908_v50 }
  0xa9   : > { %v867_v62 = vsub.f32 1.0, %v866_v56  ;;  %v5930_v10 = vadd.f32 1.0, %v5539_v63  ;;  %vm990_vm10 = vweird.f32 %v5908_v50  ;;  %v5971_v41 = vor.u32 1.1754944e-38, %v996_v21 }
  0xaa   : > { %v748_v0 = vmul.f32 %v5533_v51, %v747_v58  ;;  %5544 = vrcp.f32 %v5913_v60  ;;  %v1116_v26 = vand.u32 2147483648, %v5913_v60  ;;  %v1114_v43 = vand.u32 2147483647, %v5913_v60 }
  0xab   : > { %v868_v3 = vmul.f32 %v5535_v53, %v867_v62  ;;  %5546 = vrcp.f32 %v5930_v10  ;;  %vm765_vm11 = vweird.f32 %v5910_v52  ;;  %vm5980_vm13 = vcmp.eq.f32.partialorder %v769_v27, 8.507059e+37 }
  0xac   : > { %v5918_v6 = vpop.eup %5540  ;;  %v749_v7 = vadd.f32 %v5533_v51, %v748_v0  ;;  %v5978_v45 = vor.u32 1.1754944e-38, %v1116_v26  ;;  %v772_v47 = vor.u32 1.1754944e-38, %v771_v28  ;;  %vm5988_vm14 = vcmp.eq.f32.partialorder %v994_v31, 8.507059e+37 }
  0xad   : > { %v869_v12 = vadd.f32 %v5535_v53, %v868_v3  ;;  %v986_v14 = vmul.f32 %v5918_v6, %v5908_v50  ;;  %v5941_v16 = vpop.eup %5542  ;;  %vm991_vm12 = vweird.f32 %v5918_v6  ;;  %vm885_vm15 = vweird.f32 %v5930_v10 }
  0xae   : > { %v753_v17 = vsel %vm5921_vm6, %v5533_v51, %v749_v7  ;;  %v761_v32 = vmul.f32 %v5941_v16, %v5910_v52  ;;  %vm766_vm0 = vweird.f32 %v5941_v16  ;;  %v891_v61 = vand.u32 2147483648, %v5930_v10  ;;  %vm6013_vm4 = vmor %vm990_vm10, %vm991_vm12 }
  0xaf   : > { %v873_v29 = vsel %vm5934_vm8, %v5535_v53, %v869_v12  ;;  %v987_v30 = vsub.f32 1.0, %v986_v14  ;;  %v758_v33 = vsel %vm5925_vm7, %v757_v11, %v753_v17  ;;  %v566_v62 = vmul.f32 %v5871_v18, %v507_v57  ;;  %vm6029_vm8 = vmor %vm765_vm11, %vm766_vm0 }
  0xb0   : > { %v5968_v39 = vpop.eup %5544  ;;  %v878_v44 = vsel %vm5945_vm9, %v877_v23, %v873_v29  ;;  %v5985_v49 = vmul.f32 %v758_v33, %v5881_v24  ;;  %v762_v54 = vsub.f32 1.0, %v761_v32  ;;  %v5359_v24 = vmul.f32 -1.442695, %v5965_v36 }
  0xb1   : > { %v5547_v48 = vpop.eup %5546  ;;  %v988_v51 = vmul.f32 %v5918_v6, %v987_v30  ;;  %v1106_v55 = vmul.f32 %v5968_v39, %v5913_v60  ;;  %v5999_v58 = vmul.f32 %v878_v44, %v5884_v25  ;;  %vm1414_vm2 = vcmp.lt.s32.totalorder %v5916_v5, 2 }
  0xb2   : > { %v881_v56 = vmul.f32 %v5547_v48, %v5930_v10  ;;  %v763_v59 = vmul.f32 %v5941_v16, %v762_v54  ;;  %vm886_vm3 = vweird.f32 %v5547_v48  ;;  %v889_v0 = vand.u32 2147483647, %v5930_v10 }
  0xb3   : > { %5548 = vpow2.f32 %v5359_v24  ;;  %v1285_v1 = vrot.slane %v5985_v49, 7  ;;  %v989_v25 = vadd.f32 %v5918_v6, %v988_v51  ;;  %vm1260_vm5 = vcmp.ge.s32.totalorder %v5916_v5, 1  ;;  %vm6045_vm11 = vmor %vm885_vm15, %vm886_vm3 }
  0xb4   : > { %v882_v63 = vsub.f32 1.0, %v881_v56  ;;  %v764_v3 = vadd.f32 %v5941_v16, %v763_v59  ;;  %vm1262_vm6 = vcmp.ge.s32.totalorder %v5916_v5, 2  ;;  %vm1511_vm7 = vcmp.lt.s32.totalorder %v5916_v5, 7 }
  0xb5   : > { %v6022_v4 = vadd.f32 %v5876_v19, %v566_v62  ;;  %v1382_v7 = vrot.slane %v5985_v49, 6  ;;  %v1107_v8 = vsub.f32 1.0, %v1106_v55  ;;  %vm1265_vm9 = vcmp.lt.s32.totalorder %v5962_v35, 15 }
  0xb6   : > { %vm10713_vm10 = vcmp.lt.s32.totalorder %v5916_v5, 6  ;;  %v883_v9 = vmul.f32 %v5547_v48, %v882_v63  ;;  %v6036_v11 = vadd.f32 %v5876_v19, %v559_v38  ;;  %v1479_v12 = vrot.slane %v5985_v49, 1 }
  0xb7   : > { %v1576_v13 = vrot.slane %v5985_v49, 2  ;;  %v1289_v14 = vrot.slane %v5999_v58, 7  ;;  %vm1267_vm12 = vcmp.lt.s32.totalorder %v5962_v35, 14  ;;  %v892_v15 = vor.u32 1.1754944e-38, %v891_v61 }
  0xb8   : > { %v768_v17 = vsel %vm6029_vm8, %v5941_v16, %v764_v3  ;;  %v884_v20 = vadd.f32 %v5547_v48, %v883_v9  ;;  %vm890_vm0 = vcmp.eq.f32.partialorder %v889_v0, 8.507059e+37  ;;  %v5374_v21 = vmul.f32 -1.442695, %v6022_v4 }
  0xb9   : > { %v993_v23 = vsel %vm6013_vm4, %v5918_v6, %v989_v25  ;;  %v773_v10 = vsel %vm5980_vm13, %v772_v47, %v768_v17  ;;  %v574_v26 = vmul.f32 %v5871_v18, %v527_v22  ;;  %v5367_v27 = vmul.f32 -1.442695, %v6036_v11  ;;  %v5549_v28 = vpop.eup %5548 }
  0xba   : > { %v1386_v29 = vrot.slane %v5999_v58, 6  ;;  %v1108_v16 = vmul.f32 %v5968_v39, %v1107_v8  ;;  %v6063_v30 = vmul.f32 %v773_v10, %v5896_v37  ;;  %v888_v31 = vsel %vm6045_vm11, %v5547_v48, %v884_v20 }
  0xbb   : > { %vm1110_vm15 = vweird.f32 %v5913_v60  ;;  %vm1111_vm3 = vweird.f32 %v5968_v39  ;;  %v893_v6 = vsel %vm890_vm0, %v892_v15, %v888_v31  ;;  %5550 = vpow2.f32 %v5374_v21 }
  0xbc   : > { %v6070_v32 = vadd.f32 %v5876_v19, %v574_v26  ;;  %v6072_v33 = vadd.f32 1.0, %v5549_v28  ;;  %v1483_v38 = vrot.slane %v5999_v58, 1  ;;  %v1580_v44 = vrot.slane %v5999_v58, 2 }
  0xbd   : > { %v998_v37 = vsel %vm5988_vm14, %v5971_v41, %v993_v23  ;;  %5552 = vpow2.f32 %v5367_v27  ;;  %v1301_v46 = vrot.slane %v6063_v30, 7  ;;  %v1398_v47 = vrot.slane %v6063_v30, 6  ;;  %vm6141_vm14 = vmor %vm1110_vm15, %vm1111_vm3 }
  0xbe   : > { %v1495_v48 = vrot.slane %v6063_v30, 1  ;;  %v1592_v51 = vrot.slane %v6063_v30, 2  ;;  %v6084_v54 = vadd.f32 %v5968_v39, %v1108_v16  ;;  %v6087_v55 = vmul.f32 %v893_v6, %v5904_v42 }
  0xbf   : > { %v5382_v56 = vmul.f32 -1.442695, %v6070_v32  ;;  %5554 = vrcp.f32 %v6072_v33  ;;  %vm280_vm13 = vcmask 15360   ;;  %v1318_v41 = vsel %vm10728_vm1, %v1285_v1, %v1301_v46 }
  0xc0   : > { %v1334_v53 = vsel %vm10728_vm1, %v1301_v46, %v1285_v1  ;;  %v1415_v57 = vsel %vm1414_vm2, %v1382_v7, %v1398_v47  ;;  %v1431_v24 = vsel %vm1414_vm2, %v1398_v47, %v1382_v7  ;;  %v1512_v61 = vsel %vm1511_vm7, %v1479_v12, %v1495_v48 }
  0xc1   : > { %v1350_v42 = vsel %vm1260_vm5, %v1334_v53, -inf  ;;  %v1447_v59 = vsel %vm1262_vm6, %v1431_v24, -inf  ;;  %v1528_v62 = vsel %vm1511_vm7, %v1495_v48, %v1479_v12  ;;  %v5551_v63 = vpop.eup %5550  ;;  %v1609_v1 = vsel %vm10713_vm10, %v1576_v13, %v1592_v51 }
  0xc2   : > { %v1545_v0 = vsel %vm1265_vm9, %v1528_v62, -inf  ;;  %v1625_v25 = vsel %vm10713_vm10, %v1592_v51, %v1576_v13  ;;  %v1673_v2 = vmax.f32 %v1447_v59, %v1350_v42  ;;  %v1674_v8 = vmax.f32 %v1415_v57, %v1318_v41 }
  0xc3   : > { %v5553_v3 = vpop.eup %5552  ;;  %v1642_v7 = vsel %vm1267_vm12, %v1625_v25, -inf  ;;  %v1705_v50 = vmax.f32 %v1512_v61, %v1609_v1  ;;  %v1305_v9 = vrot.slane %v6087_v55, 7  ;;  %v1402_v52 = vrot.slane %v6087_v55, 6 }
  0xc4   : > { %v1706_v12 = vmax.f32 %v1545_v0, %v1642_v7  ;;  %v1499_v15 = vrot.slane %v6087_v55, 1  ;;  %v1596_v17 = vrot.slane %v6087_v55, 2  ;;  %v6129_v23 = vadd.f32 1.0, %v5551_v63  ;;  %v472_v63 = vpop.f32.mrf.mxu0 }
  0xc5   : > { %v6119_v20 = vpop.eup %5554  ;;  %v1737_v21 = vmax.f32 %v1673_v2, %v1705_v50  ;;  %v1322_v13 = vsel %vm10728_vm1, %v1289_v14, %v1305_v9  ;;  %v1338_v22 = vsel %vm10728_vm1, %v1305_v9, %v1289_v14  ;;  %v1419_v27 = vsel %vm1414_vm2, %v1386_v29, %v1402_v52 }
  0xc6   : > { %v1738_v10 = vmax.f32 %v1674_v8, %v1706_v12  ;;  %v1358_v26 = vsel %vm1260_vm5, %v1338_v22, -inf  ;;  %v1435_v28 = vsel %vm1414_vm2, %v1402_v52, %v1386_v29  ;;  %v1516_v6 = vsel %vm1511_vm7, %v1483_v38, %v1499_v15 }
  0xc7   : > { %v1769_v14 = vmax.f32 %v1737_v21, %v5985_v49  ;;  %v1455_v31 = vsel %vm1262_vm6, %v1435_v28, -inf  ;;  %v1532_v46 = vsel %vm1511_vm7, %v1499_v15, %v1483_v38  ;;  %v1613_v48 = vsel %vm10713_vm10, %v1580_v44, %v1596_v17 }
  0xc8   : > { %v1770_v29 = vmax.f32 %v1738_v10, %v6063_v30  ;;  %v1553_v47 = vsel %vm1265_vm9, %v1532_v46, -inf  ;;  %v1629_v51 = vsel %vm10713_vm10, %v1596_v17, %v1580_v44  ;;  %v1681_v53 = vmax.f32 %v1455_v31, %v1358_v26  ;;  %v530_v26 = vpop.f32.mrf.mxu3 }
  0xc9   : > { %1802 = vst.msk [vmem:[#allocation2 + $0x20] sm:$0xff] %vm280_vm13, %v1769_v14  ;;  %v1650_v41 = vsel %vm1267_vm12, %v1629_v51, -inf  ;;  %v1682_v57 = vmax.f32 %v1419_v27, %v1322_v13  ;;  %v1713_v24 = vmax.f32 %v1516_v6, %v1613_v48  ;;  %v1113_v38 = vsel %vm6141_vm14, %v5968_v39, %v6084_v54  ;;  %v510_v54 = vpop.f32.mrf.mxu2  ;;  %v492_v14 = vpop.f32.mrf.mxu1 }
  0xca   : > { %vm1115_vm4 = vcmp.eq.f32.partialorder %v1114_v43, 8.507059e+37  ;;  %1803 = vst.msk [vmem:[#allocation2 + $0x28] sm:$0xff] %vm280_vm13, %v1770_v29  ;;  %v1714_v42 = vmax.f32 %v1553_v47, %v1650_v41  ;;  %5556 = vrcp.f32 %v6129_v23  ;;  %v6171_v44 = vmul.f32 %v998_v37, %v5892_v34 }
  0xcb   : > { %v1745_v59 = vmax.f32 %v1681_v53, %v1713_v24  ;;  %5558 = vpow2.f32 %v5382_v56  ;;  %v776_v61 = vmul.f32 %v6119_v20, %v6072_v33  ;;  %v1118_v39 = vsel %vm1115_vm4, %v5978_v45, %v1113_v38 }
  0xcc   : > { %v1746_v62 = vmax.f32 %v1682_v57, %v1714_v42  ;;  %v6178_v1 = vadd.f32 1.0, %v5553_v3  ;;  %v567_v34 = vmul.f32 %v5871_v18, %v510_v54  ;;  %v1293_v37 = vrot.slane %v6171_v44, 7 }
  0xcd   : > { %v1777_v60 = vmax.f32 %v1745_v59, %v5999_v58  ;;  %v777_v43 = vsub.f32 1.0, %v776_v61  ;;  %v552_v56 = vmul.f32 %v5871_v18, %v472_v63  ;;  %v1390_v2 = vrot.slane %v6171_v44, 6 }
  0xce   : > { %v1778_v0 = vmax.f32 %v1746_v62, %v6087_v55  ;;  %v1487_v45 = vrot.slane %v6171_v44, 1  ;;  %v1584_v7 = vrot.slane %v6171_v44, 2  ;;  %v6188_v8 = vmul.f32 %v1118_v39, %v5900_v40 }
  0xcf   : > { %1810 = vst.msk [vmem:[#allocation2 + $0x60] sm:$0xff] %vm280_vm13, %v1777_v60  ;;  %v778_v9 = vmul.f32 %v6119_v20, %v777_v43  ;;  %5560 = vrcp.f32 %v6178_v1  ;;  %v6195_v12 = vadd.f32 %v5876_v19, %v567_v34  ;;  %vm1005_vm8 = vweird.f32 %v6129_v23 }
  0xd0   : > { %v5557_v25 = vpop.eup %5556  ;;  %10749 = vst [vmem:[#allocation3_spill] sm:$0xff] %v6188_v8  ;;  %v1009_v52 = vand.u32 2147483647, %v6129_v23  ;;  %v1011_v15 = vand.u32 2147483648, %v6129_v23  ;;  %v6204_v13 = vadd.f32 %v5876_v19, %v552_v56  ;;  %vm781_vm0 = vweird.f32 %v6119_v20 }
  0xd1   : > { %1811 = vst.msk [vmem:[#allocation2 + $0x68] sm:$0xff] %vm280_vm13, %v1778_v0  ;;  %v5559_v3 = vpop.eup %5558  ;;  %v1001_v50 = vmul.f32 %v5557_v25, %v6129_v23  ;;  %vm1006_vm11 = vweird.f32 %v5557_v25  ;;  %v5375_v21 = vmul.f32 -1.442695, %v6195_v12  ;;  %v784_v22 = vand.u32 2147483647, %v6072_v33 }
  0xd2   : > { %v6200_v40 = vadd.f32 1.0, %v5559_v3  ;;  %v786_v10 = vand.u32 2147483648, %v6072_v33  ;;  %v779_v28 = vadd.f32 %v6119_v20, %v778_v9  ;;  %v575_v16 = vmul.f32 %v5871_v18, %v530_v26  ;;  %vm6217_vm15 = vmor %vm1005_vm8, %vm1006_vm11 }
  0xd3   : > { %v1002_v17 = vsub.f32 1.0, %v1001_v50  ;;  %v1297_v31 = vrot.slane %v6188_v8, 7  ;;  %v1394_v6 = vrot.slane %v6188_v8, 6  ;;  %v1012_v29 = vor.u32 1.1754944e-38, %v1011_v15 }
  0xd4   : > { %5562 = vrcp.f32 %v6200_v40  ;;  %vm780_vm3 = vweird.f32 %v6072_v33  ;;  %vm1010_vm14 = vcmp.eq.f32.partialorder %v1009_v52, 8.507059e+37  ;;  %v6225_v51 = vadd.f32 %v5876_v19, %v575_v16 }
  0xd5   : > { %v1003_v27 = vmul.f32 %v5557_v25, %v1002_v17  ;;  %5564 = vpow2.f32 %v5375_v21  ;;  %v6222_v47 = vpop.eup %5560  ;;  %v5360_v41 = vmul.f32 -1.442695, %v6204_v13  ;;  %v1491_v53 = vrot.slane %v6188_v8, 1  ;;  %vm6231_vm4 = vmor %vm780_vm3, %vm781_vm0 }
  0xd6   : > { %vm6235_vm8 = vcmp.eq.f32.partialorder %v784_v22, 8.507059e+37  ;;  %v787_v33 = vor.u32 1.1754944e-38, %v786_v10  ;;  %v560_v24 = vmul.f32 %v5871_v18, %v492_v14  ;;  %v783_v42 = vsel %vm6231_vm4, %v6119_v20, %v779_v28 }
  0xd7   : > { %v1004_v48 = vadd.f32 %v5557_v25, %v1003_v27  ;;  %v904_v59 = vand.u32 2147483647, %v6178_v1  ;;  %v5383_v61 = vmul.f32 -1.442695, %v6225_v51  ;;  %vm1125_vm11 = vweird.f32 %v6200_v40 }
  0xd8   : > { %v896_v39 = vmul.f32 %v6222_v47, %v6178_v1  ;;  %v906_v60 = vand.u32 2147483648, %v6178_v1  ;;  %v1129_v0 = vand.u32 2147483647, %v6200_v40  ;;  %5566 = vpow2.f32 %v5360_v41 }
  0xd9   : > { %v1008_v38 = vsel %vm6217_vm15, %v5557_v25, %v1004_v48  ;;  %v1131_v34 = vand.u32 2147483648, %v6200_v40  ;;  %v788_v56 = vsel %vm6235_vm8, %v787_v33, %v783_v42  ;;  %5568 = vpow2.f32 %v5383_v61 }
  0xda   : > { %v6247_v62 = vpop.eup %5562  ;;  %v1013_v63 = vsel %vm1010_vm14, %v1012_v29, %v1008_v38  ;;  %vm900_vm0 = vweird.f32 %v6178_v1  ;;  %v897_v15 = vsub.f32 1.0, %v896_v39  ;;  %v6322_v61 = vadd.f32 %v5876_v19, %v560_v24 }
  0xdb   : > { %v5565_v43 = vpop.eup %5564  ;;  %v6254_v54 = vmul.f32 %v1013_v63, %v6022_v4  ;;  %v1121_v20 = vmul.f32 %v6247_v62, %v6200_v40  ;;  %vm1126_vm15 = vweird.f32 %v6247_v62  ;;  %v1132_v42 = vor.u32 1.1754944e-38, %v1131_v34 }
  0xdc   : > { %v6262_v25 = vadd.f32 1.0, %v5565_v43  ;;  %vm6316_vm3 = vmor %vm1125_vm11, %vm1126_vm15  ;;  %vm1130_vm14 = vcmp.eq.f32.partialorder %v1129_v0, 8.507059e+37  ;;  %vm901_vm4 = vweird.f32 %v6222_v47  ;;  %v1588_v24 = vrot.slane %v6188_v8, 2 }
  0xdd   : > { %v1309_v3 = vrot.slane %v6254_v54, 7  ;;  %v1406_v50 = vrot.slane %v6254_v54, 6  ;;  %v1503_v4 = vrot.slane %v6254_v54, 1  ;;  %v1600_v9 = vrot.slane %v6254_v54, 2  ;;  %vm6356_vm11 = vmor %vm900_vm0, %vm901_vm4 }
  0xde   : > { %v1122_v52 = vsub.f32 1.0, %v1121_v20  ;;  %5570 = vrcp.f32 %v6262_v25  ;;  %v5567_v16 = vpop.eup %5566  ;;  %v6328_v20 = vmul.f32 %v788_v56, %v5965_v36  ;;  %vm6340_vm8 = vcmp.eq.f32.partialorder %v904_v59, 8.507059e+37  ;;  %v475_v36 = vpop.f32.mrf.mxu0 }
  0xdf   : > { %v1326_v17 = vsel %vm10728_vm1, %v1293_v37, %v1309_v3  ;;  %v1342_v21 = vsel %vm10728_vm1, %v1309_v3, %v1293_v37  ;;  %v1423_v22 = vsel %vm1414_vm2, %v1390_v2, %v1406_v50  ;;  %v1439_v10 = vsel %vm1414_vm2, %v1406_v50, %v1390_v2  ;;  %v5569_v48 = vpop.eup %5568 }
  0xe0   : > { %v1366_v26 = vsel %vm1260_vm5, %v1342_v21, -inf  ;;  %v1463_v27 = vsel %vm1262_vm6, %v1439_v10, -inf  ;;  %v1520_v37 = vsel %vm1511_vm7, %v1487_v45, %v1503_v4  ;;  %v1536_v28 = vsel %vm1511_vm7, %v1503_v4, %v1487_v45 }
  0xe1   : > { %v1561_v2 = vsel %vm1265_vm9, %v1536_v28, -inf  ;;  %v1617_v14 = vsel %vm10713_vm10, %v1584_v7, %v1600_v9  ;;  %v1633_v46 = vsel %vm10713_vm10, %v1600_v9, %v1584_v7  ;;  %v1689_v29 = vmax.f32 %v1463_v27, %v1366_v26 }
  0xe2   : > { %v1658_v41 = vsel %vm1267_vm12, %v1633_v46, -inf  ;;  %v1690_v45 = vmax.f32 %v1423_v22, %v1326_v17  ;;  %v1721_v23 = vmax.f32 %v1520_v37, %v1617_v14  ;;  %v1123_v57 = vmul.f32 %v6247_v62, %v1122_v52 }
  0xe3   : > { %v1722_v33 = vmax.f32 %v1561_v2, %v1658_v41  ;;  %v898_v7 = vmul.f32 %v6222_v47, %v897_v15  ;;  %v6333_v3 = vadd.f32 1.0, %v5569_v48  ;;  %v907_v15 = vor.u32 1.1754944e-38, %v906_v60 }
  0xe4   : > { %v6324_v63 = vpop.eup %5570  ;;  %v1753_v39 = vmax.f32 %v1689_v29, %v1721_v23  ;;  %v1124_v43 = vadd.f32 %v6247_v62, %v1123_v57  ;;  %v1286_v21 = vrot.slane %v6328_v20, 7  ;;  %vm1020_vm15 = vweird.f32 %v6262_v25 }
  0xe5   : > { %v1754_v40 = vmax.f32 %v1690_v45, %v1722_v33  ;;  %v1016_v34 = vmul.f32 %v6324_v63, %v6262_v25  ;;  %v899_v52 = vadd.f32 %v6222_v47, %v898_v7  ;;  %5572 = vrcp.f32 %v6333_v3 }
  0xe6   : > { %v1785_v50 = vmax.f32 %v1753_v39, %v6171_v44  ;;  %v1128_v4 = vsel %vm6316_vm3, %v6247_v62, %v1124_v43  ;;  %v1383_v62 = vrot.slane %v6328_v20, 6  ;;  %v553_v60 = vmul.f32 %v5871_v18, %v475_v36 }
  0xe7   : > { %v1786_v56 = vmax.f32 %v1754_v40, %v6254_v54  ;;  %v1133_v9 = vsel %vm1130_vm14, %v1132_v42, %v1128_v4  ;;  %v1017_v22 = vsub.f32 1.0, %v1016_v34  ;;  %v903_v37 = vsel %vm6356_vm11, %v6222_v47, %v899_v52 }
  0xe8   : > { %1818 = vst.msk [vmem:[#allocation2 + $0xa0] sm:$0xff] %vm280_vm13, %v1785_v50  ;;  %v6348_v17 = vmul.f32 %v1133_v9, %v6070_v32  ;;  %v5368_v32 = vmul.f32 -1.442695, %v6322_v61  ;;  %v1026_v2 = vand.u32 2147483648, %v6262_v25  ;;  %v6374_v14 = vadd.f32 1.0, %v5567_v16 }
  0xe9   : > { %1819 = vst.msk [vmem:[#allocation2 + $0xa8] sm:$0xff] %vm280_vm13, %v1786_v56  ;;  %v1018_v28 = vmul.f32 %v6324_v63, %v1017_v22  ;;  %vm1021_vm0 = vweird.f32 %v6324_v63  ;;  %v6419_v40 = vadd.f32 %v5876_v19, %v553_v60  ;;  %v1024_v4 = vand.u32 2147483647, %v6262_v25  ;;  %v512_v22 = vpop.f32.mrf.mxu2 }
  0xea   : > { %10760 = vst [vmem:[#allocation4_spill] sm:$0xff] %v6348_v17  ;;  %v1313_v10 = vrot.slane %v6348_v17, 7  ;;  %v1410_v26 = vrot.slane %v6348_v17, 6  ;;  %v1507_v1 = vrot.slane %v6348_v17, 1  ;;  %v1604_v27 = vrot.slane %v6348_v17, 2  ;;  %vm6427_vm3 = vmor %vm1020_vm15, %vm1021_vm0 }
  0xeb   : > { %v6410_v38 = vpop.eup %5572  ;;  %5574 = vrcp.f32 %v6374_v14  ;;  %v1019_v50 = vadd.f32 %v6324_v63, %v1018_v28  ;;  %v1027_v9 = vor.u32 1.1754944e-38, %v1026_v2  ;;  %vm1140_vm14 = vweird.f32 %v6333_v3 }
  0xec   : > { %v1330_v46 = vsel %vm10728_vm1, %v1297_v31, %v1313_v10  ;;  %v1346_v29 = vsel %vm10728_vm1, %v1313_v10, %v1297_v31  ;;  %v1427_v47 = vsel %vm1414_vm2, %v1394_v6, %v1410_v26  ;;  %v1443_v16 = vsel %vm1414_vm2, %v1410_v26, %v1394_v6 }
  0xed   : > { %v1374_v48 = vsel %vm1260_vm5, %v1346_v29, -inf  ;;  %v1471_v41 = vsel %vm1262_vm6, %v1443_v16, -inf  ;;  %v1524_v31 = vsel %vm1511_vm7, %v1491_v53, %v1507_v1  ;;  %v1540_v45 = vsel %vm1511_vm7, %v1507_v1, %v1491_v53  ;;  %v495_v29 = vpop.f32.mrf.mxu1 }
  0xee   : > { %v1569_v23 = vsel %vm1265_vm9, %v1540_v45, -inf  ;;  %v1621_v6 = vsel %vm10713_vm10, %v1588_v24, %v1604_v27  ;;  %v1637_v57 = vsel %vm10713_vm10, %v1604_v27, %v1588_v24  ;;  %v1697_v33 = vmax.f32 %v1471_v41, %v1374_v48 }
  0xef   : > { %v1666_v42 = vsel %vm1267_vm12, %v1637_v57, -inf  ;;  %v1698_v7 = vmax.f32 %v1427_v47, %v1330_v46  ;;  %v1729_v39 = vmax.f32 %v1524_v31, %v1621_v6  ;;  %v1136_v43 = vmul.f32 %v6410_v38, %v6333_v3  ;;  %v477_v47 = vpop.f32.mrf.mxu0  ;;  %v532_v31 = vpop.f32.mrf.mxu3 }
  0xf0   : > { %v1730_v53 = vmax.f32 %v1569_v23, %v1666_v42  ;;  %v908_v24 = vsel %vm6340_vm8, %v907_v15, %v903_v37  ;;  %v1144_v0 = vand.u32 2147483647, %v6333_v3  ;;  %v1146_v15 = vand.u32 2147483648, %v6333_v3 }
  0xf1   : > { %v1761_v34 = vmax.f32 %v1697_v33, %v1729_v39  ;;  %v1137_v52 = vsub.f32 1.0, %v1136_v43  ;;  %5576 = vpow2.f32 %v5368_v32  ;;  %vm1141_vm4 = vweird.f32 %v6410_v38  ;;  %v5575_v32 = vpop.eup %5574 }
  0xf2   : > { %v1762_v36 = vmax.f32 %v1698_v7, %v1730_v53  ;;  %v568_v10 = vmul.f32 %v5871_v18, %v512_v22  ;;  %v1480_v26 = vrot.slane %v6328_v20, 1  ;;  %v1577_v1 = vrot.slane %v6328_v20, 2  ;;  %vm6458_vm11 = vmor %vm1140_vm14, %vm1141_vm4 }
  0xf3   : > { %v1793_v59 = vmax.f32 %v1761_v34, %v6188_v8  ;;  %v1138_v25 = vmul.f32 %v6410_v38, %v1137_v52  ;;  %v1023_v27 = vsel %vm6427_vm3, %v6324_v63, %v1019_v50  ;;  %vm1025_vm8 = vcmp.eq.f32.partialorder %v1024_v4, 8.507059e+37 }
  0xf4   : > { %v1794_v60 = vmax.f32 %v1762_v36, %v6348_v17  ;;  %v6447_v37 = vmul.f32 %v908_v24, %v6036_v11  ;;  %v6451_v2 = vadd.f32 %v5876_v19, %v568_v10  ;;  %v5361_v46 = vmul.f32 -1.442695, %v6419_v40 }
  0xf5   : > { %1826 = vst.msk [vmem:[#allocation2 + $0xe0] sm:$0xff] %vm280_vm13, %v1793_v59  ;;  %v1139_v28 = vadd.f32 %v6410_v38, %v1138_v25  ;;  %vm6462_vm15 = vcmp.eq.f32.partialorder %v1144_v0, 8.507059e+37  ;;  %v1147_v16 = vor.u32 1.1754944e-38, %v1146_v15  ;;  %v791_v48 = vmul.f32 %v5575_v32, %v6374_v14 }
  0xf6   : > { %1827 = vst.msk [vmem:[#allocation2 + $0xe8] sm:$0xff] %vm280_vm13, %v1794_v60  ;;  %v799_v41 = vand.u32 2147483647, %v6374_v14  ;;  %v1028_v45 = vsel %vm1025_vm8, %v1027_v9, %v1023_v27  ;;  %v5376_v23 = vmul.f32 -1.442695, %v6451_v2  ;;  %v576_v6 = vmul.f32 %v5871_v18, %v532_v31 }
  0xf7   : > { %5578 = vpow2.f32 %v5361_v46  ;;  %v5577_v3 = vpop.eup %5576  ;;  %v792_v57 = vsub.f32 1.0, %v791_v48  ;;  %v801_v33 = vand.u32 2147483648, %v6374_v14  ;;  %v561_v42 = vmul.f32 %v5871_v18, %v495_v29 }
  0xf8   : > { %v554_v7 = vmul.f32 %v5871_v18, %v477_v47  ;;  %v1143_v39 = vsel %vm6458_vm11, %v6410_v38, %v1139_v28  ;;  %v6476_v53 = vadd.f32 1.0, %v5577_v3  ;;  %5580 = vpow2.f32 %v5376_v23 }
  0xf9   : > { %v6479_v43 = vadd.f32 %v5876_v19, %v576_v6  ;;  %v1290_v34 = vrot.slane %v6447_v37, 7  ;;  %v6483_v24 = vmul.f32 %v1028_v45, %v6195_v12  ;;  %v793_v50 = vmul.f32 %v5575_v32, %v792_v57 }
  0xfa   : > { %vm796_vm0 = vweird.f32 %v5575_v32  ;;  %v1387_v4 = vrot.slane %v6447_v37, 6  ;;  %v1484_v18 = vrot.slane %v6447_v37, 1  ;;  %v1581_v36 = vrot.slane %v6447_v37, 2 }
  0xfb   : > { %vm795_vm3 = vweird.f32 %v6374_v14  ;;  %v1148_v38 = vsel %vm6462_vm15, %v1147_v16, %v1143_v39  ;;  %v794_v56 = vadd.f32 %v5575_v32, %v793_v50  ;;  %5582 = vrcp.f32 %v6476_v53 }
  0xfc   : > { %v6493_v9 = vadd.f32 %v5876_v19, %v561_v42  ;;  %vm797_vm14 = vmor %vm795_vm3, %vm796_vm0  ;;  %vm800_vm4 = vcmp.eq.f32.partialorder %v799_v41, 8.507059e+37  ;;  %v802_v52 = vor.u32 1.1754944e-38, %v801_v33  ;;  %v5384_v59 = vmul.f32 -1.442695, %v6479_v43 }
  0xfd   : > { %v5579_v12 = vpop.eup %5578  ;;  %v6497_v0 = vadd.f32 %v5876_v19, %v554_v7  ;;  %v1294_v14 = vrot.slane %v6483_v24, 7  ;;  %v1391_v15 = vrot.slane %v6483_v24, 6  ;;  %v798_v22 = vsel %vm797_vm14, %v5575_v32, %v794_v56 }
  0xfe   : > { %v6501_v60 = vadd.f32 1.0, %v5579_v12  ;;  %v5581_v25 = vpop.eup %5580  ;;  %v1488_v10 = vrot.slane %v6483_v24, 1  ;;  %v1585_v27 = vrot.slane %v6483_v24, 2  ;;  %v6506_v28 = vmul.f32 %v1148_v38, %v6225_v51 }
  0xff   : > { %v803_v46 = vsel %vm800_vm4, %v802_v52, %v798_v22  ;;  %v6511_v19 = vadd.f32 1.0, %v5581_v25  ;;  %5584 = vpow2.f32 %v5384_v59  ;;  %v5369_v47 = vmul.f32 -1.442695, %v6493_v9 }
 0x100   : > { %10769 = vst [vmem:[#allocation5_spill] sm:$0xff] %v6506_v28  ;;  %v6509_v29 = vmul.f32 %v803_v46, %v6204_v13  ;;  %vm915_vm8 = vweird.f32 %v6476_v53  ;;  %v919_v32 = vand.u32 2147483647, %v6476_v53  ;;  %5586 = vrcp.f32 %v6501_v60 }
 0x101   : > { %v5362_v63 = vmul.f32 -1.442695, %v6497_v0  ;;  %v5583_v11 = vpop.eup %5582  ;;  %v921_v31 = vand.u32 2147483648, %v6476_v53  ;;  %5588 = vrcp.f32 %v6511_v19  ;;  %v1298_v22 = vrot.slane %v6506_v28, 7 }
 0x102   : > { %v1302_v51 = vrot.slane %v6509_v29, 7  ;;  %v1399_v16 = vrot.slane %v6509_v29, 6  ;;  %v1496_v13 = vrot.slane %v6509_v29, 1  ;;  %v1593_v48 = vrot.slane %v6509_v29, 2 }
 0x103   : > { %v911_v41 = vmul.f32 %v5583_v11, %v6476_v53  ;;  %vm916_vm11 = vweird.f32 %v5583_v11  ;;  %vm6568_vm15 = vcmp.eq.f32.partialorder %v919_v32, 8.507059e+37  ;;  %5590 = vpow2.f32 %v5369_v47 }
 0x104   : > { %v1319_v45 = vsel %vm10728_vm1, %v1286_v21, %v1302_v51  ;;  %v1335_v23 = vsel %vm10728_vm1, %v1302_v51, %v1286_v21  ;;  %v1416_v6 = vsel %vm1414_vm2, %v1383_v62, %v1399_v16  ;;  %v1432_v3 = vsel %vm1414_vm2, %v1399_v16, %v1383_v62  ;;  %vm6579_vm0 = vmor %vm915_vm8, %vm916_vm11 }
 0x105   : > { %v1352_v57 = vsel %vm1260_vm5, %v1335_v23, -inf  ;;  %v1449_v33 = vsel %vm1262_vm6, %v1432_v3, -inf  ;;  %v1513_v21 = vsel %vm1511_vm7, %v1480_v26, %v1496_v13  ;;  %v1529_v42 = vsel %vm1511_vm7, %v1496_v13, %v1480_v26  ;;  %v5585_v7 = vpop.eup %5584 }
 0x106   : > { %v1547_v62 = vsel %vm1265_vm9, %v1529_v42, -inf  ;;  %v1610_v39 = vsel %vm10713_vm10, %v1577_v1, %v1593_v48  ;;  %v1626_v50 = vsel %vm10713_vm10, %v1593_v48, %v1577_v1  ;;  %v1675_v38 = vmax.f32 %v1449_v33, %v1352_v57  ;;  %v6563_v56 = vpop.eup %5586 }
 0x107   : > { %v1644_v26 = vsel %vm1267_vm12, %v1626_v50, -inf  ;;  %v1676_v12 = vmax.f32 %v1416_v6, %v1319_v45  ;;  %v1707_v52 = vmax.f32 %v1513_v21, %v1610_v39  ;;  %v912_v59 = vsub.f32 1.0, %v911_v41  ;;  %v6572_v51 = vpop.eup %5588 }
 0x108   : > { %v1708_v25 = vmax.f32 %v1547_v62, %v1644_v26  ;;  %v922_v13 = vor.u32 1.1754944e-38, %v921_v31  ;;  %v6574_v48 = vadd.f32 1.0, %v5585_v7  ;;  %v1031_v32 = vmul.f32 %v6572_v51, %v6511_v19 }
 0x109   : > { %v1739_v1 = vmax.f32 %v1675_v38, %v1707_v52  ;;  %v913_v16 = vmul.f32 %v5583_v11, %v912_v59  ;;  %vm1035_vm3 = vweird.f32 %v6511_v19  ;;  %v806_v47 = vmul.f32 %v6563_v56, %v6501_v60  ;;  %v5591_v62 = vpop.eup %5590 }
 0x10a   : > { %v1740_v23 = vmax.f32 %v1676_v12, %v1708_v25  ;;  %v1039_v6 = vand.u32 2147483647, %v6511_v19  ;;  %5592 = vrcp.f32 %v6574_v48  ;;  %v1032_v3 = vsub.f32 1.0, %v1031_v32 }
 0x10b   : > { %v1771_v31 = vmax.f32 %v1739_v1, %v6328_v20  ;;  %v914_v45 = vadd.f32 %v5583_v11, %v913_v16  ;;  %vm1036_vm14 = vweird.f32 %v6572_v51  ;;  %v1041_v57 = vand.u32 2147483648, %v6511_v19 }
 0x10c   : > { %v1772_v53 = vmax.f32 %v1740_v23, %v6509_v29  ;;  %v1395_v33 = vrot.slane %v6506_v28, 6  ;;  %v1492_v21 = vrot.slane %v6506_v28, 1  ;;  %v1589_v42 = vrot.slane %v6506_v28, 2  ;;  %vm6609_vm4 = vmor %vm1035_vm3, %vm1036_vm14 }
 0x10d   : > { %1804 = vst.msk [vmem:[#allocation2 + $0x30] sm:$0xff] %vm280_vm13, %v1771_v31  ;;  %v918_v7 = vsel %vm6579_vm0, %v5583_v11, %v914_v45  ;;  %v1033_v50 = vmul.f32 %v6572_v51, %v1032_v3  ;;  %v807_v38 = vsub.f32 1.0, %v806_v47  ;;  %5594 = vpow2.f32 %v5362_v63 }
 0x10e   : > { %1805 = vst.msk [vmem:[#allocation2 + $0x38] sm:$0xff] %vm280_vm13, %v1772_v53  ;;  %v923_v39 = vsel %vm6568_vm15, %v922_v13, %v918_v7  ;;  %vm6613_vm8 = vcmp.eq.f32.partialorder %v1039_v6, 8.507059e+37  ;;  %v814_v52 = vand.u32 2147483647, %v6501_v60  ;;  %v816_v59 = vand.u32 2147483648, %v6501_v60 }
 0x10f   : > { %v6605_v26 = vmul.f32 %v923_v39, %v6322_v61  ;;  %v1034_v25 = vadd.f32 %v6572_v51, %v1033_v50  ;;  %v1042_v63 = vor.u32 1.1754944e-38, %v1041_v57  ;;  %v1159_v61 = vand.u32 2147483647, %v6574_v48 }
 0x110   : > { %v1161_v46 = vand.u32 2147483648, %v6574_v48  ;;  %v6622_v19 = vpop.eup %5592  ;;  %v808_v47 = vmul.f32 %v6563_v56, %v807_v38  ;;  %vm811_vm11 = vweird.f32 %v6563_v56  ;;  %v6635_v31 = vadd.f32 1.0, %v5591_v62 }
 0x111   : > { %v1306_v1 = vrot.slane %v6605_v26, 7  ;;  %v1403_v16 = vrot.slane %v6605_v26, 6  ;;  %v1500_v13 = vrot.slane %v6605_v26, 1  ;;  %v1597_v23 = vrot.slane %v6605_v26, 2 }
 0x112   : > { %v1038_v41 = vsel %vm6609_vm4, %v6572_v51, %v1034_v25  ;;  %v1151_v32 = vmul.f32 %v6622_v19, %v6574_v48  ;;  %vm1155_vm15 = vweird.f32 %v6574_v48  ;;  %vm810_vm0 = vweird.f32 %v6501_v60  ;;  %v6793_v60 = vld [vmem:[%s10707_s3] ss:$0 sm:$0xff] }
 0x113   : > { %v1323_v45 = vsel %vm10728_vm1, %v1290_v34, %v1306_v1  ;;  %v1339_v6 = vsel %vm10728_vm1, %v1306_v1, %v1290_v34  ;;  %v1420_v51 = vsel %vm1414_vm2, %v1387_v4, %v1403_v16  ;;  %v1436_v53 = vsel %vm1414_vm2, %v1403_v16, %v1387_v4  ;;  %v6654_v3 = vpop.eup %5594  ;;  %vm6744_vm4 = vmor %vm810_vm0, %vm811_vm11 }
 0x114   : > { %v1360_v57 = vsel %vm1260_vm5, %v1339_v6, -inf  ;;  %v1457_v34 = vsel %vm1262_vm6, %v1436_v53, -inf  ;;  %v1517_v7 = vsel %vm1511_vm7, %v1484_v18, %v1500_v13  ;;  %v1533_v4 = vsel %vm1511_vm7, %v1500_v13, %v1484_v18 }
 0x115   : > { %v1555_v62 = vsel %vm1265_vm9, %v1533_v4, -inf  ;;  %v1614_v39 = vsel %vm10713_vm10, %v1581_v36, %v1597_v23  ;;  %v1630_v50 = vsel %vm10713_vm10, %v1597_v23, %v1581_v36  ;;  %v1683_v38 = vmax.f32 %v1457_v34, %v1360_v57 }
 0x116   : > { %v1652_v12 = vsel %vm1267_vm12, %v1630_v50, -inf  ;;  %v1684_v18 = vmax.f32 %v1420_v51, %v1323_v45  ;;  %v1715_v25 = vmax.f32 %v1517_v7, %v1614_v39  ;;  %v1043_v1 = vsel %vm6613_vm8, %v1042_v63, %v1038_v41 }
 0x117   : > { %v1716_v16 = vmax.f32 %v1555_v62, %v1652_v12  ;;  %v6684_v13 = vmul.f32 %v1043_v1, %v6451_v2  ;;  %v1152_v6 = vsub.f32 1.0, %v1151_v32  ;;  %vm6686_vm3 = vcmp.eq.f32.partialorder %v1159_v61, 8.507059e+37 }
 0x118   : > { %v817_v4 = vor.u32 1.1754944e-38, %v816_v59  ;;  %v1747_v36 = vmax.f32 %v1683_v38, %v1715_v25  ;;  %vm1156_vm14 = vweird.f32 %v6622_v19  ;;  %v1162_v23 = vor.u32 1.1754944e-38, %v1161_v46 }
 0x119   : > { %5596 = vrcp.f32 %v6635_v31  ;;  %v1748_v45 = vmax.f32 %v1684_v18, %v1716_v16  ;;  %v1310_v11 = vrot.slane %v6684_v13, 7  ;;  %v1407_v63 = vrot.slane %v6684_v13, 6  ;;  %vm6756_vm8 = vmor %vm1155_vm15, %vm1156_vm14 }
 0x11a   : > { %v1504_v2 = vrot.slane %v6684_v13, 1  ;;  %v1779_v41 = vmax.f32 %v1747_v36, %v6447_v37  ;;  %v1601_v61 = vrot.slane %v6684_v13, 2  ;;  %v1153_v32 = vmul.f32 %v6622_v19, %v1152_v6  ;;  %v515_v6 = vpop.f32.mrf.mxu2  ;;  %v497_v36 = vpop.f32.mrf.mxu1 }
 0x11b   : > { %v809_v59 = vadd.f32 %v6563_v56, %v808_v47  ;;  %v1780_v51 = vmax.f32 %v1748_v45, %v6605_v26  ;;  %v1327_v46 = vsel %vm10728_vm1, %v1294_v14, %v1310_v11  ;;  %v1343_v57 = vsel %vm10728_vm1, %v1310_v11, %v1294_v14 }
 0x11c   : > { %v1424_v34 = vsel %vm1414_vm2, %v1391_v15, %v1407_v63  ;;  %1812 = vst.msk [vmem:[#allocation2 + $0x70] sm:$0xff] %vm280_vm13, %v1779_v41  ;;  %v1368_v47 = vsel %vm1260_vm5, %v1343_v57, -inf  ;;  %v1440_v7 = vsel %vm1414_vm2, %v1407_v63, %v1391_v15  ;;  %v1521_v14 = vsel %vm1511_vm7, %v1488_v10, %v1504_v2  ;;  %v535_v41 = vpop.f32.mrf.mxu3 }
 0x11d   : > { %v1537_v62 = vsel %vm1511_vm7, %v1504_v2, %v1488_v10  ;;  %1813 = vst.msk [vmem:[#allocation2 + $0x78] sm:$0xff] %vm280_vm13, %v1780_v51  ;;  %v1465_v39 = vsel %vm1262_vm6, %v1440_v7, -inf  ;;  %v1618_v15 = vsel %vm10713_vm10, %v1585_v27, %v1601_v61  ;;  %v1634_v38 = vsel %vm10713_vm10, %v1601_v61, %v1585_v27  ;;  %v6767_v2 = vld [vmem:[%s10706_s2] ss:$0 sm:$0xff] }
 0x11e   : > { %v1563_v50 = vsel %vm1265_vm9, %v1537_v62, -inf  ;;  %v1660_v18 = vsel %vm1267_vm12, %v1634_v38, -inf  ;;  %v1691_v25 = vmax.f32 %v1465_v39, %v1368_v47  ;;  %v1692_v1 = vmax.f32 %v1424_v34, %v1327_v46 }
 0x11f   : > { %v6748_v12 = vpop.eup %5596  ;;  %v1723_v16 = vmax.f32 %v1521_v14, %v1618_v15  ;;  %v1724_v45 = vmax.f32 %v1563_v50, %v1660_v18  ;;  %v1154_v11 = vadd.f32 %v6622_v19, %v1153_v32  ;;  %v813_v63 = vsel %vm6744_vm4, %v6563_v56, %v809_v59 }
 0x120   : > { %v569_v48 = vmul.f32 %v6767_v2, %v515_v6  ;;  %v926_v51 = vmul.f32 %v6748_v12, %v6635_v31  ;;  %v577_v46 = vmul.f32 %v6767_v2, %v535_v41  ;;  %v6774_v32 = vadd.f32 1.0, %v6654_v3 }
 0x121   : > { %v1755_v61 = vmax.f32 %v1691_v25, %v1723_v16  ;;  %v1756_v57 = vmax.f32 %v1692_v1, %v1724_v45  ;;  %v1158_v56 = vsel %vm6756_vm8, %v6622_v19, %v1154_v11  ;;  %vm815_vm11 = vcmp.eq.f32.partialorder %v814_v52, 8.507059e+37 }
 0x122   : > { %v562_v59 = vmul.f32 %v6767_v2, %v497_v36  ;;  %v1163_v47 = vsel %vm6686_vm3, %v1162_v23, %v1158_v56  ;;  %v818_v7 = vsel %vm815_vm11, %v817_v4, %v813_v63  ;;  %v927_v14 = vsub.f32 1.0, %v926_v51 }
 0x123   : > { %v1787_v34 = vmax.f32 %v1755_v61, %v6483_v24  ;;  %v1788_v3 = vmax.f32 %v1756_v57, %v6684_v13  ;;  %v6787_v62 = vmul.f32 %v1163_v47, %v6479_v43  ;;  %vm930_vm15 = vweird.f32 %v6635_v31 }
 0x124   : > { %v6796_v52 = vadd.f32 %v6793_v60, %v569_v48  ;;  %vm931_vm0 = vweird.f32 %v6748_v12  ;;  %v934_v19 = vand.u32 2147483647, %v6635_v31  ;;  %v6802_v53 = vadd.f32 %v6793_v60, %v577_v46 }
 0x125   : > { %10784 = vst [vmem:[#allocation6_spill] sm:$0xff] %v6787_v62  ;;  %5598 = vrcp.f32 %v6774_v32  ;;  %v1314_v43 = vrot.slane %v6787_v62, 7  ;;  %v1411_v4 = vrot.slane %v6787_v62, 6  ;;  %v1508_v23 = vrot.slane %v6787_v62, 1  ;;  %vm6861_vm3 = vmor %vm930_vm15, %vm931_vm0 }
 0x126   : > { %1820 = vst.msk [vmem:[#allocation2 + $0xb0] sm:$0xff] %vm280_vm13, %v1787_v34  ;;  %v1605_v39 = vrot.slane %v6787_v62, 2  ;;  %v928_v50 = vmul.f32 %v6748_v12, %v927_v14  ;;  %v936_v15 = vand.u32 2147483648, %v6635_v31  ;;  %v5377_v38 = vmul.f32 -1.442695, %v6796_v52 }
 0x127   : > { %1821 = vst.msk [vmem:[#allocation2 + $0xb8] sm:$0xff] %vm280_vm13, %v1788_v3  ;;  %v5385_v10 = vmul.f32 -1.442695, %v6802_v53  ;;  %v1331_v18 = vsel %vm10728_vm1, %v1298_v22, %v1314_v43  ;;  %v1347_v25 = vsel %vm10728_vm1, %v1314_v43, %v1298_v22  ;;  %v1428_v1 = vsel %vm1414_vm2, %v1395_v33, %v1411_v4 }
 0x128   : > { %v1444_v16 = vsel %vm1414_vm2, %v1411_v4, %v1395_v33  ;;  %v1376_v27 = vsel %vm1260_vm5, %v1347_v25, -inf  ;;  %v1525_v22 = vsel %vm1511_vm7, %v1492_v21, %v1508_v23  ;;  %v1541_v36 = vsel %vm1511_vm7, %v1508_v23, %v1492_v21 }
 0x129   : > { %v1473_v6 = vsel %vm1262_vm6, %v1444_v16, -inf  ;;  %v1571_v45 = vsel %vm1265_vm9, %v1541_v36, -inf  ;;  %v1622_v33 = vsel %vm10713_vm10, %v1589_v42, %v1605_v39  ;;  %v1638_v11 = vsel %vm10713_vm10, %v1605_v39, %v1589_v42 }
 0x12a   : > { %v1699_v63 = vmax.f32 %v1473_v6, %v1376_v27  ;;  %v1668_v41 = vsel %vm1267_vm12, %v1638_v11, -inf  ;;  %v1700_v21 = vmax.f32 %v1428_v1, %v1331_v18  ;;  %v1731_v61 = vmax.f32 %v1525_v22, %v1622_v33 }
 0x12b   : > { %v6852_v48 = vpop.eup %5598  ;;  %v929_v51 = vadd.f32 %v6748_v12, %v928_v50  ;;  %v1732_v46 = vmax.f32 %v1571_v45, %v1668_v41  ;;  %5600 = vpow2.f32 %v5377_v38  ;;  %v6868_v34 = vadd.f32 %v6793_v60, %v562_v59  ;;  %v1284_v59 = vld [vmem:[%s10708_s4] sm:$0x1]  ;;  %v537_v38 = vpop.f32.mrf.mxu3 }
 0x12c   : > { %v821_v42 = vmul.f32 %v6852_v48, %v6774_v32  ;;  %v1763_v56 = vmax.f32 %v1699_v63, %v1731_v61  ;;  %5602 = vpow2.f32 %v5385_v10  ;;  %v6871_v14 = vmul.f32 %v818_v7, %v6419_v40  ;;  %v500_v61 = vpop.f32.mrf.mxu1 }
 0x12d   : > { %v1764_v47 = vmax.f32 %v1700_v21, %v1732_v46  ;;  %vm6873_vm14 = vcmp.eq.f32.partialorder %v934_v19, 8.507059e+37  ;;  %v933_v4 = vsel %vm6861_vm3, %v6748_v12, %v929_v51  ;;  %v937_v23 = vor.u32 1.1754944e-38, %v936_v15  ;;  %v517_v15 = vpop.f32.mrf.mxu2  ;;  %v480_v21 = vpop.f32.mrf.mxu0 }
 0x12e   : > { %v822_v31 = vsub.f32 1.0, %v821_v42  ;;  %v1795_v43 = vmax.f32 %v1763_v56, %v6506_v28  ;;  %vm825_vm4 = vweird.f32 %v6774_v32  ;;  %vm826_vm8 = vweird.f32 %v6852_v48 }
 0x12f   : > { %v1796_v40 = vmax.f32 %v1764_v47, %v6787_v62  ;;  %v829_v19 = vand.u32 2147483647, %v6774_v32  ;;  %v831_v39 = vand.u32 2147483648, %v6774_v32  ;;  %v5370_v12 = vmul.f32 -1.442695, %v6868_v34  ;;  %vm6908_vm15 = vmor %vm825_vm4, %vm826_vm8 }
 0x130   : > { %v823_v7 = vmul.f32 %v6852_v48, %v822_v31  ;;  %1828 = vst.msk [vmem:[#allocation2 + $0xf0] sm:$0xff] %vm280_vm13, %v1795_v43  ;;  %vm10712_vm11 = vcmask 1040384   ;;  %v1268_v50 = vpack.c.bf16 %v6063_v30, %v5985_v49  ;;  %v570_v1 = vmul.f32 %v6767_v2, %v517_v15 }
 0x131   : > { %v5601_v10 = vpop.eup %5600  ;;  %1829 = vst.msk [vmem:[#allocation2 + $0xf8] sm:$0xff] %vm280_vm13, %v1796_v40  ;;  %v2333_v25 = vsel %vm10712_vm11, %v1284_v59, 0  ;;  %v578_v16 = vmul.f32 %v6767_v2, %v537_v38  ;;  %v1287_v6 = vrot.slane %v6871_v14, 7  ;;  %v938_v22 = vsel %vm6873_vm14, %v937_v23, %v933_v4 }
 0x132   : > { %v824_v18 = vadd.f32 %v6852_v48, %v823_v7  ;;  %v5603_v27 = vpop.eup %5602  ;;  %v6902_v49 = vadd.f32 1.0, %v5601_v10  ;;  %5604 = vpow2.f32 %v5370_v12  ;;  %2342 = vmatpush.bf16.msrb.mxu2 %v2333_v25  ;;  %v6918_v33 = vadd.f32 %v6793_v60, %v570_v1 }
 0x133   : > { %v6912_v36 = vadd.f32 1.0, %v5603_v27  ;;  %v6921_v11 = vadd.f32 %v6793_v60, %v578_v16  ;;  %v1384_v32 = vrot.slane %v6871_v14, 6  ;;  %v1481_v63 = vrot.slane %v6871_v14, 1 }
 0x134   : > { %v828_v45 = vsel %vm6908_vm15, %v6852_v48, %v824_v18  ;;  %5606 = vrcp.f32 %v6902_v49  ;;  %v832_v41 = vor.u32 1.1754944e-38, %v831_v39  ;;  %v1578_v51 = vrot.slane %v6871_v14, 2 }
 0x135   : > { %v1054_v46 = vand.u32 2147483647, %v6902_v49  ;;  %5608 = vrcp.f32 %v6912_v36  ;;  %vm830_vm0 = vcmp.eq.f32.partialorder %v829_v19, 8.507059e+37  ;;  %5406 = vmatmul.msk.bf16.vlgmr.msrb.gmra.mxu2 %vm280_vm13, %v1268_v50  ;;  %v6931_v48 = vmul.f32 %v938_v22, %v6493_v9 }
 0x136   : > { %v1056_v57 = vand.u32 2147483648, %v6902_v49  ;;  %v833_v42 = vsel %vm830_vm0, %v832_v41, %v828_v45  ;;  %v5378_v56 = vmul.f32 -1.442695, %v6918_v33  ;;  %v5386_v3 = vmul.f32 -1.442695, %v6921_v11 }
 0x137   : > { %v6936_v47 = vmul.f32 %v833_v42, %v6497_v0  ;;  %v555_v31 = vmul.f32 %v6767_v2, %v480_v21  ;;  %v563_v43 = vmul.f32 %v6767_v2, %v500_v61  ;;  %vm1050_vm3 = vweird.f32 %v6902_v49 }
 0x138   : > { %v5605_v4 = vpop.eup %5604  ;;  %vm1170_vm14 = vweird.f32 %v6912_v36  ;;  %v1174_v9 = vand.u32 2147483647, %v6912_v36  ;;  %v1176_v23 = vand.u32 2147483648, %v6912_v36  ;;  %vm6945_vm4 = vcmp.eq.f32.partialorder %v1054_v46, 8.507059e+37 }
 0x139   : > { %v1303_v0 = vrot.slane %v6936_v47, 7  ;;  %v1400_v40 = vrot.slane %v6936_v47, 6  ;;  %v1497_v7 = vrot.slane %v6936_v47, 1  ;;  %5610 = vpow2.f32 %v5378_v56 }
 0x13a   : > { %v5607_v19 = vpop.eup %5606  ;;  %v1057_v39 = vor.u32 1.1754944e-38, %v1056_v57  ;;  %v1594_v12 = vrot.slane %v6936_v47, 2  ;;  %v6953_v50 = vadd.f32 1.0, %v5605_v4  ;;  %5612 = vpow2.f32 %v5386_v3 }
 0x13b   : > { %v5609_v15 = vpop.eup %5608  ;;  %v1046_v38 = vmul.f32 %v5607_v19, %v6902_v49  ;;  %vm1051_vm8 = vweird.f32 %v5607_v19  ;;  %v1320_v10 = vsel %vm10728_vm1, %v1287_v6, %v1303_v0  ;;  %v1336_v18 = vsel %vm10728_vm1, %v1303_v0, %v1287_v6 }
 0x13c   : > { %v1166_v25 = vmul.f32 %v5609_v15, %v6912_v36  ;;  %vm1171_vm15 = vweird.f32 %v5609_v15  ;;  %v1354_v1 = vsel %vm1260_vm5, %v1336_v18, -inf  ;;  %v1417_v16 = vsel %vm1414_vm2, %v1384_v32, %v1400_v40  ;;  %vm6982_vm0 = vmor %vm1050_vm3, %vm1051_vm8 }
 0x13d   : > { %v1047_v27 = vsub.f32 1.0, %v1046_v38  ;;  %v1433_v22 = vsel %vm1414_vm2, %v1400_v40, %v1384_v32  ;;  %v1514_v30 = vsel %vm1511_vm7, %v1481_v63, %v1497_v7  ;;  %v1530_v45 = vsel %vm1511_vm7, %v1497_v7, %v1481_v63  ;;  %vm6992_vm11 = vmor %vm1170_vm14, %vm1171_vm15 }
 0x13e   : > { %v1167_v6 = vsub.f32 1.0, %v1166_v25  ;;  %v1451_v41 = vsel %vm1262_vm6, %v1433_v22, -inf  ;;  %v1549_v21 = vsel %vm1265_vm9, %v1530_v45, -inf  ;;  %v1611_v61 = vsel %vm10713_vm10, %v1578_v51, %v1594_v12 }
 0x13f   : > { %v5611_v46 = vpop.eup %5610  ;;  %v1048_v57 = vmul.f32 %v5607_v19, %v1047_v27  ;;  %v1627_v32 = vsel %vm10713_vm10, %v1594_v12, %v1578_v51  ;;  %v1677_v42 = vmax.f32 %v1451_v41, %v1354_v1  ;;  %v1678_v56 = vmax.f32 %v1417_v16, %v1320_v10 }
 0x140   : > { %v5613_v3 = vpop.eup %5612  ;;  %v1168_v4 = vmul.f32 %v5609_v15, %v1167_v6  ;;  %v1646_v0 = vsel %vm1267_vm12, %v1627_v32, -inf  ;;  %v1709_v40 = vmax.f32 %v1514_v30, %v1611_v61  ;;  %5614 = vrcp.f32 %v6953_v50 }
 0x141   : > { %v1049_v7 = vadd.f32 %v5607_v19, %v1048_v57  ;;  %vm6996_vm10 = vcmp.eq.f32.partialorder %v1174_v9, 8.507059e+37  ;;  %v1177_v12 = vor.u32 1.1754944e-38, %v1176_v23  ;;  %v1710_v38 = vmax.f32 %v1549_v21, %v1646_v0  ;;  %v520_v0 = vpop.f32.mrf.mxu2 }
 0x142   : > { %v1169_v10 = vadd.f32 %v5609_v15, %v1168_v4  ;;  %v1741_v18 = vmax.f32 %v1677_v42, %v1709_v40  ;;  %v7000_v25 = vadd.f32 1.0, %v5611_v46  ;;  %v7003_v1 = vadd.f32 %v6793_v60, %v555_v31  ;;  %v540_v40 = vpop.f32.mrf.mxu3 }
 0x143   : > { %v1053_v36 = vsel %vm6982_vm0, %v5607_v19, %v1049_v7  ;;  %v1742_v16 = vmax.f32 %v1678_v56, %v1710_v38  ;;  %v949_v27 = vand.u32 2147483647, %v6953_v50  ;;  %v7009_v9 = vadd.f32 %v6793_v60, %v563_v43 }
 0x144   : > { %v1058_v23 = vsel %vm6945_vm4, %v1057_v39, %v1053_v36  ;;  %v1173_v22 = vsel %vm6992_vm11, %v5609_v15, %v1169_v10  ;;  %v1773_v30 = vmax.f32 %v1741_v18, %v6871_v14  ;;  %v951_v31 = vand.u32 2147483648, %v6953_v50 }
 0x145   : > { %v7018_v45 = vmul.f32 %v1058_v23, %v6796_v52  ;;  %v1178_v19 = vsel %vm6996_vm10, %v1177_v12, %v1173_v22  ;;  %v1774_v6 = vmax.f32 %v1742_v16, %v6936_v47  ;;  %5616 = vrcp.f32 %v7000_v25  ;;  %v502_v16 = vpop.f32.mrf.mxu1 }
 0x146   : > { %v5615_v43 = vpop.eup %5614  ;;  %v1291_v59 = vrot.slane %v6931_v48, 7  ;;  %v1388_v39 = vrot.slane %v6931_v48, 6  ;;  %v1485_v15 = vrot.slane %v6931_v48, 1  ;;  %1806 = vst.msk [vmem:[#allocation2 + $0x40] sm:$0xff] %vm280_vm13, %v1773_v30  ;;  %v7028_v41 = vadd.f32 1.0, %v5613_v3  ;;  %v482_v30 = vpop.f32.mrf.mxu0 }
 0x147   : > { %10799 = vst [vmem:[#allocation7_spill] sm:$0xff] %v7018_v45  ;;  %v1582_v52 = vrot.slane %v6931_v48, 2  ;;  %vm945_vm10 = vweird.f32 %v6953_v50  ;;  %v5363_v21 = vmul.f32 -1.442695, %v7003_v1  ;;  %v5371_v61 = vmul.f32 -1.442695, %v7009_v9 }
 0x148   : > { %1807 = vst.msk [vmem:[#allocation2 + $0x48] sm:$0xff] %vm280_vm13, %v1774_v6  ;;  %v7036_v46 = vmul.f32 %v1178_v19, %v6802_v53  ;;  %vm7038_vm11 = vcmp.eq.f32.partialorder %v949_v27, 8.507059e+37  ;;  %v952_v32 = vor.u32 1.1754944e-38, %v951_v31  ;;  %vm1065_vm3 = vweird.f32 %v7000_v25 }
 0x149   : > { %v1295_v42 = vrot.slane %v7018_v45, 7  ;;  %v941_v56 = vmul.f32 %v5615_v43, %v6953_v50  ;;  %v1069_v3 = vand.u32 2147483647, %v7000_v25  ;;  %v1071_v63 = vand.u32 2147483648, %v7000_v25 }
 0x14a   : > { %10800 = vst [vmem:[#allocation8_spill] sm:$0xff] %v7036_v46  ;;  %v1392_v4 = vrot.slane %v7018_v45, 6  ;;  %v1489_v53 = vrot.slane %v7018_v45, 1  ;;  %vm946_vm14 = vweird.f32 %v5615_v43  ;;  %5618 = vrcp.f32 %v7028_v41 }
 0x14b   : > { %v5617_v7 = vpop.eup %5616  ;;  %v942_v51 = vsub.f32 1.0, %v941_v56  ;;  %5620 = vpow2.f32 %v5363_v21  ;;  %v571_v49 = vmul.f32 %v6767_v2, %v520_v0  ;;  %v579_v12 = vmul.f32 %v6767_v2, %v540_v40  ;;  %vm7065_vm4 = vmor %vm945_vm10, %vm946_vm14 }
 0x14c   : > { %v1586_v38 = vrot.slane %v7018_v45, 2  ;;  %v1061_v36 = vmul.f32 %v5617_v7, %v7000_v25  ;;  %v1191_v23 = vand.u32 2147483648, %v7028_v41  ;;  %vm1066_vm8 = vweird.f32 %v5617_v7 }
 0x14d   : > { %v943_v27 = vmul.f32 %v5615_v43, %v942_v51  ;;  %v7059_v22 = vadd.f32 %v6793_v60, %v571_v49  ;;  %v7070_v21 = vadd.f32 %v6793_v60, %v579_v12  ;;  %vm7072_vm15 = vcmp.eq.f32.partialorder %v1069_v3, 8.507059e+37  ;;  %vm7086_vm10 = vmor %vm1065_vm3, %vm1066_vm8 }
 0x14e   : > { %v1062_v6 = vsub.f32 1.0, %v1061_v36  ;;  %v1072_v40 = vor.u32 1.1754944e-38, %v1071_v63  ;;  %vm1185_vm0 = vweird.f32 %v7028_v41  ;;  %v1189_v31 = vand.u32 2147483647, %v7028_v41 }
 0x14f   : > { %v944_v56 = vadd.f32 %v5615_v43, %v943_v27  ;;  %v5379_v51 = vmul.f32 -1.442695, %v7059_v22  ;;  %v556_v36 = vmul.f32 %v6767_v2, %v482_v30  ;;  %5622 = vpow2.f32 %v5371_v61 }
 0x150   : > { %v7077_v49 = vpop.eup %5618  ;;  %v1063_v50 = vmul.f32 %v5617_v7, %v1062_v6  ;;  %v7092_v6 = vor.u32 1.1754944e-38, %v1191_v23  ;;  %vm10811_vm14 = vcmp.lt.s32.totalorder %v5916_v5, 6 }
 0x151   : > { %v5621_v12 = vpop.eup %5620  ;;  %v948_v3 = vsel %vm7065_vm4, %v5615_v43, %v944_v56  ;;  %v1181_v27 = vmul.f32 %v7077_v49, %v7028_v41  ;;  %v5387_v43 = vmul.f32 -1.442695, %v7070_v21  ;;  %5624 = vpow2.f32 %v5379_v51  ;;  %vm10812_vm4 = vmmov %vm10811_vm14 }
 0x152   : > { %v953_v30 = vsel %vm7038_vm11, %v952_v32, %v948_v3  ;;  %v1064_v18 = vadd.f32 %v5617_v7, %v1063_v50  ;;  %v7096_v10 = vadd.f32 1.0, %v5621_v12  ;;  %v7103_v56 = vmul.f32 %v6767_v2, %v502_v16 }
 0x153   : > { %v7100_v25 = vmul.f32 %v953_v30, %v6868_v34  ;;  %v1182_v19 = vsub.f32 1.0, %v1181_v27  ;;  %vm1186_vm3 = vweird.f32 %v7077_v49  ;;  %v7110_v61 = vadd.f32 %v6793_v60, %v556_v36 }
 0x154   : > { %v1068_v23 = vsel %vm7086_vm10, %v5617_v7, %v1064_v18  ;;  %5626 = vrcp.f32 %v7096_v10  ;;  %v846_v18 = vand.u32 2147483648, %v7096_v10  ;;  %vm7136_vm11 = vcmp.eq.f32.partialorder %v1189_v31, 8.507059e+37  ;;  %vm7173_vm8 = vmor %vm1185_vm0, %vm1186_vm3 }
 0x155   : > { %v1307_v57 = vrot.slane %v7100_v25, 7  ;;  %v1404_v34 = vrot.slane %v7100_v25, 6  ;;  %v1501_v32 = vrot.slane %v7100_v25, 1  ;;  %v1598_v51 = vrot.slane %v7100_v25, 2  ;;  %v5623_v50 = vpop.eup %5622  ;;  %vm10816_vm10 = vmmov %vm10812_vm4 }
 0x156   : > { %v1073_v16 = vsel %vm7072_vm15, %v1072_v40, %v1068_v23  ;;  %v1183_v7 = vmul.f32 %v7077_v49, %v1182_v19  ;;  %5628 = vpow2.f32 %v5387_v43  ;;  %vm840_vm0 = vweird.f32 %v7096_v10  ;;  %vm10817_vm3 = vmmov %vm10812_vm4 }
 0x157   : > { %v1324_v36 = vsel %vm10728_vm1, %v1291_v59, %v1307_v57  ;;  %v1340_v12 = vsel %vm10728_vm1, %v1307_v57, %v1291_v59  ;;  %v1421_v0 = vsel %vm1414_vm2, %v1388_v39, %v1404_v34  ;;  %v1437_v40 = vsel %vm1414_vm2, %v1404_v34, %v1388_v39  ;;  %v5625_v31 = vpop.eup %5624 }
 0x158   : > { %v1362_v63 = vsel %vm1260_vm5, %v1340_v12, -inf  ;;  %v1459_v59 = vsel %vm1262_vm6, %v1437_v40, -inf  ;;  %v1518_v27 = vsel %vm1511_vm7, %v1485_v15, %v1501_v32  ;;  %v1534_v39 = vsel %vm1511_vm7, %v1501_v32, %v1485_v15 }
 0x159   : > { %v1557_v30 = vsel %vm1265_vm9, %v1534_v39, -inf  ;;  %v1615_v43 = vsel %vm10811_vm14, %v1582_v52, %v1598_v51  ;;  %v1631_v19 = vsel %vm10812_vm4, %v1598_v51, %v1582_v52  ;;  %v1685_v23 = vmax.f32 %v1459_v59, %v1362_v63  ;;  %vm10828_vm14 = vmmov %vm10817_vm3 }
 0x15a   : > { %v7162_v57 = vpop.eup %5626  ;;  %v1654_v15 = vsel %vm1267_vm12, %v1631_v19, -inf  ;;  %v1686_v34 = vmax.f32 %v1421_v0, %v1324_v36  ;;  %v1717_v32 = vmax.f32 %v1518_v27, %v1615_v43  ;;  %v7167_v12 = vmul.f32 %v1073_v16, %v6918_v33  ;;  %vm10830_vm4 = vmmov %vm10817_vm3 }
 0x15b   : > { %v1718_v52 = vmax.f32 %v1557_v30, %v1654_v15  ;;  %v1184_v51 = vadd.f32 %v7077_v49, %v1183_v7  ;;  %v836_v63 = vmul.f32 %v7162_v57, %v7096_v10  ;;  %vm841_vm15 = vweird.f32 %v7162_v57 }
 0x15c   : > { %10813 = vst [vmem:[#allocation9_spill] sm:$0xff] %v7167_v12  ;;  %v7181_v36 = vpop.eup %5628  ;;  %v1749_v33 = vmax.f32 %v1685_v23, %v1717_v32  ;;  %v1311_v16 = vrot.slane %v7167_v12, 7  ;;  %v1408_v0 = vrot.slane %v7167_v12, 6  ;;  %v1505_v41 = vrot.slane %v7167_v12, 1 }
 0x15d   : > { %v1750_v59 = vmax.f32 %v1686_v34, %v1718_v52  ;;  %v1602_v27 = vrot.slane %v7167_v12, 2  ;;  %v1188_v7 = vsel %vm7173_vm8, %v7077_v49, %v1184_v51  ;;  %v837_v39 = vsub.f32 1.0, %v836_v63 }
 0x15e   : > { %v1781_v30 = vmax.f32 %v1749_v33, %v6931_v48  ;;  %v1328_v43 = vsel %vm10728_vm1, %v1295_v42, %v1311_v16  ;;  %v1344_v19 = vsel %vm10728_vm1, %v1311_v16, %v1295_v42  ;;  %v1425_v23 = vsel %vm1414_vm2, %v1392_v4, %v1408_v0 }
 0x15f   : > { %v1782_v49 = vmax.f32 %v1750_v59, %v7100_v25  ;;  %v1370_v15 = vsel %vm1260_vm5, %v1344_v19, -inf  ;;  %v1441_v34 = vsel %vm1414_vm2, %v1408_v0, %v1392_v4  ;;  %v1522_v42 = vsel %vm1511_vm7, %v1489_v53, %v1505_v41 }
 0x160   : > { %1814 = vst.msk [vmem:[#allocation2 + $0x80] sm:$0xff] %vm280_vm13, %v1781_v30  ;;  %v1467_v32 = vsel %vm1262_vm6, %v1441_v34, -inf  ;;  %v1538_v40 = vsel %vm1511_vm7, %v1505_v41, %v1489_v53  ;;  %v1619_v4 = vsel %vm10816_vm10, %v1586_v38, %v1602_v27  ;;  %v1635_v52 = vsel %vm10817_vm3, %v1602_v27, %v1586_v38 }
 0x161   : > { %1815 = vst.msk [vmem:[#allocation2 + $0x88] sm:$0xff] %vm280_vm13, %v1782_v49  ;;  %v1565_v51 = vsel %vm1265_vm9, %v1538_v40, -inf  ;;  %v1662_v63 = vsel %vm1267_vm12, %v1635_v52, -inf  ;;  %v1693_v33 = vmax.f32 %v1467_v32, %v1370_v15  ;;  %v1694_v53 = vmax.f32 %v1425_v23, %v1328_v43 }
 0x162   : > { %v1725_v16 = vmax.f32 %v1522_v42, %v1619_v4  ;;  %v1726_v0 = vmax.f32 %v1565_v51, %v1662_v63  ;;  %v1193_v41 = vsel %vm7136_vm11, %v7092_v6, %v1188_v7  ;;  %v838_v59 = vmul.f32 %v7162_v57, %v837_v39  ;;  %vm7256_vm11 = vmor %vm840_vm0, %vm841_vm15 }
 0x163   : > { %v7240_v38 = vmul.f32 %v1193_v41, %v6921_v11  ;;  %v844_v27 = vand.u32 2147483647, %v7096_v10  ;;  %v847_v30 = vor.u32 1.1754944e-38, %v846_v18  ;;  %v7243_v19 = vadd.f32 1.0, %v5623_v50 }
 0x164   : > { %v1757_v49 = vmax.f32 %v1693_v33, %v1725_v16  ;;  %v1758_v34 = vmax.f32 %v1694_v53, %v1726_v0  ;;  %v839_v43 = vadd.f32 %v7162_v57, %v838_v59  ;;  %v7246_v23 = vadd.f32 1.0, %v5625_v31 }
 0x165   : > { %10818 = vst [vmem:[#allocation10_spill] sm:$0xff] %v7240_v38  ;;  %v1315_v15 = vrot.slane %v7240_v38, 7  ;;  %v1412_v6 = vrot.slane %v7240_v38, 6  ;;  %v1509_v3 = vrot.slane %v7240_v38, 1  ;;  %v1606_v11 = vrot.slane %v7240_v38, 2 }
 0x166   : > { %v1789_v50 = vmax.f32 %v1757_v49, %v7018_v45  ;;  %v1790_v31 = vmax.f32 %v1758_v34, %v7167_v12  ;;  %v843_v7 = vsel %vm7256_vm11, %v7162_v57, %v839_v43  ;;  %5630 = vrcp.f32 %v7243_v19 }
 0x167   : > { %v10821_v39 = vrot.slane %v7036_v46, 7  ;;  %v10823_v40 = vrot.slane %v7036_v46, 6  ;;  %v10825_v33 = vrot.slane %v7036_v46, 1  ;;  %v10827_v59 = vrot.slane %v7036_v46, 2 }
 0x168   : > { %1822 = vst.msk [vmem:[#allocation2 + $0xc0] sm:$0xff] %vm280_vm13, %v1789_v50  ;;  %vm845_vm8 = vcmp.eq.f32.partialorder %v844_v27, 8.507059e+37  ;;  %5632 = vrcp.f32 %v7246_v23  ;;  %v7320_v27 = vadd.f32 %v6793_v60, %v7103_v56  ;;  %vm960_vm15 = vweird.f32 %v7243_v19  ;;  %v542_v56 = vpop.f32.mrf.mxu3 }
 0x169   : > { %v1332_v42 = vsel %vm10728_vm1, %v10821_v39, %v1315_v15  ;;  %v10822_v10 = vmov %v10821_v39  ;;  %v1429_v4 = vsel %vm1414_vm2, %v10823_v40, %v1412_v6  ;;  %v10824_v52 = vmov %v10823_v40  ;;  %1823 = vst.msk [vmem:[#allocation2 + $0xc8] sm:$0xff] %vm280_vm13, %v1790_v31 }
 0x16a   : > { %v1348_v32 = vsel %vm10728_vm1, %v1315_v15, %v10822_v10  ;;  %v1445_v57 = vsel %vm1414_vm2, %v1412_v6, %v10824_v52  ;;  %v1526_v53 = vsel %vm1511_vm7, %v10825_v33, %v1509_v3  ;;  %v10826_v16 = vmov %v10825_v33 }
 0x16b   : > { %v1378_v51 = vsel %vm1260_vm5, %v1348_v32, -inf  ;;  %v1475_v63 = vsel %vm1262_vm6, %v1445_v57, -inf  ;;  %v1542_v0 = vsel %vm1511_vm7, %v1509_v3, %v10826_v16  ;;  %v1623_v49 = vsel %vm10828_vm14, %v10827_v59, %v1606_v11 }
 0x16c   : > { %v1573_v41 = vsel %vm1265_vm9, %v1542_v0, -inf  ;;  %v10829_v34 = vmov %v10827_v59  ;;  %v1701_v15 = vmax.f32 %v1475_v63, %v1378_v51  ;;  %v1702_v3 = vmax.f32 %v1429_v4, %v1332_v42  ;;  %v5631_v39 = vpop.eup %5630 }
 0x16d   : > { %v1639_v43 = vsel %vm10830_vm4, %v1606_v11, %v10829_v34  ;;  %v1733_v18 = vmax.f32 %v1526_v53, %v1623_v49  ;;  %v848_v31 = vsel %vm845_vm8, %v847_v30, %v843_v7  ;;  %v7310_v32 = vadd.f32 1.0, %v7181_v36 }
 0x16e   : > { %v1670_v6 = vsel %vm1267_vm12, %v1639_v43, -inf  ;;  %v5364_v52 = vmul.f32 -1.442695, %v7110_v61  ;;  %v7315_v57 = vmul.f32 %v848_v31, %v7003_v1  ;;  %v956_v42 = vmul.f32 %v5631_v39, %v7243_v19  ;;  %v522_v1 = vpop.f32.mrf.mxu2  ;;  %v5633_v51 = vpop.eup %5632 }
 0x16f   : > { %v1734_v50 = vmax.f32 %v1573_v41, %v1670_v6  ;;  %v1765_v10 = vmax.f32 %v1701_v15, %v1733_v18  ;;  %v964_v7 = vand.u32 2147483647, %v7243_v19  ;;  %v966_v36 = vand.u32 2147483648, %v7243_v19 }
 0x170   : > { %v957_v4 = vsub.f32 1.0, %v956_v42  ;;  %vm961_vm0 = vweird.f32 %v5631_v39  ;;  %5634 = vrcp.f32 %v7310_v32  ;;  %vm1080_vm10 = vweird.f32 %v7246_v23 }
 0x171   : > { %v1766_v40 = vmax.f32 %v1702_v3, %v1734_v50  ;;  %v1797_v11 = vmax.f32 %v1765_v10, %v7036_v46  ;;  %5636 = vpow2.f32 %v5364_v52  ;;  %v5372_v53 = vmul.f32 -1.442695, %v7320_v27  ;;  %vm7334_vm3 = vmor %vm960_vm15, %vm961_vm0 }
 0x172   : > { %v958_v33 = vmul.f32 %v5631_v39, %v957_v4  ;;  %v1269_v16 = vpack.c.bf16 %v6509_v29, %v6328_v20  ;;  %vm7338_vm11 = vcmp.eq.f32.partialorder %v964_v7, 8.507059e+37  ;;  %v967_v41 = vor.u32 1.1754944e-38, %v966_v36 }
 0x173   : > { %v1798_v30 = vmax.f32 %v1766_v40, %v7240_v38  ;;  %1830 = vst.msk [vmem:[#allocation2 + $0x100] sm:$0xff] %vm280_vm13, %v1797_v11  ;;  %v1076_v59 = vmul.f32 %v5633_v51, %v7246_v23  ;;  %v1086_v49 = vand.u32 2147483648, %v7246_v23  ;;  %5638 = vpow2.f32 %v5372_v53 }
 0x174   : > { %v959_v34 = vadd.f32 %v5631_v39, %v958_v33  ;;  %5407 = vmatmul.msk.bf16.gmra.mxu2 %vm280_vm13, %v1269_v16  ;;  %v572_v43 = vmul.f32 %v6767_v2, %v522_v1  ;;  %v580_v20 = vmul.f32 %v6767_v2, %v542_v56  ;;  %vm1081_vm14 = vweird.f32 %v5633_v51 }
 0x175   : > { %1831 = vst.msk [vmem:[#allocation2 + $0x108] sm:$0xff] %vm280_vm13, %v1798_v30  ;;  %v1077_v29 = vsub.f32 1.0, %v1076_v59  ;;  %v1084_v15 = vand.u32 2147483647, %v7246_v23  ;;  %v1204_v50 = vand.u32 2147483647, %v7310_v32  ;;  %vm7368_vm4 = vmor %vm1080_vm10, %vm1081_vm14  ;;  %vm1200_vm15 = vweird.f32 %v7310_v32 }
 0x176   : > { %v7348_v6 = vpop.eup %5634  ;;  %v963_v18 = vsel %vm7334_vm3, %v5631_v39, %v959_v34  ;;  %v7355_v31 = vadd.f32 %v6793_v60, %v572_v43  ;;  %v5794_v10 = vmov -inf   ;;  %v1206_v42 = vand.u32 2147483648, %v7310_v32  ;;  %v7399_v59 = vld [vmem:[#allocation2 + $0x30] sm:$0xff] }
 0x177   : > { %281 = vst.msk [vmem:[#allocation2] sm:$0xff] %vm280_vm13, %v5794_v10  ;;  %v5637_v2 = vpop.eup %5636  ;;  %v1078_v52 = vmul.f32 %v5633_v51, %v1077_v29  ;;  %v1196_v11 = vmul.f32 %v7348_v6, %v7310_v32  ;;  %v968_v39 = vsel %vm7338_vm11, %v967_v41, %v963_v18  ;;  %v1087_v7 = vor.u32 1.1754944e-38, %v1086_v49  ;;  %v7401_v49 = vld [vmem:[#allocation2 + $0x38] sm:$0xff]  ;;  %v7420_v18 = vld [vmem:[#allocation2 + $0x20] sm:$0xff] }
 0x178   : > { %282 = vst.msk [vmem:[#allocation2 + $0x8] sm:$0xff] %vm280_vm13, %v5794_v10  ;;  %v7372_v36 = vadd.f32 1.0, %v5637_v2  ;;  %v7375_v4 = vadd.f32 %v6793_v60, %v580_v20  ;;  %vm7378_vm8 = vcmp.eq.f32.partialorder %v1084_v15, 8.507059e+37  ;;  %v5380_v23 = vmul.f32 -1.442695, %v7355_v31 }
 0x179   : > { %283 = vst.msk [vmem:[#allocation2 + $0x10] sm:$0xff] %vm280_vm13, %v5794_v10  ;;  %v1079_v1 = vadd.f32 %v5633_v51, %v1078_v52  ;;  %v1197_v33 = vsub.f32 1.0, %v1196_v11  ;;  %v5639_v53 = vpop.eup %5638  ;;  %vm1201_vm0 = vweird.f32 %v7348_v6  ;;  %vm7387_vm10 = vcmp.eq.f32.partialorder %v1204_v50, 8.507059e+37  ;;  %v7422_v50 = vld [vmem:[#allocation2 + $0x28] sm:$0xff] }
 0x17a   : > { %284 = vst.msk [vmem:[#allocation2 + $0x18] sm:$0xff] %vm280_vm13, %v5794_v10  ;;  %v7393_v19 = vmul.f32 %v968_v39, %v7009_v9  ;;  %5640 = vrcp.f32 %v7372_v36  ;;  %v1207_v43 = vor.u32 1.1754944e-38, %v1206_v42  ;;  %v7406_v20 = vadd.f32 1.0, %v5639_v53  ;;  %vm7415_vm3 = vmor %vm1200_vm15, %vm1201_vm0 }
 0x17b   : > { %286 = vst.msk [vmem:[#allocation2 + $0x120] sm:$0xff] %vm280_vm13, %v5794_v10  ;;  %v1083_v0 = vsel %vm7368_vm4, %v5633_v51, %v1079_v1  ;;  %v1198_v41 = vmul.f32 %v7348_v6, %v1197_v33  ;;  %v5388_v9 = vmul.f32 -1.442695, %v7375_v4  ;;  %v861_v15 = vand.u32 2147483648, %v7372_v36 }
 0x17c   : > { %287 = vst.msk [vmem:[#allocation2 + $0x128] sm:$0xff] %vm280_vm13, %v5794_v10  ;;  %v1088_v34 = vsel %vm7378_vm8, %v1087_v7, %v1083_v0  ;;  %5642 = vpow2.f32 %v5380_v23  ;;  %v1270_v32 = vpack.c.bf16 %v6936_v47, %v6871_v14  ;;  %v7432_v52 = vmax.f32 %v7420_v18, %v7399_v59 }
 0x17d   : > { %288 = vst.msk [vmem:[#allocation2 + $0x130] sm:$0xff] %vm280_vm13, %v5794_v10  ;;  %v1199_v51 = vadd.f32 %v7348_v6, %v1198_v41  ;;  %5644 = vrcp.f32 %v7406_v20  ;;  %v7436_v11 = vmax.f32 %v7422_v50, %v7401_v49  ;;  %v7441_v39 = vmul.f32 %v1088_v34, %v7059_v22 }
 0x17e   : > { %289 = vst.msk [vmem:[#allocation2 + $0x138] sm:$0xff] %vm280_vm13, %v5794_v10  ;;  %v859_v30 = vand.u32 2147483647, %v7372_v36  ;;  %v1834_v7 = vld [vmem:[#allocation2] sm:$0xff]  ;;  %5646 = vpow2.f32 %v5388_v9  ;;  %vm855_vm11 = vweird.f32 %v7372_v36  ;;  %v862_v22 = vor.u32 1.1754944e-38, %v861_v15 }
 0x17f   : > { %v1835_v1 = vld [vmem:[#allocation2 + $0x8] sm:$0xff]  ;;  %v1203_v56 = vsel %vm7415_vm3, %v7348_v6, %v1199_v51  ;;  %v979_v53 = vand.u32 2147483647, %v7406_v20  ;;  %v981_v2 = vand.u32 2147483648, %v7406_v20  ;;  %vm975_vm4 = vweird.f32 %v7406_v20  ;;  %v7499_v10 = vld [vmem:[#allocation2 + $0x40] sm:$0xff] }
 0x180   : > { %v5641_v33 = vpop.eup %5640  ;;  %v1208_v23 = vsel %vm7387_vm10, %v1207_v43, %v1203_v56  ;;  %v7453_v0 = vld [vmem:[#allocation2 + $0x10] sm:$0xff]  ;;  %vm7468_vm14 = vcmp.eq.f32.partialorder %v859_v30, 8.507059e+37  ;;  %vm10847_vm10 = vcmask 1040384   ;;  %v10854_v46 = vrot.slane %v7315_v57, 1 }
 0x181   : > { %v7455_v41 = vld [vmem:[#allocation2 + $0x18] sm:$0xff]  ;;  %v851_v34 = vmul.f32 %v5641_v33, %v7372_v36  ;;  %v7460_v6 = vmax.f32 %v1834_v7, %v7453_v0  ;;  %v7475_v47 = vmul.f32 %v1208_v23, %v7070_v21  ;;  %vm856_vm8 = vweird.f32 %v5641_v33  ;;  %v7487_v7 = vld [vmem:[#allocation2 + $0x48] sm:$0xff] }
 0x182   : > { %v7463_v9 = vmax.f32 %v1835_v1, %v7455_v41  ;;  %v5643_v60 = vpop.eup %5642  ;;  %vm7481_vm15 = vcmp.eq.f32.partialorder %v979_v53, 8.507059e+37  ;;  %v982_v21 = vor.u32 1.1754944e-38, %v981_v2  ;;  %vm857_vm3 = vmor %vm855_vm11, %vm856_vm8 }
 0x183   : > { %v5645_v56 = vpop.eup %5644  ;;  %v852_v51 = vsub.f32 1.0, %v851_v34  ;;  %v7485_v43 = vadd.f32 1.0, %v5643_v60  ;;  %v2028_v23 = vmax.f32 %v7460_v6, %v7432_v52  ;;  %v5389_v60 = vld [vmem:[%s10708_s4 + $0x1] sm:$0x1] }
 0x184   : > { %5408 = vmatmul.msk.bf16.gmra.mxu2 %vm280_vm13, %v1270_v32  ;;  %v971_v30 = vmul.f32 %v5645_v56, %v7406_v20  ;;  %v5647_v14 = vpop.eup %5646  ;;  %v2029_v32 = vmax.f32 %v7463_v9, %v7436_v11  ;;  %vm976_vm0 = vweird.f32 %v5645_v56  ;;  %v2193_v40 = vsel %vm10847_vm10, %v5389_v60, 0 }
 0x185   : > { %v853_v1 = vmul.f32 %v5641_v33, %v852_v51  ;;  %5648 = vrcp.f32 %v7485_v43  ;;  %v1101_v42 = vand.u32 2147483648, %v7485_v43  ;;  %v7503_v16 = vadd.f32 1.0, %v5647_v14  ;;  %2202 = vmatpush.bf16.msrb.mxu1 %v2193_v40  ;;  %vm7521_vm10 = vmor %vm975_vm4, %vm976_vm0 }
 0x186   : > { %v972_v53 = vsub.f32 1.0, %v971_v30  ;;  %v7510_v30 = vmax.f32 %v2028_v23, %v7499_v10  ;;  %v7513_v3 = vmax.f32 %v2029_v32, %v7487_v7  ;;  %v1099_v40 = vand.u32 2147483647, %v7485_v43 }
 0x187   : > { %v854_v34 = vadd.f32 %v5641_v33, %v853_v1  ;;  %v1221_v32 = vand.u32 2147483648, %v7503_v16  ;;  %5650 = vrcp.f32 %v7503_v16  ;;  %vm1095_vm11 = vweird.f32 %v7485_v43 }
 0x188   : > { %v973_v51 = vmul.f32 %v5645_v56, %v972_v53  ;;  %v7526_v53 = vor.u32 1.1754944e-38, %v1101_v42  ;;  %v2125_v63 = vpack.c.bf16 %v7513_v3, %v7510_v30  ;;  %v2424_v20 = vrot.slane %v7510_v30, 7 }
 0x189   : > { %v858_v1 = vsel %vm857_vm3, %v5641_v33, %v854_v34  ;;  %v2440_v14 = vrot.slane %v7513_v3, 7  ;;  %v7548_v34 = vor.u32 1.1754944e-38, %v1221_v32  ;;  %v10850_v32 = vrot.slane %v7315_v57, 7 }
 0x18a   : > { %v974_v23 = vadd.f32 %v5645_v56, %v973_v51  ;;  %v863_v60 = vsel %vm7468_vm14, %v862_v22, %v858_v1  ;;  %5390 = vmatmul.msk.bf16.vlgmr.msrb.gmra.mxu1 %vm280_vm13, %v2125_v63  ;;  %vm10857_vm4 = vcmp.lt.s32.totalorder %v5916_v5, 6  ;;  %vm1215_vm0 = vweird.f32 %v7503_v16 }
 0x18b   : > { %v7535_v2 = vpop.eup %5648  ;;  %v7538_v38 = vmul.f32 %v863_v60, %v7110_v61  ;;  %v7553_v61 = vsel %vm10728_vm1, %v2424_v20, %v2440_v14  ;;  %vm10859_vm8 = vmmov %vm10857_vm4 }
 0x18c   : > { %v978_v42 = vsel %vm7521_vm10, %v5645_v56, %v974_v23  ;;  %v1091_v15 = vmul.f32 %v7535_v2, %v7485_v43  ;;  %vm1096_vm14 = vweird.f32 %v7535_v2  ;;  %v2472_v23 = vsel %vm10728_vm1, %v2440_v14, %v2424_v20  ;;  %vm10869_vm3 = vmmov %vm10857_vm4 }
 0x18d   : > { %v983_v22 = vsel %vm7481_vm15, %v982_v21, %v978_v42  ;;  %v1304_v56 = vrot.slane %v7538_v38, 7  ;;  %v1401_v51 = vrot.slane %v7538_v38, 6  ;;  %v1498_v36 = vrot.slane %v7538_v38, 1  ;;  %v7596_v62 = vpop.eup %5650  ;;  %vm10871_vm10 = vmmov %vm10869_vm3 }
 0x18e   : > { %v1595_v29 = vrot.slane %v7538_v38, 2  ;;  %v7562_v21 = vmul.f32 %v983_v22, %v7320_v27  ;;  %v1092_v63 = vsub.f32 1.0, %v1091_v15  ;;  %v1271_v1 = vpack.c.bf16 %v7538_v38, %v7315_v57 }
 0x18f   : > { %v1321_v60 = vsel %vm10728_vm1, %v10850_v32, %v1304_v56  ;;  %v10851_v42 = vmov %v10850_v32  ;;  %v10852_v27 = vrot.slane %v7315_v57, 6  ;;  %vm7608_vm15 = vcmp.eq.f32.partialorder %v1099_v40, 8.507059e+37 }
 0x190   : > { %v1337_v33 = vsel %vm10728_vm1, %v1304_v56, %v10851_v42  ;;  %v1515_v56 = vsel %vm1511_vm7, %v10854_v46, %v1498_v36  ;;  %v10855_v42 = vmov %v10854_v46  ;;  %v1308_v8 = vrot.slane %v7562_v21, 7 }
 0x191   : > { %v1418_v22 = vsel %vm1414_vm2, %v10852_v27, %v1401_v51  ;;  %v10853_v15 = vmov %v10852_v27  ;;  %v1356_v20 = vsel %vm1260_vm5, %v1337_v33, -inf  ;;  %v1531_v27 = vsel %vm1511_vm7, %v1498_v36, %v10855_v42 }
 0x192   : > { %v1434_v14 = vsel %vm1414_vm2, %v1401_v51, %v10853_v15  ;;  %v1551_v51 = vsel %vm1265_vm9, %v1531_v27, -inf  ;;  %v10856_v33 = vrot.slane %v7315_v57, 2  ;;  %v1680_v42 = vmax.f32 %v1418_v22, %v1321_v60 }
 0x193   : > { %v1453_v32 = vsel %vm1262_vm6, %v1434_v14, -inf  ;;  %v1405_v12 = vrot.slane %v7562_v21, 6  ;;  %v1502_v45 = vrot.slane %v7562_v21, 1 }
 0x194   : > { %v1612_v15 = vsel %vm10857_vm4, %v10856_v33, %v1595_v29  ;;  %v10858_v14 = vmov %v10856_v33  ;;  %v1679_v28 = vmax.f32 %v1453_v32, %v1356_v20  ;;  %5409 = vmatmul.msk.bf16.gmra.mxu2 %vm280_vm13, %v1271_v1  ;;  %v10862_v20 = vrot.slane %v7393_v19, 7  ;;  %vm7671_vm4 = vmor %vm1095_vm11, %vm1096_vm14 }
 0x195   : > { %v1628_v46 = vsel %vm10859_vm8, %v1595_v29, %v10858_v14  ;;  %v1711_v27 = vmax.f32 %v1515_v56, %v1612_v15  ;;  %v1599_v29 = vrot.slane %v7562_v21, 2  ;;  %v1093_v1 = vmul.f32 %v7535_v2, %v1092_v63 }
 0x196   : > { %v1648_v36 = vsel %vm1267_vm12, %v1628_v46, -inf  ;;  %v1325_v32 = vsel %vm10728_vm1, %v10862_v20, %v1308_v8  ;;  %v10863_v60 = vmov %v10862_v20  ;;  %v10864_v15 = vrot.slane %v7393_v19, 6 }
 0x197   : > { %v1712_v33 = vmax.f32 %v1551_v51, %v1648_v36  ;;  %v1743_v40 = vmax.f32 %v1679_v28, %v1711_v27  ;;  %v1341_v22 = vsel %vm10728_vm1, %v1308_v8, %v10863_v60  ;;  %v10866_v63 = vrot.slane %v7393_v19, 1 }
 0x198   : > { %v1364_v51 = vsel %vm1260_vm5, %v1341_v22, -inf  ;;  %v1422_v28 = vsel %vm1414_vm2, %v10864_v15, %v1405_v12  ;;  %v10865_v14 = vmov %v10864_v15  ;;  %vm1216_vm8 = vweird.f32 %v7596_v62 }
 0x199   : > { %v1744_v56 = vmax.f32 %v1680_v42, %v1712_v33  ;;  %v1438_v46 = vsel %vm1414_vm2, %v1405_v12, %v10865_v14  ;;  %v1775_v36 = vmax.f32 %v1743_v40, %v7315_v57  ;;  %v1519_v42 = vsel %vm1511_vm7, %v10866_v63, %v1502_v45  ;;  %vm7748_vm14 = vmor %vm1215_vm0, %vm1216_vm8 }
 0x19a   : > { %v1461_v8 = vsel %vm1262_vm6, %v1438_v46, -inf  ;;  %v10867_v27 = vmov %v10866_v63  ;;  %v10868_v57 = vrot.slane %v7393_v19, 2  ;;  %v1688_v15 = vmax.f32 %v1422_v28, %v1325_v32  ;;  %vm10890_vm0 = vmmov %vm10871_vm10 }
 0x19b   : > { %v1535_v33 = vsel %vm1511_vm7, %v1502_v45, %v10867_v27  ;;  %v1776_v20 = vmax.f32 %v1744_v56, %v7538_v38  ;;  %v5422_v45 = vld [vmem:[%s10708_s4 + $0x2] sm:$0x1]  ;;  %1808 = vst.msk [vmem:[#allocation2 + $0x50] sm:$0xff] %vm280_vm13, %v1775_v36  ;;  %v1687_v56 = vmax.f32 %v1461_v8, %v1364_v51  ;;  %v1094_v63 = vadd.f32 %v7535_v2, %v1093_v1  ;;  %vm10900_vm8 = vmmov %vm10890_vm0 }
 0x19c   : > { %v1559_v12 = vsel %vm1265_vm9, %v1535_v33, -inf  ;;  %v1616_v40 = vsel %vm10869_vm3, %v10868_v57, %v1599_v29  ;;  %v10870_v60 = vmov %v10868_v57  ;;  %v1211_v36 = vmul.f32 %v7596_v62, %v7503_v16 }
 0x19d   : > { %v1632_v22 = vsel %vm10871_vm10, %v1599_v29, %v10870_v60  ;;  %v1719_v14 = vmax.f32 %v1519_v42, %v1616_v40  ;;  %1809 = vst.msk [vmem:[#allocation2 + $0x58] sm:$0xff] %vm280_vm13, %v1776_v20  ;;  %v10874_v51 = vand.u32 2147483647, %v7503_v16  ;;  %vm10877_vm11 = vcmask 1040384  }
 0x19e   : > { %v1656_v38 = vsel %vm1267_vm12, %v1632_v22, -inf  ;;  %v3323_v43 = vsel %vm10877_vm11, %v5422_v45, 0  ;;  %v7689_v8 = vsel %vm1260_vm5, %v2472_v23, -inf  ;;  %v2520_v1 = vrot.slane %v7510_v30, 6 }
 0x19f   : > { %v1720_v29 = vmax.f32 %v1559_v12, %v1656_v38  ;;  %v1751_v32 = vmax.f32 %v1687_v56, %v1719_v14  ;;  %vm7682_vm3 = vcmp.eq.f32.partialorder %v10874_v51, 8.507059e+37  ;;  %v1098_v27 = vsel %vm7671_vm4, %v7535_v2, %v1094_v63  ;;  %3332 = vmatpush.bf16.msrb.mxu3 %v3323_v43  ;;  %vm10892_vm4 = vmmov %vm10890_vm0 }
 0x1a0   : > { %v1212_v33 = vsub.f32 1.0, %v1211_v36  ;;  %v2536_v20 = vrot.slane %v7513_v3, 6  ;;  %v1103_v57 = vsel %vm7608_vm15, %v7526_v53, %v1098_v27  ;;  %v2616_v23 = vrot.slane %v7510_v30, 1  ;;  %vm10888_vm15 = vmmov %vm10871_vm10 }
 0x1a1   : > { %v1752_v42 = vmax.f32 %v1688_v15, %v1720_v29  ;;  %v1783_v12 = vmax.f32 %v1751_v32, %v7393_v19  ;;  %v2632_v40 = vrot.slane %v7513_v3, 1  ;;  %v7704_v22 = vmul.f32 %v1103_v57, %v7355_v31  ;;  %vm10891_vm10 = vmmov %vm10890_vm0 }
 0x1a2   : > { %v1213_v2 = vmul.f32 %v7596_v62, %v1212_v33  ;;  %v2552_v45 = vsel %vm1414_vm2, %v2520_v1, %v2536_v20  ;;  %v2568_v17 = vsel %vm1414_vm2, %v2536_v20, %v2520_v1  ;;  %v2712_v56 = vrot.slane %v7510_v30, 2 }
 0x1a3   : > { %v1784_v60 = vmax.f32 %v1752_v42, %v7562_v21  ;;  %1816 = vst.msk [vmem:[#allocation2 + $0x90] sm:$0xff] %vm280_vm13, %v1783_v12  ;;  %v2648_v53 = vsel %vm1511_vm7, %v2616_v23, %v2632_v40  ;;  %v2664_v38 = vsel %vm1511_vm7, %v2632_v40, %v2616_v23  ;;  %v1312_v31 = vrot.slane %v7704_v22, 7 }
 0x1a4   : > { %v1409_v15 = vrot.slane %v7704_v22, 6  ;;  %v1506_v14 = vrot.slane %v7704_v22, 1  ;;  %v1603_v46 = vrot.slane %v7704_v22, 2  ;;  %v1214_v29 = vadd.f32 %v7596_v62, %v1213_v2 }
 0x1a5   : > { %1817 = vst.msk [vmem:[#allocation2 + $0x98] sm:$0xff] %vm280_vm13, %v1784_v60  ;;  %v2584_v63 = vsel %vm1262_vm6, %v2568_v17, -inf  ;;  %v2681_v36 = vsel %vm1265_vm9, %v2664_v38, -inf  ;;  %v2728_v32 = vrot.slane %v7513_v3, 2  ;;  %v10878_v51 = vrot.slane %v7441_v39, 7 }
 0x1a6   : > { %v10880_v27 = vrot.slane %v7441_v39, 6  ;;  %v10884_v60 = vrot.slane %v7441_v39, 1  ;;  %v10886_v38 = vpack.c.bf16 %v6087_v55, %v5999_v58 }
 0x1a7   : > { %v1329_v43 = vsel %vm10728_vm1, %v10878_v51, %v1312_v31  ;;  %v10879_v1 = vmov %v10878_v51 }
 0x1a8   : > { %v1345_v42 = vsel %vm10728_vm1, %v1312_v31, %v10879_v1  ;;  %v1426_v33 = vsel %vm1414_vm2, %v10880_v27, %v1409_v15  ;;  %v10881_v20 = vmov %v10880_v27  ;;  %v1523_v2 = vsel %vm1511_vm7, %v10884_v60, %v1506_v14  ;;  %5410 = vmatmul.msk.bf16.gmra.mxu2 %vm280_vm13, %v10886_v38 }
 0x1a9   : > { %v1442_v12 = vsel %vm1414_vm2, %v1409_v15, %v10881_v20  ;;  %v1372_v23 = vsel %vm1260_vm5, %v1345_v42, -inf  ;;  %v10885_v17 = vmov %v10884_v60  ;;  %v10887_v15 = vrot.slane %v7441_v39, 2 }
 0x1aa   : > { %v1469_v40 = vsel %vm1262_vm6, %v1442_v12, -inf  ;;  %v1539_v16 = vsel %vm1511_vm7, %v1506_v14, %v10885_v17  ;;  %v1696_v58 = vmax.f32 %v1426_v33, %v1329_v43  ;;  %v1218_v20 = vsel %vm7748_vm14, %v7596_v62, %v1214_v29  ;;  %vm10905_vm14 = vmmov %vm10890_vm0 }
 0x1ab   : > { %v1567_v31 = vsel %vm1265_vm9, %v1539_v16, -inf  ;;  %v1620_v51 = vsel %vm10888_vm15, %v10887_v15, %v1603_v46  ;;  %v10889_v1 = vmov %v10887_v15  ;;  %v1695_v27 = vmax.f32 %v1469_v40, %v1372_v23  ;;  %vm10906_vm15 = vmmov %vm10890_vm0 }
 0x1ac   : > { %v1636_v42 = vsel %vm10890_vm0, %v1603_v46, %v10889_v1  ;;  %v1727_v55 = vmax.f32 %v1523_v2, %v1620_v51  ;;  %v1223_v60 = vsel %vm7682_vm3, %v7548_v34, %v1218_v20  ;;  %v2744_v17 = vsel %vm10891_vm10, %v2712_v56, %v2728_v32  ;;  %v5439_v20 = vld [vmem:[%s10708_s4 + $0x3] sm:$0x1]  ;;  %vm10902_vm3 = vmmov %vm10890_vm0 }
 0x1ad   : > { %v1664_v14 = vsel %vm1267_vm12, %v1636_v42, -inf  ;;  %v2760_v46 = vsel %vm10892_vm4, %v2728_v32, %v2712_v56  ;;  %v7791_v40 = vmul.f32 %v1223_v60, %v7375_v4  ;;  %v2808_v62 = vmax.f32 %v2584_v63, %v7689_v8  ;;  %vm10907_vm10 = vmmov %vm10890_vm0 }
 0x1ae   : > { %v1728_v12 = vmax.f32 %v1567_v31, %v1664_v14  ;;  %v1759_v23 = vmax.f32 %v1695_v27, %v1727_v55  ;;  %v2777_v43 = vsel %vm1267_vm12, %v2760_v46, -inf  ;;  %v2809_v33 = vmax.f32 %v2552_v45, %v7553_v61  ;;  %vm10908_vm4 = vmmov %vm10890_vm0 }
 0x1af   : > { %v2840_v28 = vmax.f32 %v2648_v53, %v2744_v17  ;;  %v2841_v34 = vmax.f32 %v2681_v36, %v2777_v43  ;;  %v1316_v2 = vrot.slane %v7791_v40, 7  ;;  %v1413_v56 = vrot.slane %v7791_v40, 6 }
 0x1b0   : > { %v1760_v29 = vmax.f32 %v1696_v58, %v1728_v12  ;;  %v1791_v57 = vmax.f32 %v1759_v23, %v7441_v39  ;;  %v1510_v32 = vrot.slane %v7791_v40, 1  ;;  %v1607_v16 = vrot.slane %v7791_v40, 2  ;;  %v7836_v12 = vld [vmem:[#allocation2 + $0x58] sm:$0xff] }
 0x1b1   : > { %v2872_v38 = vmax.f32 %v2808_v62, %v2840_v28  ;;  %v2873_v31 = vmax.f32 %v2809_v33, %v2841_v34  ;;  %v10893_v61 = vrot.slane %v7475_v47, 7  ;;  %v10895_v63 = vrot.slane %v7475_v47, 6  ;;  %v2063_v33 = vld [vmem:[#allocation2 + $0x50] sm:$0xff] }
 0x1b2   : > { %v1792_v4 = vmax.f32 %v1760_v29, %v7704_v22  ;;  %1824 = vst.msk [vmem:[#allocation2 + $0xd0] sm:$0xff] %vm280_vm13, %v1791_v57  ;;  %v10897_v27 = vrot.slane %v7475_v47, 1  ;;  %v10899_v17 = vrot.slane %v7475_v47, 2  ;;  %v1967_v29 = vld [vmem:[#allocation2 + $0x48] sm:$0xff] }
 0x1b3   : > { %v1333_v8 = vsel %vm10728_vm1, %v10893_v61, %v1316_v2  ;;  %v10894_v45 = vmov %v10893_v61  ;;  %v1430_v36 = vsel %vm1414_vm2, %v10895_v63, %v1413_v56  ;;  %v10896_v15 = vmov %v10895_v63 }
 0x1b4   : > { %v1349_v53 = vsel %vm10728_vm1, %v1316_v2, %v10894_v45  ;;  %v1446_v51 = vsel %vm1414_vm2, %v1413_v56, %v10896_v15  ;;  %1825 = vst.msk [vmem:[#allocation2 + $0xd8] sm:$0xff] %vm280_vm13, %v1792_v4  ;;  %v1527_v14 = vsel %vm1511_vm7, %v10897_v27, %v1510_v32  ;;  %v10898_v58 = vmov %v10897_v27 }
 0x1b5   : > { %v1380_v1 = vsel %vm1260_vm5, %v1349_v53, -inf  ;;  %v1477_v42 = vsel %vm1262_vm6, %v1446_v51, -inf  ;;  %v1543_v55 = vsel %vm1511_vm7, %v1510_v32, %v10898_v58  ;;  %v1624_v46 = vsel %vm10900_vm8, %v10899_v17, %v1607_v16  ;;  %vm10909_vm8 = vmmov %vm10890_vm0 }
 0x1b6   : > { %v1575_v60 = vsel %vm1265_vm9, %v1543_v55, -inf  ;;  %v10901_v23 = vmov %v10899_v17  ;;  %v1703_v62 = vmax.f32 %v1477_v42, %v1380_v1  ;;  %v1704_v34 = vmax.f32 %v1430_v36, %v1333_v8 }
 0x1b7   : > { %v1640_v43 = vsel %vm10902_vm3, %v1607_v16, %v10901_v23  ;;  %v1735_v57 = vmax.f32 %v1527_v14, %v1624_v46  ;;  %v2904_v2 = vmax.f32 %v2872_v38, %v7510_v30  ;;  %v2905_v32 = vmax.f32 %v2873_v31, %v7513_v3  ;;  %vm10910_vm3 = vmmov %vm10890_vm0 }
 0x1b8   : > { %v1672_v28 = vsel %vm1267_vm12, %v1640_v43, -inf  ;;  %v4345_v4 = vsel %vm10877_vm11, %v5439_v20, 0  ;;  %v7855_v61 = vmax.f32 %v7399_v59, %v7499_v10  ;;  %v1999_v45 = vmax.f32 %v7401_v49, %v1967_v29  ;;  %vm10911_vm11 = vmmov %vm10890_vm0 }
 0x1b9   : > { %v1736_v56 = vmax.f32 %v1575_v60, %v1672_v28  ;;  %v1767_v16 = vmax.f32 %v1703_v62, %v1735_v57  ;;  %4354 = vmatpush.bf16.msrb.mxu0 %v4345_v4  ;;  %v7859_v53 = vmax.f32 %v7499_v10, %v2063_v33  ;;  %v2001_v8 = vmax.f32 %v1967_v29, %v7836_v12 }
 0x1ba   : > { %v10903_v3 = vmax.f32 %v7453_v0, %v7420_v18  ;;  %v1273_v38 = vpack.c.bf16 %v6605_v26, %v6447_v37  ;;  %2936 = vst.msk [vmem:[#allocation2 + $0x20] sm:$0xff] %vm280_vm13, %v2904_v2  ;;  %v10904_v31 = vmax.f32 %v7455_v41, %v7422_v50  ;;  %v7881_v37 = vld [vmem:[#allocation2 + $0x60] sm:$0xff]  ;;  %v7883_v26 = vld [vmem:[#allocation2 + $0x68] sm:$0xff]  ;;  %v1906_v50 = vmax.f32 %v7401_v49, %v7487_v7 }
 0x1bb   : > { %v1768_v63 = vmax.f32 %v1704_v34, %v1736_v56  ;;  %v1799_v59 = vmax.f32 %v1767_v16, %v7475_v47  ;;  %v2032_v36 = vmax.f32 %v7432_v52, %v7859_v53  ;;  %v2033_v15 = vmax.f32 %v7436_v11, %v2001_v8  ;;  %2937 = vst.msk [vmem:[#allocation2 + $0x28] sm:$0xff] %vm280_vm13, %v2905_v32 }
 0x1bc   : > { %v2030_v30 = vmax.f32 %v10903_v3, %v7855_v61  ;;  %v2031_v10 = vmax.f32 %v10904_v31, %v1999_v45  ;;  %5411 = vmatmul.msk.bf16.gmra.mxu2 %vm280_vm13, %v1273_v38  ;;  %v7898_v42 = vmax.f32 %v2063_v33, %v7881_v37  ;;  %v2003_v62 = vmax.f32 %v7836_v12, %v7883_v26 }
 0x1bd   : > { %v1800_v18 = vmax.f32 %v1768_v63, %v7791_v40  ;;  %1832 = vst.msk [vmem:[#allocation2 + $0x110] sm:$0xff] %vm280_vm13, %v1799_v59  ;;  %v7892_v11 = vmax.f32 %v2032_v36, %v7881_v37  ;;  %v7895_v1 = vmax.f32 %v2033_v15, %v7883_v26 }
 0x1be   : > { %v7878_v51 = vmax.f32 %v2030_v30, %v2063_v33  ;;  %v7889_v52 = vmax.f32 %v2031_v10, %v7836_v12  ;;  %v2034_v38 = vmax.f32 %v7855_v61, %v7898_v42 }
 0x1bf   : > { %1833 = vst.msk [vmem:[#allocation2 + $0x118] sm:$0xff] %vm280_vm13, %v1800_v18  ;;  %v2426_v23 = vrot.slane %v7892_v11, 7  ;;  %v2442_v43 = vrot.slane %v7895_v1, 7  ;;  %v2522_v10 = vrot.slane %v7892_v11, 6  ;;  %v2538_v36 = vrot.slane %v7895_v1, 6 }
 0x1c0   : > { %v2425_v27 = vrot.slane %v7878_v51, 7  ;;  %v2521_v49 = vrot.slane %v7878_v51, 6  ;;  %v2617_v14 = vrot.slane %v7878_v51, 1  ;;  %v2713_v58 = vrot.slane %v7878_v51, 2 }
 0x1c1   : > { %v2126_v55 = vpack.c.bf16 %v7889_v52, %v7878_v51  ;;  %v2441_v20 = vrot.slane %v7889_v52, 7  ;;  %v2537_v60 = vrot.slane %v7889_v52, 6  ;;  %v2633_v17 = vrot.slane %v7889_v52, 1 }
 0x1c2   : > { %v2729_v46 = vrot.slane %v7889_v52, 2  ;;  %v2474_v31 = vsel %vm10728_vm1, %v2442_v43, %v2426_v23  ;;  %v2458_v18 = vsel %vm10728_vm1, %v2426_v23, %v2442_v43 }
 0x1c3   : > { %5391 = vmatmul.msk.bf16.gmra.mxu1 %vm280_vm13, %v2126_v55  ;;  %v2457_v29 = vsel %vm10728_vm1, %v2425_v27, %v2441_v20  ;;  %v2473_v33 = vsel %vm10728_vm1, %v2441_v20, %v2425_v27  ;;  %v2553_v28 = vsel %vm1414_vm2, %v2521_v49, %v2537_v60  ;;  %v2569_v34 = vsel %vm1414_vm2, %v2537_v60, %v2521_v49 }
 0x1c4   : > { %v2490_v57 = vsel %vm1260_vm5, %v2473_v33, -inf  ;;  %v2586_v2 = vsel %vm1262_vm6, %v2569_v34, -inf  ;;  %v2649_v56 = vsel %vm1511_vm7, %v2617_v14, %v2633_v17  ;;  %v2665_v32 = vsel %vm1511_vm7, %v2633_v17, %v2617_v14 }
 0x1c5   : > { %v2683_v4 = vsel %vm1265_vm9, %v2665_v32, -inf  ;;  %v2745_v16 = vsel %vm10905_vm14, %v2713_v58, %v2729_v46  ;;  %v2761_v45 = vsel %vm10906_vm15, %v2729_v46, %v2713_v58  ;;  %v2810_v8 = vmax.f32 %v2586_v2, %v2490_v57  ;;  %v7983_v32 = vld [vmem:[#allocation2 + $0x78] sm:$0xff]  ;;  %vm10912_vm14 = vmmov %vm10890_vm0 }
 0x1c6   : > { %v2779_v63 = vsel %vm1267_vm12, %v2761_v45, -inf  ;;  %v2811_v3 = vmax.f32 %v2553_v28, %v2457_v29  ;;  %v2842_v30 = vmax.f32 %v2649_v56, %v2745_v16  ;;  %v2618_v27 = vrot.slane %v7892_v11, 1  ;;  %vm10913_vm15 = vmmov %vm10890_vm0 }
 0x1c7   : > { %v2843_v59 = vmax.f32 %v2683_v4, %v2779_v63  ;;  %v2634_v49 = vrot.slane %v7895_v1, 1  ;;  %v2492_v61 = vsel %vm1260_vm5, %v2474_v31, -inf  ;;  %v2570_v58 = vsel %vm1414_vm2, %v2538_v36, %v2522_v10 }
 0x1c8   : > { %v2874_v15 = vmax.f32 %v2810_v8, %v2842_v30  ;;  %v2714_v55 = vrot.slane %v7892_v11, 2  ;;  %v2554_v60 = vsel %vm1414_vm2, %v2522_v10, %v2538_v36  ;;  %v2588_v17 = vsel %vm1262_vm6, %v2570_v58, -inf  ;;  %v8014_v58 = vld [vmem:[#allocation2 + $0x20] sm:$0xff] }
 0x1c9   : > { %v2875_v14 = vmax.f32 %v2811_v3, %v2843_v59  ;;  %v2666_v46 = vsel %vm1511_vm7, %v2634_v49, %v2618_v27  ;;  %v2650_v43 = vsel %vm1511_vm7, %v2618_v27, %v2634_v49  ;;  %v2730_v29 = vrot.slane %v7895_v1, 2 }
 0x1ca   : > { %v2906_v20 = vmax.f32 %v2874_v15, %v7878_v51  ;;  %v1274_v33 = vpack.c.bf16 %v7100_v25, %v6931_v48  ;;  %v7968_v51 = vld [vmem:[#allocation2 + $0x70] sm:$0xff]  ;;  %v2685_v28 = vsel %vm1265_vm9, %v2666_v46, -inf  ;;  %v2812_v34 = vmax.f32 %v2588_v17, %v2492_v61 }
 0x1cb   : > { %v2907_v23 = vmax.f32 %v2875_v14, %v7889_v52  ;;  %v2035_v57 = vmax.f32 %v1906_v50, %v2003_v62  ;;  %v7974_v2 = vmax.f32 %v2034_v38, %v7968_v51  ;;  %v2127_v52 = vpack.c.bf16 %v7895_v1, %v7892_v11 }
 0x1cc   : > { %2938 = vst.msk [vmem:[#allocation2 + $0x30] sm:$0xff] %vm280_vm13, %v2906_v20  ;;  %v2746_v56 = vsel %vm10890_vm0, %v2714_v55, %v2730_v29  ;;  %v2762_v48 = vsel %vm10907_vm10, %v2730_v29, %v2714_v55  ;;  %v2813_v25 = vmax.f32 %v2554_v60, %v2458_v18  ;;  %5412 = vmatmul.msk.bf16.gmra.mxu2 %vm280_vm13, %v1274_v33  ;;  %v8023_v60 = vld [vmem:[#allocation2 + $0x28] sm:$0xff]  ;;  %vm10914_vm10 = vmmov %vm10890_vm0 }
 0x1cd   : > { %2939 = vst.msk [vmem:[#allocation2 + $0x38] sm:$0xff] %vm280_vm13, %v2907_v23  ;;  %v2781_v50 = vsel %vm1267_vm12, %v2762_v48, -inf  ;;  %v2844_v62 = vmax.f32 %v2650_v43, %v2746_v56  ;;  %v7989_v4 = vmax.f32 %v2035_v57, %v7983_v32  ;;  %v2427_v16 = vrot.slane %v7974_v2, 7 }
 0x1ce   : > { %v2845_v45 = vmax.f32 %v2685_v28, %v2781_v50  ;;  %v2523_v8 = vrot.slane %v7974_v2, 6  ;;  %v2619_v63 = vrot.slane %v7974_v2, 1  ;;  %v1908_v3 = vmax.f32 %v7487_v7, %v7836_v12 }
 0x1cf   : > { %v2876_v30 = vmax.f32 %v2812_v34, %v2844_v62  ;;  %v2443_v38 = vrot.slane %v7989_v4, 7  ;;  %v2539_v59 = vrot.slane %v7989_v4, 6  ;;  %v2715_v31 = vrot.slane %v7974_v2, 2 }
 0x1d0   : > { %v2877_v10 = vmax.f32 %v2813_v25, %v2845_v45  ;;  %v2635_v36 = vrot.slane %v7989_v4, 1  ;;  %v2731_v15 = vrot.slane %v7989_v4, 2  ;;  %v8003_v18 = vmax.f32 %v7881_v37, %v7968_v51  ;;  %v2069_v25 = vld [vmem:[#allocation2 + $0x80] sm:$0xff] }
 0x1d1   : > { %v2908_v27 = vmax.f32 %v2876_v30, %v7892_v11  ;;  %v2459_v7 = vsel %vm10728_vm1, %v2427_v16, %v2443_v38  ;;  %v2475_v49 = vsel %vm10728_vm1, %v2443_v38, %v2427_v16  ;;  %v2555_v14 = vsel %vm1414_vm2, %v2523_v8, %v2539_v59  ;;  %v8060_v38 = vld [vmem:[#allocation2 + $0x88] sm:$0xff] }
 0x1d2   : > { %v2909_v61 = vmax.f32 %v2877_v10, %v7895_v1  ;;  %v2494_v37 = vsel %vm1260_vm5, %v2475_v49, -inf  ;;  %v2571_v11 = vsel %vm1414_vm2, %v2539_v59, %v2523_v8  ;;  %v2651_v20 = vsel %vm1511_vm7, %v2619_v63, %v2635_v36  ;;  %v8052_v8 = vld [vmem:[#allocation2 + $0x78] sm:$0xff]  ;;  %v8069_v10 = vld [vmem:[#allocation2 + $0x90] sm:$0xff] }
 0x1d3   : > { %5392 = vmatmul.msk.bf16.gmra.mxu1 %vm280_vm13, %v2127_v52  ;;  %v3096_v55 = vld [vmem:[#allocation2 + $0x30] sm:$0xff]  ;;  %2940 = vst.msk [vmem:[#allocation2 + $0x40] sm:$0xff] %vm280_vm13, %v2908_v27  ;;  %v2590_v1 = vsel %vm1262_vm6, %v2571_v11, -inf  ;;  %v2667_v23 = vsel %vm1511_vm7, %v2635_v36, %v2619_v63  ;;  %v2747_v43 = vsel %vm10908_vm4, %v2715_v31, %v2731_v15  ;;  %v2763_v28 = vsel %vm10909_vm8, %v2731_v15, %v2715_v31  ;;  %vm10915_vm4 = vmmov %vm10890_vm0 }
 0x1d4   : > { %v3097_v17 = vld [vmem:[#allocation2 + $0x38] sm:$0xff]  ;;  %v8026_v46 = vmax.f32 %v8014_v58, %v3096_v55  ;;  %2941 = vst.msk [vmem:[#allocation2 + $0x48] sm:$0xff] %vm280_vm13, %v2909_v61  ;;  %v2687_v33 = vsel %vm1265_vm9, %v2667_v23, -inf  ;;  %v2814_v34 = vmax.f32 %v2590_v1, %v2494_v37  ;;  %v2783_v57 = vsel %vm1267_vm12, %v2763_v28, -inf  ;;  %vm10916_vm8 = vmmov %vm10890_vm0 }
 0x1d5   : > { %v8036_v29 = vmax.f32 %v8023_v60, %v3097_v17  ;;  %v2815_v52 = vmax.f32 %v2555_v14, %v2459_v7  ;;  %v2846_v56 = vmax.f32 %v2651_v20, %v2747_v43  ;;  %v1275_v48 = vpack.c.bf16 %v7562_v21, %v7393_v19 }
 0x1d6   : > { %v2847_v50 = vmax.f32 %v2687_v33, %v2783_v57  ;;  %v3034_v62 = vmax.f32 %v7453_v0, %v8014_v58  ;;  %v2005_v16 = vmax.f32 %v7883_v26, %v7983_v32  ;;  %v2036_v45 = vmax.f32 %v7859_v53, %v8003_v18  ;;  %v8062_v0 = vld [vmem:[#allocation2 + $0x68] sm:$0xff] }
 0x1d7   : > { %v3160_v63 = vmax.f32 %v7460_v6, %v8026_v46  ;;  %v3161_v30 = vmax.f32 %v7463_v9, %v8036_v29  ;;  %v2878_v19 = vmax.f32 %v2814_v34, %v2846_v56  ;;  %v3035_v21 = vmax.f32 %v7455_v41, %v8023_v60 }
 0x1d8   : > { %v2879_v26 = vmax.f32 %v2815_v52, %v2847_v50  ;;  %v2037_v59 = vmax.f32 %v1908_v3, %v2005_v16  ;;  %v8064_v31 = vmax.f32 %v2036_v45, %v2069_v25  ;;  %v8067_v53 = vmax.f32 %v7968_v51, %v2069_v25 }
 0x1d9   : > { %v2128_v36 = vpack.c.bf16 %v7989_v4, %v7974_v2  ;;  %v2910_v15 = vmax.f32 %v2878_v19, %v7974_v2  ;;  %v1276_v41 = vpack.c.bf16 %v6254_v54, %v6171_v44  ;;  %v1910_v27 = vmax.f32 %v7836_v12, %v8062_v0  ;;  %v8238_v54 = vld [vmem:[#allocation2 + $0x98] sm:$0xff] }
 0x1da   : > { %v8078_v7 = vld [vmem:[#allocation2 + $0x40] sm:$0xff]  ;;  %v2911_v3 = vmax.f32 %v2879_v26, %v7989_v4  ;;  %v2007_v51 = vmax.f32 %v7983_v32, %v8060_v38  ;;  %v2038_v49 = vmax.f32 %v7898_v42, %v8067_v53  ;;  %v1912_v14 = vmax.f32 %v8062_v0, %v8052_v8 }
 0x1db   : > { %v8087_v2 = vld [vmem:[#allocation2 + $0x48] sm:$0xff]  ;;  %v8090_v61 = vmax.f32 %v3160_v63, %v8078_v7  ;;  %2942 = vst.msk [vmem:[#allocation2 + $0x50] sm:$0xff] %vm280_vm13, %v2910_v15  ;;  %v8094_v58 = vmax.f32 %v3096_v55, %v8078_v7  ;;  %v8097_v4 = vmax.f32 %v2037_v59, %v8060_v38  ;;  %v8100_v37 = vmax.f32 %v2069_v25, %v8069_v10 }
 0x1dc   : > { %v8103_v11 = vmax.f32 %v3161_v30, %v8087_v2  ;;  %2943 = vst.msk [vmem:[#allocation2 + $0x58] sm:$0xff] %vm280_vm13, %v2911_v3  ;;  %v8107_v20 = vmax.f32 %v3097_v17, %v8087_v2  ;;  %v2428_v60 = vrot.slane %v8064_v31, 7  ;;  %v2524_v1 = vrot.slane %v8064_v31, 6  ;;  %5413 = vmatmul.msk.bf16.gmra.mxu2 %vm280_vm13, %v1275_v48 }
 0x1dd   : > { %v3446_v55 = vrot.slane %v8090_v61, 7  ;;  %v3542_v23 = vrot.slane %v8090_v61, 6  ;;  %v3638_v43 = vrot.slane %v8090_v61, 1  ;;  %v3734_v33 = vrot.slane %v8090_v61, 2 }
 0x1de   : > { %v3256_v28 = vpack.c.bf16 %v8103_v11, %v8090_v61  ;;  %v3462_v17 = vrot.slane %v8103_v11, 7  ;;  %v3558_v34 = vrot.slane %v8103_v11, 6  ;;  %v3654_v57 = vrot.slane %v8103_v11, 1 }
 0x1df   : > { %v3750_v52 = vrot.slane %v8103_v11, 2  ;;  %v3162_v56 = vmax.f32 %v3034_v62, %v8094_v58  ;;  %v3163_v25 = vmax.f32 %v3035_v21, %v8107_v20  ;;  %v2444_v50 = vrot.slane %v8097_v4, 7 }
 0x1e0   : > { %5423 = vmatmul.msk.bf16.vlgmr.msrb.gmra.mxu3 %vm280_vm13, %v3256_v28  ;;  %v3478_v48 = vsel %vm10728_vm1, %v3446_v55, %v3462_v17  ;;  %v3494_v16 = vsel %vm10728_vm1, %v3462_v17, %v3446_v55  ;;  %v3574_v45 = vsel %vm1414_vm2, %v3542_v23, %v3558_v34  ;;  %v3590_v63 = vsel %vm1414_vm2, %v3558_v34, %v3542_v23 }
 0x1e1   : > { %v3510_v62 = vsel %vm1260_vm5, %v3494_v16, -inf  ;;  %v3606_v30 = vsel %vm1262_vm6, %v3590_v63, -inf  ;;  %v3670_v19 = vsel %vm1511_vm7, %v3638_v43, %v3654_v57  ;;  %v3686_v21 = vsel %vm1511_vm7, %v3654_v57, %v3638_v43 }
 0x1e2   : > { %v3703_v26 = vsel %vm1265_vm9, %v3686_v21, -inf  ;;  %v3766_v59 = vsel %vm10910_vm3, %v3734_v33, %v3750_v52  ;;  %v3782_v15 = vsel %vm10911_vm11, %v3750_v52, %v3734_v33  ;;  %v3830_v3 = vmax.f32 %v3606_v30, %v3510_v62  ;;  %v8151_v17 = vld [vmem:[#allocation2 + $0x50] sm:$0xff]  ;;  %vm10917_vm3 = vmmov %vm10890_vm0 }
 0x1e3   : > { %5393 = vmatmul.msk.bf16.gmra.mxu1 %vm280_vm13, %v2128_v36  ;;  %v3799_v55 = vsel %vm1267_vm12, %v3782_v15, -inf  ;;  %v3831_v23 = vmax.f32 %v3574_v45, %v3478_v48  ;;  %v3862_v28 = vmax.f32 %v3670_v19, %v3766_v59  ;;  %v8153_v43 = vld [vmem:[#allocation2 + $0x58] sm:$0xff]  ;;  %v2620_v34 = vrot.slane %v8064_v31, 1  ;;  %vm10918_vm11 = vmmov %vm10890_vm0 }
 0x1e4   : > { %v3863_v57 = vmax.f32 %v3703_v26, %v3799_v55  ;;  %v8157_v16 = vmax.f32 %v3162_v56, %v8151_v17  ;;  %v8160_v33 = vmax.f32 %v3163_v25, %v8153_v43  ;;  %v2716_v36 = vrot.slane %v8064_v31, 2 }
 0x1e5   : > { %v3894_v52 = vmax.f32 %v3830_v3, %v3862_v28  ;;  %v2129_v48 = vpack.c.bf16 %v8097_v4, %v8064_v31  ;;  %v8167_v45 = vsel %vm10728_vm1, %v2428_v60, %v2444_v50  ;;  %v2476_v63 = vsel %vm10728_vm1, %v2444_v50, %v2428_v60 }
 0x1e6   : > { %v3895_v62 = vmax.f32 %v3831_v23, %v3863_v57  ;;  %v3257_v56 = vpack.c.bf16 %v8160_v33, %v8157_v16  ;;  %v3447_v25 = vrot.slane %v8157_v16, 7  ;;  %v2540_v30 = vrot.slane %v8097_v4, 6 }
 0x1e7   : > { %v3926_v19 = vmax.f32 %v3894_v52, %v8090_v61  ;;  %v3463_v21 = vrot.slane %v8160_v33, 7  ;;  %v3543_v26 = vrot.slane %v8157_v16, 6  ;;  %v3559_v59 = vrot.slane %v8160_v33, 6 }
 0x1e8   : > { %v3927_v15 = vmax.f32 %v3895_v62, %v8103_v11  ;;  %v3639_v60 = vrot.slane %v8157_v16, 1  ;;  %v3655_v50 = vrot.slane %v8160_v33, 1  ;;  %v3735_v3 = vrot.slane %v8157_v16, 2 }
 0x1e9   : > { %v3479_v55 = vsel %vm10728_vm1, %v3447_v25, %v3463_v21  ;;  %v3495_v61 = vsel %vm10728_vm1, %v3463_v21, %v3447_v25  ;;  %v3575_v23 = vsel %vm1414_vm2, %v3543_v26, %v3559_v59  ;;  %v3591_v28 = vsel %vm1414_vm2, %v3559_v59, %v3543_v26  ;;  %3958 = vst.msk [vmem:[#allocation2 + $0x20] sm:$0xff] %vm280_vm13, %v3926_v19 }
 0x1ea   : > { %v3512_v11 = vsel %vm1260_vm5, %v3495_v61, -inf  ;;  %v3608_v57 = vsel %vm1262_vm6, %v3591_v28, -inf  ;;  %v3671_v52 = vsel %vm1511_vm7, %v3639_v60, %v3655_v50  ;;  %v3687_v62 = vsel %vm1511_vm7, %v3655_v50, %v3639_v60  ;;  %3959 = vst.msk [vmem:[#allocation2 + $0x28] sm:$0xff] %vm280_vm13, %v3927_v15 }
 0x1eb   : > { %v3705_v25 = vsel %vm1265_vm9, %v3687_v62, -inf  ;;  %v3751_v21 = vrot.slane %v8160_v33, 2  ;;  %v3832_v19 = vmax.f32 %v3608_v57, %v3512_v11  ;;  %v3833_v26 = vmax.f32 %v3575_v23, %v3479_v55 }
 0x1ec   : > { %v2496_v59 = vsel %vm1260_vm5, %v2476_v63, -inf  ;;  %v2556_v61 = vsel %vm1414_vm2, %v2524_v1, %v2540_v30  ;;  %v2572_v15 = vsel %vm1414_vm2, %v2540_v30, %v2524_v1  ;;  %v2636_v60 = vrot.slane %v8097_v4, 1  ;;  %5414 = vmatmul.msk.bf16.gmra.mxu2 %vm280_vm13, %v1276_v41 }
 0x1ed   : > { %v3767_v50 = vsel %vm10912_vm14, %v3735_v3, %v3751_v21  ;;  %v3783_v55 = vsel %vm10913_vm15, %v3751_v21, %v3735_v3  ;;  %v2592_v63 = vsel %vm1262_vm6, %v2572_v15, -inf  ;;  %v2732_v23 = vrot.slane %v8097_v4, 2  ;;  %vm10919_vm14 = vmmov %vm10890_vm0 }
 0x1ee   : > { %v3801_v1 = vsel %vm1267_vm12, %v3783_v55, -inf  ;;  %v3864_v30 = vmax.f32 %v3671_v52, %v3767_v50  ;;  %v2652_v28 = vsel %vm1511_vm7, %v2620_v34, %v2636_v60  ;;  %v2668_v3 = vsel %vm1511_vm7, %v2636_v60, %v2620_v34  ;;  %vm10920_vm15 = vmmov %vm10890_vm0 }
 0x1ef   : > { %v3865_v11 = vmax.f32 %v3705_v25, %v3801_v1  ;;  %v2689_v57 = vsel %vm1265_vm9, %v2668_v3, -inf  ;;  %v2748_v62 = vsel %vm10890_vm0, %v2716_v36, %v2732_v23  ;;  %v2764_v44 = vsel %vm10914_vm10, %v2732_v23, %v2716_v36  ;;  %vm10921_vm10 = vmmov %vm10890_vm0 }
 0x1f0   : > { %5424 = vmatmul.msk.bf16.gmra.mxu3 %vm280_vm13, %v3257_v56  ;;  %v3896_v41 = vmax.f32 %v3832_v19, %v3864_v30  ;;  %v2785_v52 = vsel %vm1267_vm12, %v2764_v44, -inf  ;;  %v2816_v21 = vmax.f32 %v2592_v63, %v2496_v59  ;;  %v2817_v34 = vmax.f32 %v2556_v61, %v8167_v45 }
 0x1f1   : > { %v3897_v25 = vmax.f32 %v3833_v26, %v3865_v11  ;;  %v2848_v15 = vmax.f32 %v2652_v28, %v2748_v62  ;;  %v2849_v60 = vmax.f32 %v2689_v57, %v2785_v52  ;;  %v2039_v36 = vmax.f32 %v1910_v27, %v2007_v51  ;;  %v8313_v11 = vld [vmem:[#allocation2 + $0x88] sm:$0xff]  ;;  %v8315_v57 = vld [vmem:[#allocation2 + $0x20] sm:$0xff] }
 0x1f2   : > { %v8252_v56 = vmax.f32 %v8078_v7, %v8151_v17  ;;  %v3928_v19 = vmax.f32 %v3896_v41, %v8157_v16  ;;  %v8260_v45 = vmax.f32 %v2038_v49, %v8069_v10  ;;  %v2009_v32 = vmax.f32 %v8060_v38, %v8238_v54 }
 0x1f3   : > { %5394 = vmatmul.msk.bf16.gmra.mxu1 %vm280_vm13, %v2129_v48  ;;  %v3929_v12 = vmax.f32 %v3897_v25, %v8160_v33  ;;  %v2880_v27 = vmax.f32 %v2816_v21, %v2848_v15  ;;  %v2881_v51 = vmax.f32 %v2817_v34, %v2849_v60  ;;  %v8266_v7 = vmax.f32 %v2039_v36, %v8238_v54  ;;  %v8321_v21 = vld [vmem:[#allocation2 + $0x10] sm:$0xff] }
 0x1f4   : > { %v8270_v16 = vmax.f32 %v8087_v2, %v8153_v43  ;;  %3960 = vst.msk [vmem:[#allocation2 + $0x30] sm:$0xff] %vm280_vm13, %v3928_v19  ;;  %v2429_v42 = vrot.slane %v8260_v45, 7  ;;  %v2525_v49 = vrot.slane %v8260_v45, 6  ;;  %v2621_v48 = vrot.slane %v8260_v45, 1  ;;  %v8329_v19 = vld [vmem:[#allocation2 + $0xa0] sm:$0xff] }
 0x1f5   : > { %3961 = vst.msk [vmem:[#allocation2 + $0x38] sm:$0xff] %vm280_vm13, %v3929_v12  ;;  %v2912_v38 = vmax.f32 %v2880_v27, %v8064_v31  ;;  %v2913_v33 = vmax.f32 %v2881_v51, %v8097_v4  ;;  %v2445_v26 = vrot.slane %v8266_v7, 7  ;;  %v2717_v59 = vrot.slane %v8260_v45, 2 }
 0x1f6   : > { %v3164_v2 = vmax.f32 %v8026_v46, %v8252_v56  ;;  %v2541_v61 = vrot.slane %v8266_v7, 6  ;;  %v2637_v50 = vrot.slane %v8266_v7, 1  ;;  %v2733_v55 = vrot.slane %v8266_v7, 2 }
 0x1f7   : > { %2944 = vst.msk [vmem:[#allocation2 + $0x60] sm:$0xff] %vm280_vm13, %v2912_v38  ;;  %v2461_v31 = vsel %vm10728_vm1, %v2429_v42, %v2445_v26  ;;  %v2477_v4 = vsel %vm10728_vm1, %v2445_v26, %v2429_v42  ;;  %v2040_v63 = vmax.f32 %v8003_v18, %v8100_v37  ;;  %v2041_v46 = vmax.f32 %v1912_v14, %v2009_v32  ;;  %v8331_v32 = vld [vmem:[#allocation2 + $0xa8] sm:$0xff] }
 0x1f8   : > { %2945 = vst.msk [vmem:[#allocation2 + $0x68] sm:$0xff] %vm280_vm13, %v2913_v33  ;;  %v2498_v23 = vsel %vm1260_vm5, %v2477_v4, -inf  ;;  %v2557_v1 = vsel %vm1414_vm2, %v2525_v49, %v2541_v61  ;;  %v2573_v30 = vsel %vm1414_vm2, %v2541_v61, %v2525_v49  ;;  %v2653_v28 = vsel %vm1511_vm7, %v2621_v48, %v2637_v50 }
 0x1f9   : > { %v2594_v18 = vsel %vm1262_vm6, %v2573_v30, -inf  ;;  %v2669_v0 = vsel %vm1511_vm7, %v2637_v50, %v2621_v48  ;;  %v2749_v14 = vsel %vm10915_vm4, %v2717_v59, %v2733_v55  ;;  %v2765_v3 = vsel %vm10916_vm8, %v2733_v55, %v2717_v59  ;;  %vm10927_vm4 = vmmov %vm10890_vm0 }
 0x1fa   : > { %v2691_v62 = vsel %vm1265_vm9, %v2669_v0, -inf  ;;  %v2787_v44 = vsel %vm1267_vm12, %v2765_v3, -inf  ;;  %v2818_v41 = vmax.f32 %v2594_v18, %v2498_v23  ;;  %v2819_v52 = vmax.f32 %v2557_v1, %v2461_v31  ;;  %vm10928_vm8 = vmmov %vm10890_vm0 }
 0x1fb   : > { %v3165_v34 = vmax.f32 %v8036_v29, %v8270_v16  ;;  %v8325_v25 = vld [vmem:[#allocation2 + $0x30] sm:$0xff]  ;;  %v2850_v15 = vmax.f32 %v2653_v28, %v2749_v14  ;;  %v2851_v60 = vmax.f32 %v2691_v62, %v2787_v44  ;;  %v1277_v36 = vpack.c.bf16 %v6684_v13, %v6483_v24  ;;  %v8347_v24 = vld [vmem:[#allocation2 + $0x28] sm:$0xff] }
 0x1fc   : > { %v8333_v12 = vld [vmem:[#allocation2 + $0x38] sm:$0xff]  ;;  %v8337_v27 = vmax.f32 %v8315_v57, %v8325_v25  ;;  %v2130_v29 = vpack.c.bf16 %v8266_v7, %v8260_v45  ;;  %v8342_v51 = vmax.f32 %v2040_v63, %v8329_v19  ;;  %v8345_v42 = vmax.f32 %v2041_v46, %v8331_v32 }
 0x1fd   : > { %v2882_v13 = vmax.f32 %v2818_v41, %v2850_v15  ;;  %v2883_v49 = vmax.f32 %v2819_v52, %v2851_v60  ;;  %5415 = vmatmul.msk.bf16.gmra.mxu2 %vm280_vm13, %v1277_v36  ;;  %v8358_v26 = vmax.f32 %v8347_v24, %v8333_v12  ;;  %v8363_v61 = vmax.f32 %v8069_v10, %v8329_v19 }
 0x1fe   : > { %v8354_v33 = vld [vmem:[#allocation2 + $0x60] sm:$0xff]  ;;  %v2430_v59 = vrot.slane %v8342_v51, 7  ;;  %v2446_v46 = vrot.slane %v8345_v42, 7  ;;  %v4182_v10 = vmax.f32 %v7460_v6, %v8337_v27 }
 0x1ff   : > { %v8367_v55 = vld [vmem:[#allocation2 + $0x68] sm:$0xff]  ;;  %v8370_v31 = vmax.f32 %v3164_v2, %v8354_v33  ;;  %v2914_v4 = vmax.f32 %v2882_v13, %v8260_v45  ;;  %v2915_v63 = vmax.f32 %v2883_v49, %v8266_v7  ;;  %v8382_v1 = vmax.f32 %v8151_v17, %v8354_v33 }
 0x200   : > { %v8376_v23 = vmax.f32 %v3165_v34, %v8367_v55  ;;  %v8386_v2 = vmax.f32 %v8153_v43, %v8367_v55  ;;  %v2478_v44 = vsel %vm10728_vm1, %v2446_v46, %v2430_v59 }
 0x201   : > { %v3448_v45 = vrot.slane %v8370_v31, 7  ;;  %v3544_v7 = vrot.slane %v8370_v31, 6  ;;  %v3640_v30 = vrot.slane %v8370_v31, 1  ;;  %v3736_v28 = vrot.slane %v8370_v31, 2  ;;  %2946 = vst.msk [vmem:[#allocation2 + $0x70] sm:$0xff] %vm280_vm13, %v2914_v4 }
 0x202   : > { %v3464_v18 = vrot.slane %v8376_v23, 7  ;;  %v3560_v0 = vrot.slane %v8376_v23, 6  ;;  %v3656_v17 = vrot.slane %v8376_v23, 1  ;;  %v3752_v14 = vrot.slane %v8376_v23, 2  ;;  %2947 = vst.msk [vmem:[#allocation2 + $0x78] sm:$0xff] %vm280_vm13, %v2915_v63 }
 0x203   : > { %5395 = vmatmul.msk.bf16.gmra.mxu1 %vm280_vm13, %v2130_v29  ;;  %v3258_v43 = vpack.c.bf16 %v8376_v23, %v8370_v31  ;;  %v3166_v3 = vmax.f32 %v8094_v58, %v8382_v1  ;;  %v3167_v62 = vmax.f32 %v8107_v20, %v8386_v2 }
 0x204   : > { %v3480_v41 = vsel %vm10728_vm1, %v3448_v45, %v3464_v18  ;;  %v3496_v52 = vsel %vm10728_vm1, %v3464_v18, %v3448_v45  ;;  %v3576_v34 = vsel %vm1414_vm2, %v3544_v7, %v3560_v0  ;;  %v3592_v58 = vsel %vm1414_vm2, %v3560_v0, %v3544_v7 }
 0x205   : > { %v3514_v20 = vsel %vm1260_vm5, %v3496_v52, -inf  ;;  %v3610_v15 = vsel %vm1262_vm6, %v3592_v58, -inf  ;;  %v3672_v60 = vsel %vm1511_vm7, %v3640_v30, %v3656_v17  ;;  %v3688_v36 = vsel %vm1511_vm7, %v3656_v17, %v3640_v30  ;;  %5425 = vmatmul.msk.bf16.gmra.mxu3 %vm280_vm13, %v3258_v43 }
 0x206   : > { %v3707_v29 = vsel %vm1265_vm9, %v3688_v36, -inf  ;;  %v3768_v13 = vsel %vm10917_vm3, %v3736_v28, %v3752_v14  ;;  %v3784_v49 = vsel %vm10918_vm11, %v3752_v14, %v3736_v28  ;;  %v3834_v4 = vmax.f32 %v3610_v15, %v3514_v20  ;;  %vm10929_vm3 = vmmov %vm10890_vm0 }
 0x207   : > { %v3803_v63 = vsel %vm1267_vm12, %v3784_v49, -inf  ;;  %v3835_v45 = vmax.f32 %v3576_v34, %v3480_v41  ;;  %v3866_v7 = vmax.f32 %v3672_v60, %v3768_v13  ;;  %v2131_v30 = vpack.c.bf16 %v8345_v42, %v8342_v51  ;;  %vm10930_vm11 = vmmov %vm10890_vm0 }
 0x208   : > { %v3867_v18 = vmax.f32 %v3707_v29, %v3803_v63  ;;  %v4183_v0 = vmax.f32 %v7463_v9, %v8358_v26  ;;  %v8440_v17 = vld [vmem:[#allocation2 + $0x70] sm:$0xff]  ;;  %v2526_v43 = vrot.slane %v8342_v51, 6  ;;  %v2542_v52 = vrot.slane %v8345_v42, 6 }
 0x209   : > { %v3898_v28 = vmax.f32 %v3834_v4, %v3866_v7  ;;  %v8444_v14 = vld [vmem:[#allocation2 + $0x78] sm:$0xff]  ;;  %v8447_v58 = vmax.f32 %v3166_v3, %v8440_v17  ;;  %v8451_v41 = vsel %vm1260_vm5, %v2478_v44, -inf  ;;  %v2622_v34 = vrot.slane %v8342_v51, 1 }
 0x20a   : > { %v3899_v20 = vmax.f32 %v3835_v45, %v3867_v18  ;;  %v8455_v15 = vmax.f32 %v3167_v62, %v8444_v14  ;;  %v2574_v60 = vsel %vm1414_vm2, %v2542_v52, %v2526_v43  ;;  %v2638_v36 = vrot.slane %v8345_v42, 1 }
 0x20b   : > { %v3930_v29 = vmax.f32 %v3898_v28, %v8370_v31  ;;  %v3449_v3 = vrot.slane %v8447_v58, 7  ;;  %v3545_v13 = vrot.slane %v8447_v58, 6  ;;  %v3641_v44 = vrot.slane %v8447_v58, 1 }
 0x20c   : > { %v3931_v49 = vmax.f32 %v3899_v20, %v8376_v23  ;;  %v3465_v4 = vrot.slane %v8455_v15, 7  ;;  %v3561_v62 = vrot.slane %v8455_v15, 6  ;;  %v3657_v63 = vrot.slane %v8455_v15, 1 }
 0x20d   : > { %3962 = vst.msk [vmem:[#allocation2 + $0x40] sm:$0xff] %vm280_vm13, %v3930_v29  ;;  %v3737_v45 = vrot.slane %v8447_v58, 2  ;;  %v3753_v31 = vrot.slane %v8455_v15, 2  ;;  %v2596_v7 = vsel %vm1262_vm6, %v2574_v60, -inf  ;;  %v2718_v18 = vrot.slane %v8342_v51, 2 }
 0x20e   : > { %3963 = vst.msk [vmem:[#allocation2 + $0x48] sm:$0xff] %vm280_vm13, %v3931_v49  ;;  %v3481_v23 = vsel %vm10728_vm1, %v3449_v3, %v3465_v4  ;;  %v3497_v28 = vsel %vm10728_vm1, %v3465_v4, %v3449_v3  ;;  %v3577_v20 = vsel %vm1414_vm2, %v3545_v13, %v3561_v62  ;;  %v3593_v29 = vsel %vm1414_vm2, %v3561_v62, %v3545_v13 }
 0x20f   : > { %v3516_v48 = vsel %vm1260_vm5, %v3497_v28, -inf  ;;  %v3612_v60 = vsel %vm1262_vm6, %v3593_v29, -inf  ;;  %v3673_v49 = vsel %vm1511_vm7, %v3641_v44, %v3657_v63  ;;  %v3689_v38 = vsel %vm1511_vm7, %v3657_v63, %v3641_v44 }
 0x210   : > { %v3709_v3 = vsel %vm1265_vm9, %v3689_v38, -inf  ;;  %v3769_v4 = vsel %vm10919_vm14, %v3737_v45, %v3753_v31  ;;  %v3785_v13 = vsel %vm10920_vm15, %v3753_v31, %v3737_v45  ;;  %v3836_v62 = vmax.f32 %v3612_v60, %v3516_v48  ;;  %vm10931_vm14 = vmmov %vm10890_vm0 }
 0x211   : > { %v3805_v28 = vsel %vm1267_vm12, %v3785_v13, -inf  ;;  %v3837_v29 = vmax.f32 %v3577_v20, %v3481_v23  ;;  %v3868_v50 = vmax.f32 %v3673_v49, %v3769_v4  ;;  %v2462_v44 = vsel %vm10728_vm1, %v2430_v59, %v2446_v46  ;;  %v3993_v23 = vld [vmem:[#allocation2 + $0x18] sm:$0xff]  ;;  %vm10932_vm15 = vmmov %vm10890_vm0 }
 0x212   : > { %v3869_v38 = vmax.f32 %v3709_v3, %v3805_v28  ;;  %v2558_v63 = vsel %vm1414_vm2, %v2526_v43, %v2542_v52  ;;  %v2670_v48 = vsel %vm1511_vm7, %v2638_v36, %v2622_v34  ;;  %v2734_v45 = vrot.slane %v8345_v42, 2  ;;  %v8534_v3 = vld [vmem:[#allocation2 + $0x98] sm:$0xff] }
 0x213   : > { %5396 = vmatmul.msk.bf16.gmra.mxu1 %vm280_vm13, %v2131_v30  ;;  %v3900_v31 = vmax.f32 %v3836_v62, %v3868_v50  ;;  %v3259_v20 = vpack.c.bf16 %v8455_v15, %v8447_v58  ;;  %v2654_v60 = vsel %vm1511_vm7, %v2622_v34, %v2638_v36  ;;  %v2820_v59 = vmax.f32 %v2596_v7, %v8451_v41 }
 0x214   : > { %v8516_v46 = vld [vmem:[#allocation2 + $0x40] sm:$0xff]  ;;  %v3901_v30 = vmax.f32 %v3837_v29, %v3869_v38  ;;  %v2693_v43 = vsel %vm1265_vm9, %v2670_v48, -inf  ;;  %v2750_v52 = vsel %vm10890_vm0, %v2718_v18, %v2734_v45  ;;  %v2766_v50 = vsel %vm10921_vm10, %v2734_v45, %v2718_v18  ;;  %vm10933_vm10 = vmmov %vm10890_vm0 }
 0x215   : > { %v8524_v49 = vld [vmem:[#allocation2 + $0x48] sm:$0xff]  ;;  %v4246_v34 = vmax.f32 %v4182_v10, %v8516_v46  ;;  %v3932_v41 = vmax.f32 %v3900_v31, %v8447_v58  ;;  %5426 = vmatmul.msk.bf16.gmra.mxu3 %vm280_vm13, %v3259_v20  ;;  %v2789_v36 = vsel %vm1267_vm12, %v2766_v50, -inf  ;;  %v2821_v7 = vmax.f32 %v2558_v63, %v2462_v44  ;;  %v10922_v29 = vld [vmem:[#allocation7_spill] sm:$0xff]  ;;  %v10923_v44 = vld [vmem:[#allocation9_spill] sm:$0xff] }
 0x216   : > { %v4247_v18 = vmax.f32 %v4183_v0, %v8524_v49  ;;  %v3933_v4 = vmax.f32 %v3901_v30, %v8455_v15  ;;  %v4057_v6 = vmax.f32 %v3993_v23, %v8347_v24  ;;  %v2852_v10 = vmax.f32 %v2654_v60, %v2750_v52  ;;  %v2075_v0 = vld [vmem:[#allocation2 + $0xb0] sm:$0xff]  ;;  %v8555_v15 = vld [vmem:[#allocation2 + $0xb8] sm:$0xff]  ;;  %v8600_v30 = vld [vmem:[#allocation2 + $0xc0] sm:$0xff] }
 0x217   : > { %3964 = vst.msk [vmem:[#allocation2 + $0x50] sm:$0xff] %vm280_vm13, %v3932_v41  ;;  %v8545_v58 = vmax.f32 %v8325_v25, %v8516_v46  ;;  %v2853_v13 = vmax.f32 %v2693_v43, %v2789_v36  ;;  %v8549_v62 = vmax.f32 %v8354_v33, %v8440_v17  ;;  %v8553_v9 = vmax.f32 %v8367_v55, %v8444_v14  ;;  %v8564_v33 = vld [vmem:[#allocation2 + $0xa8] sm:$0xff] }
 0x218   : > { %v4278_v24 = vpack.c.bf16 %v4247_v18, %v4246_v34  ;;  %3965 = vst.msk [vmem:[#allocation2 + $0x58] sm:$0xff] %vm280_vm13, %v3933_v4  ;;  %v8560_v28 = vmax.f32 %v8333_v12, %v8524_v49  ;;  %v2884_v25 = vmax.f32 %v2820_v59, %v2852_v10  ;;  %v1278_v38 = vpack.c.bf16 %v10923_v44, %v10922_v29 }
 0x219   : > { %v2885_v63 = vmax.f32 %v2821_v7, %v2853_v13  ;;  %v2042_v55 = vmax.f32 %v8067_v53, %v8363_v61  ;;  %v10924_v48 = vmax.f32 %v8238_v54, %v8331_v32  ;;  %v10925_v45 = vmax.f32 %v8052_v8, %v8313_v11 }
 0x21a   : > { %v1916_v12 = vmax.f32 %v8313_v11, %v8534_v3  ;;  %5440 = vmatmul.msk.bf16.vlgmr.msrb.gmra.mxu0 %vm280_vm13, %v4278_v24  ;;  %v2916_v23 = vmax.f32 %v2884_v25, %v8342_v51  ;;  %5416 = vmatmul.msk.bf16.gmra.mxu2 %vm280_vm13, %v1278_v38  ;;  %v8580_v20 = vmax.f32 %v8329_v19, %v2075_v0 }
 0x21b   : > { %v2043_v31 = vmax.f32 %v10925_v45, %v10924_v48  ;;  %v2013_v53 = vmax.f32 %v8331_v32, %v8555_v15  ;;  %v10926_v8 = vmax.f32 %v8321_v21, %v8315_v57  ;;  %v2917_v60 = vmax.f32 %v2885_v63, %v8345_v42  ;;  %v8602_v57 = vld [vmem:[#allocation2 + $0xc8] sm:$0xff] }
 0x21c   : > { %v8589_v11 = vmax.f32 %v2042_v55, %v2075_v0  ;;  %v4185_v51 = vmax.f32 %v4057_v6, %v8560_v28  ;;  %2948 = vst.msk [vmem:[#allocation2 + $0x80] sm:$0xff] %vm280_vm13, %v2916_v23  ;;  %v3168_v19 = vmax.f32 %v8252_v56, %v8549_v62  ;;  %v3169_v32 = vmax.f32 %v8270_v16, %v8553_v9 }
 0x21d   : > { %v4184_v54 = vmax.f32 %v10926_v8, %v8545_v58  ;;  %v8592_v59 = vmax.f32 %v2043_v31, %v8555_v15  ;;  %v1918_v21 = vmax.f32 %v8534_v3, %v8564_v33  ;;  %2949 = vst.msk [vmem:[#allocation2 + $0x88] sm:$0xff] %vm280_vm13, %v2917_v60  ;;  %v2044_v56 = vmax.f32 %v8100_v37, %v8580_v20 }
 0x21e   : > { %v2431_v42 = vrot.slane %v8589_v11, 7  ;;  %v2527_v52 = vrot.slane %v8589_v11, 6  ;;  %v8612_v50 = vld [vmem:[#allocation2 + $0x50] sm:$0xff]  ;;  %v2623_v34 = vrot.slane %v8589_v11, 1  ;;  %v2045_v36 = vmax.f32 %v1916_v12, %v2013_v53 }
 0x21f   : > { %v2447_v43 = vrot.slane %v8592_v59, 7  ;;  %v2543_v16 = vrot.slane %v8592_v59, 6  ;;  %v2639_v41 = vrot.slane %v8592_v59, 1  ;;  %v8617_v7 = vld [vmem:[#allocation2 + $0x58] sm:$0xff]  ;;  %v4248_v18 = vmax.f32 %v4184_v54, %v8612_v50 }
 0x220   : > { %v8623_v6 = vmax.f32 %v2075_v0, %v8600_v30  ;;  %v2015_v37 = vmax.f32 %v8555_v15, %v8602_v57  ;;  %v4249_v10 = vmax.f32 %v4185_v51, %v8617_v7  ;;  %v2132_v13 = vpack.c.bf16 %v8592_v59, %v8589_v11 }
 0x221   : > { %v2479_v4 = vsel %vm10728_vm1, %v2447_v43, %v2431_v42  ;;  %v2719_v25 = vrot.slane %v8589_v11, 2  ;;  %v2463_v29 = vsel %vm10728_vm1, %v2431_v42, %v2447_v43  ;;  %v2559_v0 = vsel %vm1414_vm2, %v2527_v52, %v2543_v16 }
 0x222   : > { %v2502_v24 = vsel %vm1260_vm5, %v2479_v4, -inf  ;;  %v2575_v44 = vsel %vm1414_vm2, %v2543_v16, %v2527_v52  ;;  %v2671_v38 = vsel %vm1511_vm7, %v2639_v41, %v2623_v34  ;;  %v8643_v63 = vmax.f32 %v8516_v46, %v8612_v50 }
 0x223   : > { %v8647_v55 = vmax.f32 %v8524_v49, %v8617_v7  ;;  %5397 = vmatmul.msk.bf16.gmra.mxu1 %vm280_vm13, %v2132_v13  ;;  %v2598_v48 = vsel %vm1262_vm6, %v2575_v44, -inf  ;;  %v2655_v45 = vsel %vm1511_vm7, %v2623_v34, %v2639_v41  ;;  %v4279_v31 = vpack.c.bf16 %v4249_v10, %v4248_v18  ;;  %v8654_v12 = vld [vmem:[#allocation2 + $0x80] sm:$0xff] }
 0x224   : > { %v2695_v23 = vsel %vm1265_vm9, %v2671_v38, -inf  ;;  %v2735_v46 = vrot.slane %v8592_v59, 2  ;;  %v2822_v53 = vmax.f32 %v2598_v48, %v2502_v24  ;;  %v8659_v8 = vld [vmem:[#allocation2 + $0x88] sm:$0xff]  ;;  %v3232_v49 = vmax.f32 %v3168_v19, %v8654_v12 }
 0x225   : > { %v2823_v54 = vmax.f32 %v2559_v0, %v2463_v29  ;;  %v8664_v60 = vmax.f32 %v8440_v17, %v8654_v12  ;;  %v8667_v51 = vmax.f32 %v2044_v56, %v8600_v30  ;;  %v8670_v42 = vmax.f32 %v3169_v32, %v8659_v8 }
 0x226   : > { %v2751_v43 = vsel %vm10927_vm4, %v2719_v25, %v2735_v46  ;;  %v2767_v52 = vsel %vm10928_vm8, %v2735_v46, %v2719_v25  ;;  %v8677_v16 = vmax.f32 %v2045_v36, %v8602_v57  ;;  %v3450_v19 = vrot.slane %v3232_v49, 7  ;;  %vm10936_vm4 = vmmov %vm10890_vm0 }
 0x227   : > { %v3546_v34 = vrot.slane %v3232_v49, 6  ;;  %v3642_v41 = vrot.slane %v3232_v49, 1  ;;  %v3738_v17 = vrot.slane %v3232_v49, 2  ;;  %v3466_v18 = vrot.slane %v8670_v42, 7  ;;  %vm10937_vm8 = vmmov %vm10890_vm0 }
 0x228   : > { %v3562_v56 = vrot.slane %v8670_v42, 6  ;;  %v3658_v32 = vrot.slane %v8670_v42, 1  ;;  %v3754_v4 = vrot.slane %v8670_v42, 2  ;;  %v3260_v10 = vpack.c.bf16 %v8670_v42, %v3232_v49 }
 0x229   : > { %v2791_v13 = vsel %vm1267_vm12, %v2767_v52, -inf  ;;  %v2854_v24 = vmax.f32 %v2655_v45, %v2751_v43  ;;  %v2046_v36 = vmax.f32 %v8363_v61, %v8623_v6  ;;  %v3482_v25 = vsel %vm10728_vm1, %v3450_v19, %v3466_v18 }
 0x22a   : > { %v3498_v29 = vsel %vm10728_vm1, %v3466_v18, %v3450_v19  ;;  %v3578_v0 = vsel %vm1414_vm2, %v3546_v34, %v3562_v56  ;;  %v3594_v44 = vsel %vm1414_vm2, %v3562_v56, %v3546_v34  ;;  %5441 = vmatmul.msk.bf16.gmra.mxu0 %vm280_vm13, %v4279_v31  ;;  %v3674_v48 = vsel %vm1511_vm7, %v3642_v41, %v3658_v32 }
 0x22b   : > { %v3518_v38 = vsel %vm1260_vm5, %v3498_v29, -inf  ;;  %v3614_v61 = vsel %vm1262_vm6, %v3594_v44, -inf  ;;  %v3690_v45 = vsel %vm1511_vm7, %v3658_v32, %v3642_v41  ;;  %5427 = vmatmul.msk.bf16.gmra.mxu3 %vm280_vm13, %v3260_v10  ;;  %v3770_v31 = vsel %vm10929_vm3, %v3738_v17, %v3754_v4  ;;  %vm10938_vm3 = vmmov %vm10890_vm0 }
 0x22c   : > { %v3711_v46 = vsel %vm1265_vm9, %v3690_v45, -inf  ;;  %v3786_v43 = vsel %vm10930_vm11, %v3754_v4, %v3738_v17  ;;  %v3838_v52 = vmax.f32 %v3614_v61, %v3518_v38  ;;  %v3839_v34 = vmax.f32 %v3578_v0, %v3482_v25  ;;  %vm10939_vm11 = vmmov %vm10890_vm0 }
 0x22d   : > { %v3807_v19 = vsel %vm1267_vm12, %v3786_v43, -inf  ;;  %v3870_v18 = vmax.f32 %v3674_v48, %v3770_v31  ;;  %v2855_v56 = vmax.f32 %v2695_v23, %v2791_v13  ;;  %v2886_v41 = vmax.f32 %v2822_v53, %v2854_v24  ;;  %v8746_v48 = vld [vmem:[#allocation2 + $0xd0] sm:$0xff] }
 0x22e   : > { %v3871_v29 = vmax.f32 %v3711_v46, %v3807_v19  ;;  %v8716_v32 = vmax.f32 %v8444_v14, %v8659_v8  ;;  %v1279_v10 = vpack.c.bf16 %v7704_v22, %v7441_v39  ;;  %v2133_v17 = vpack.c.bf16 %v8677_v16, %v8667_v51  ;;  %v8756_v19 = vld [vmem:[#allocation2 + $0xd8] sm:$0xff] }
 0x22f   : > { %v3902_v44 = vmax.f32 %v3838_v52, %v3870_v18  ;;  %v2887_v45 = vmax.f32 %v2823_v54, %v2855_v56  ;;  %v2432_v4 = vrot.slane %v8667_v51, 7  ;;  %v2918_v25 = vmax.f32 %v2886_v41, %v8589_v11 }
 0x230   : > { %v3903_v38 = vmax.f32 %v3839_v34, %v3871_v29  ;;  %5417 = vmatmul.msk.bf16.gmra.mxu2 %vm280_vm13, %v1279_v10  ;;  %v2448_v23 = vrot.slane %v8677_v16, 7  ;;  %v2528_v14 = vrot.slane %v8667_v51, 6  ;;  %v2544_v39 = vrot.slane %v8677_v16, 6 }
 0x231   : > { %v3934_v53 = vmax.f32 %v3902_v44, %v3232_v49  ;;  %v2919_v13 = vmax.f32 %v2887_v45, %v8592_v59  ;;  %v2624_v22 = vrot.slane %v8667_v51, 1  ;;  %2950 = vst.msk [vmem:[#allocation2 + $0x90] sm:$0xff] %vm280_vm13, %v2918_v25  ;;  %v2640_v0 = vrot.slane %v8677_v16, 1 }
 0x232   : > { %v3935_v54 = vmax.f32 %v3903_v38, %v8670_v42  ;;  %v2464_v11 = vsel %vm10728_vm1, %v2432_v4, %v2448_v23  ;;  %v2480_v24 = vsel %vm10728_vm1, %v2448_v23, %v2432_v4  ;;  %v2560_v49 = vsel %vm1414_vm2, %v2528_v14, %v2544_v39 }
 0x233   : > { %3966 = vst.msk [vmem:[#allocation2 + $0x60] sm:$0xff] %vm280_vm13, %v3934_v53  ;;  %5398 = vmatmul.msk.bf16.gmra.mxu1 %vm280_vm13, %v2133_v17  ;;  %v2504_v59 = vsel %vm1260_vm5, %v2480_v24, -inf  ;;  %v2576_v42 = vsel %vm1414_vm2, %v2544_v39, %v2528_v14  ;;  %v2720_v61 = vrot.slane %v8667_v51, 2  ;;  %v2656_v31 = vsel %vm1511_vm7, %v2624_v22, %v2640_v0 }
 0x234   : > { %3967 = vst.msk [vmem:[#allocation2 + $0x68] sm:$0xff] %vm280_vm13, %v3935_v54  ;;  %v2600_v46 = vsel %vm1262_vm6, %v2576_v42, -inf  ;;  %v2672_v43 = vsel %vm1511_vm7, %v2640_v0, %v2624_v22  ;;  %v2736_v52 = vrot.slane %v8677_v16, 2  ;;  %v3170_v34 = vmax.f32 %v8382_v1, %v8664_v60 }
 0x235   : > { %2951 = vst.msk [vmem:[#allocation2 + $0x98] sm:$0xff] %vm280_vm13, %v2919_v13  ;;  %v2697_v18 = vsel %vm1265_vm9, %v2672_v43, -inf  ;;  %v2824_v56 = vmax.f32 %v2600_v46, %v2504_v59  ;;  %v2047_v29 = vmax.f32 %v1918_v21, %v2015_v37  ;;  %v2825_v44 = vmax.f32 %v2560_v49, %v2464_v11  ;;  %v8828_v43 = vpop.f32.mrf.mxu2 }
 0x236   : > { %v2752_v41 = vsel %vm10931_vm14, %v2720_v61, %v2736_v52  ;;  %v2768_v10 = vsel %vm10932_vm15, %v2736_v52, %v2720_v61  ;;  %v8774_v1 = vmax.f32 %v2046_v36, %v8746_v48  ;;  %v4186_v45 = vmax.f32 %v8337_v27, %v8643_v63  ;;  %vm10944_vm14 = vmmov %vm10890_vm0 }
 0x237   : > { %v2793_v15 = vsel %vm1267_vm12, %v2768_v10, -inf  ;;  %v2856_v17 = vmax.f32 %v2656_v31, %v2752_v41  ;;  %v8781_v3 = vmax.f32 %v2047_v29, %v8756_v19  ;;  %v4187_v21 = vmax.f32 %v8358_v26, %v8647_v55  ;;  %vm10945_vm15 = vmmov %vm10890_vm0 }
 0x238   : > { %v2857_v37 = vmax.f32 %v2697_v18, %v2793_v15  ;;  %v2433_v4 = vrot.slane %v8774_v1, 7  ;;  %v3171_v36 = vmax.f32 %v8386_v2, %v8716_v32  ;;  %v8788_v38 = vld [vmem:[#allocation2 + $0x90] sm:$0xff]  ;;  %v2529_v23 = vrot.slane %v8774_v1, 6 }
 0x239   : > { %v2888_v25 = vmax.f32 %v2824_v56, %v2856_v17  ;;  %v2449_v27 = vrot.slane %v8781_v3, 7  ;;  %v8795_v53 = vmax.f32 %v3170_v34, %v8788_v38  ;;  %v2134_v26 = vpack.c.bf16 %v8781_v3, %v8774_v1 }
 0x23a   : > { %v8792_v14 = vld [vmem:[#allocation2 + $0x60] sm:$0xff]  ;;  %v2889_v13 = vmax.f32 %v2825_v44, %v2857_v37  ;;  %v2545_v39 = vrot.slane %v8781_v3, 6  ;;  %v8806_v11 = vmax.f32 %v8654_v12, %v8788_v38  ;;  %v2625_v24 = vrot.slane %v8774_v1, 1 }
 0x23b   : > { %v8800_v22 = vld [vmem:[#allocation2 + $0x68] sm:$0xff]  ;;  %v4250_v2 = vmax.f32 %v4186_v45, %v8792_v14  ;;  %v2920_v54 = vmax.f32 %v2888_v25, %v8667_v51  ;;  %v3451_v49 = vrot.slane %v8795_v53, 7  ;;  %v8815_v42 = vmax.f32 %v8612_v50, %v8792_v14 }
 0x23c   : > { %v4251_v0 = vmax.f32 %v4187_v21, %v8800_v22  ;;  %v8810_v59 = vld [vmem:[#allocation2 + $0x98] sm:$0xff]  ;;  %v8819_v61 = vsel %vm10728_vm1, %v2433_v4, %v2449_v27  ;;  %v3547_v12 = vrot.slane %v8795_v53, 6  ;;  %v3643_v46 = vrot.slane %v8795_v53, 1 }
 0x23d   : > { %v8822_v51 = vmax.f32 %v3171_v36, %v8810_v59  ;;  %v3739_v31 = vrot.slane %v8795_v53, 2  ;;  %2952 = vst.msk [vmem:[#allocation2 + $0xa0] sm:$0xff] %vm280_vm13, %v2920_v54  ;;  %v8832_v50 = vmax.f32 %v8617_v7, %v8800_v22  ;;  %v2921_v34 = vmax.f32 %v2889_v13, %v8677_v16 }
 0x23e   : > { %v4280_v52 = vpack.c.bf16 %v4251_v0, %v4250_v2  ;;  %v8837_v18 = vmax.f32 %v8659_v8, %v8810_v59  ;;  %v3172_v16 = vmax.f32 %v8549_v62, %v8806_v11  ;;  %v2641_v44 = vrot.slane %v8781_v3, 1 }
 0x23f   : > { %v3467_v56 = vrot.slane %v8822_v51, 7  ;;  %v3563_v29 = vrot.slane %v8822_v51, 6  ;;  %v3659_v41 = vrot.slane %v8822_v51, 1  ;;  %v3755_v10 = vrot.slane %v8822_v51, 2  ;;  %2953 = vst.msk [vmem:[#allocation2 + $0xa8] sm:$0xff] %vm280_vm13, %v2921_v34 }
 0x240   : > { %5442 = vmatmul.msk.bf16.gmra.mxu0 %vm280_vm13, %v4280_v52  ;;  %v3261_v7 = vpack.c.bf16 %v8822_v51, %v8795_v53  ;;  %v3173_v8 = vmax.f32 %v8553_v9, %v8837_v18  ;;  %v2481_v52 = vsel %vm10728_vm1, %v2449_v27, %v2433_v4  ;;  %v2577_v4 = vsel %vm1414_vm2, %v2545_v39, %v2529_v23 }
 0x241   : > { %v3483_v45 = vsel %vm10728_vm1, %v3451_v49, %v3467_v56  ;;  %v3499_v15 = vsel %vm10728_vm1, %v3467_v56, %v3451_v49  ;;  %v3579_v17 = vsel %vm1414_vm2, %v3547_v12, %v3563_v29  ;;  %v3595_v21 = vsel %vm1414_vm2, %v3563_v29, %v3547_v12 }
 0x242   : > { %v3520_v62 = vsel %vm1260_vm5, %v3499_v15, -inf  ;;  %v3616_v9 = vsel %vm1262_vm6, %v3595_v21, -inf  ;;  %v3675_v37 = vsel %vm1511_vm7, %v3643_v46, %v3659_v41  ;;  %v3691_v36 = vsel %vm1511_vm7, %v3659_v41, %v3643_v46  ;;  %5428 = vmatmul.msk.bf16.gmra.mxu3 %vm280_vm13, %v3261_v7  ;;  %v10934_v41 = vld [vmem:[#allocation3_spill] sm:$0xff]  ;;  %v8908_v21 = vpop.f32.mrf.mxu2 }
 0x243   : > { %v3713_v25 = vsel %vm1265_vm9, %v3691_v36, -inf  ;;  %v3771_v13 = vsel %vm10890_vm0, %v3739_v31, %v3755_v10  ;;  %v3787_v2 = vsel %vm10933_vm10, %v3755_v10, %v3739_v31  ;;  %v3840_v54 = vmax.f32 %v3616_v9, %v3520_v62  ;;  %5399 = vmatmul.msk.bf16.gmra.mxu1 %vm280_vm13, %v2134_v26  ;;  %v10935_v10 = vld [vmem:[#allocation4_spill] sm:$0xff]  ;;  %vm10946_vm10 = vmmov %vm10890_vm0 }
 0x244   : > { %v3809_v0 = vsel %vm1267_vm12, %v3787_v2, -inf  ;;  %v3841_v49 = vmax.f32 %v3579_v17, %v3483_v45  ;;  %v3872_v12 = vmax.f32 %v3675_v37, %v3771_v13  ;;  %v8878_v46 = vld [vmem:[#allocation2 + $0xa0] sm:$0xff]  ;;  %v4188_v56 = vmax.f32 %v8545_v58, %v8815_v42 }
 0x245   : > { %v3873_v34 = vmax.f32 %v3713_v25, %v3809_v0  ;;  %v4189_v31 = vmax.f32 %v8560_v28, %v8832_v50  ;;  %v8887_v29 = vmax.f32 %v3172_v16, %v8878_v46  ;;  %v1280_v7 = vpack.c.bf16 %v10935_v10, %v10934_v41 }
 0x246   : > { %v3904_v26 = vmax.f32 %v3840_v54, %v3872_v12  ;;  %v2506_v45 = vsel %vm1260_vm5, %v2481_v52, -inf  ;;  %v8897_v58 = vld [vmem:[#allocation2 + $0xa8] sm:$0xff]  ;;  %v2561_v16 = vsel %vm1414_vm2, %v2529_v23, %v2545_v39  ;;  %v2657_v17 = vsel %vm1511_vm7, %v2625_v24, %v2641_v44 }
 0x247   : > { %v3905_v27 = vmax.f32 %v3841_v49, %v3873_v34  ;;  %v3452_v15 = vrot.slane %v8887_v29, 7  ;;  %v8912_v9 = vmax.f32 %v3173_v8, %v8897_v58  ;;  %v3548_v37 = vrot.slane %v8887_v29, 6  ;;  %5418 = vmatmul.msk.bf16.gmra.mxu2 %vm280_vm13, %v1280_v7 }
 0x248   : > { %v3936_v62 = vmax.f32 %v3904_v26, %v8795_v53  ;;  %v3644_v36 = vrot.slane %v8887_v29, 1  ;;  %v3740_v39 = vrot.slane %v8887_v29, 2  ;;  %v2602_v25 = vsel %vm1262_vm6, %v2577_v4, -inf }
 0x249   : > { %v3937_v23 = vmax.f32 %v3905_v27, %v8822_v51  ;;  %v2673_v53 = vsel %vm1511_vm7, %v2641_v44, %v2625_v24  ;;  %v3468_v8 = vrot.slane %v8912_v9, 7  ;;  %v3564_v13 = vrot.slane %v8912_v9, 6 }
 0x24a   : > { %3968 = vst.msk [vmem:[#allocation2 + $0x70] sm:$0xff] %vm280_vm13, %v3936_v62  ;;  %v3660_v2 = vrot.slane %v8912_v9, 1  ;;  %v3756_v51 = vrot.slane %v8912_v9, 2  ;;  %v2699_v54 = vsel %vm1265_vm9, %v2673_v53, -inf  ;;  %v2721_v0 = vrot.slane %v8774_v1, 2 }
 0x24b   : > { %3969 = vst.msk [vmem:[#allocation2 + $0x78] sm:$0xff] %vm280_vm13, %v3937_v23  ;;  %v2737_v49 = vrot.slane %v8781_v3, 2  ;;  %v2826_v24 = vmax.f32 %v2602_v25, %v2506_v45  ;;  %v3484_v44 = vsel %vm10728_vm1, %v3452_v15, %v3468_v8  ;;  %v3500_v12 = vsel %vm10728_vm1, %v3468_v8, %v3452_v15 }
 0x24c   : > { %v3580_v52 = vsel %vm1414_vm2, %v3548_v37, %v3564_v13  ;;  %v3596_v34 = vsel %vm1414_vm2, %v3564_v13, %v3548_v37  ;;  %v3522_v26 = vsel %vm1260_vm5, %v3500_v12, -inf  ;;  %v3676_v10 = vsel %vm1511_vm7, %v3644_v36, %v3660_v2 }
 0x24d   : > { %v3618_v41 = vsel %vm1262_vm6, %v3596_v34, -inf  ;;  %v3692_v7 = vsel %vm1511_vm7, %v3660_v2, %v3644_v36  ;;  %v3772_v4 = vsel %vm10936_vm4, %v3740_v39, %v3756_v51  ;;  %v3788_v27 = vsel %vm10937_vm8, %v3756_v51, %v3740_v39  ;;  %v1857_v2 = vld [vmem:[#allocation2 + $0xb8] sm:$0xff]  ;;  %vm10949_vm4 = vmmov %vm10890_vm0 }
 0x24e   : > { %v3715_v45 = vsel %vm1265_vm9, %v3692_v7, -inf  ;;  %v3842_v15 = vmax.f32 %v3618_v41, %v3522_v26  ;;  %v3811_v62 = vsel %vm1267_vm12, %v3788_v27, -inf  ;;  %v3843_v37 = vmax.f32 %v3580_v52, %v3484_v44  ;;  %v8970_v52 = vpop.f32.mrf.mxu2  ;;  %vm10950_vm8 = vmmov %vm10890_vm0 }
 0x24f   : > { %v3874_v23 = vmax.f32 %v3676_v10, %v3772_v4  ;;  %v2753_v25 = vsel %vm10938_vm3, %v2721_v0, %v2737_v49  ;;  %v3875_v53 = vmax.f32 %v3715_v45, %v3811_v62  ;;  %v3262_v36 = vpack.c.bf16 %v8912_v9, %v8887_v29  ;;  %10940 = vst [vmem:[#allocation7_spill] sm:$0xff] %v8970_v52  ;;  %v8985_v10 = vld [vmem:[#allocation2 + $0xc8] sm:$0xff]  ;;  %v8993_v45 = vld [vmem:[#allocation2 + $0xe0] sm:$0xff]  ;;  %v10942_v62 = vld [vmem:[#allocation6_spill] sm:$0xff] }
 0x250   : > { %v2769_v8 = vsel %vm10939_vm11, %v2737_v49, %v2721_v0  ;;  %v2827_v13 = vmax.f32 %v2561_v16, %v8819_v61  ;;  %v2858_v12 = vmax.f32 %v2657_v17, %v2753_v25  ;;  %v8978_v61 = vmax.f32 %v8600_v30, %v8746_v48  ;;  %v8995_v4 = vld [vmem:[#allocation2 + $0xe8] sm:$0xff]  ;;  %vm10951_vm3 = vmmov %vm10890_vm0 }
 0x251   : > { %v8966_v39 = vld [vmem:[#allocation2 + $0x70] sm:$0xff]  ;;  %v3906_v51 = vmax.f32 %v3842_v15, %v3874_v23  ;;  %v2795_v44 = vsel %vm1267_vm12, %v2769_v8, -inf  ;;  %v3907_v41 = vmax.f32 %v3843_v37, %v3875_v53  ;;  %v1920_v30 = vmax.f32 %v8564_v33, %v1857_v2  ;;  %vm10952_vm11 = vmmov %vm10890_vm0 }
 0x252   : > { %v8972_v34 = vld [vmem:[#allocation2 + $0x78] sm:$0xff]  ;;  %v4252_v26 = vmax.f32 %v4188_v56, %v8966_v39  ;;  %5429 = vmatmul.msk.bf16.gmra.mxu3 %vm280_vm13, %v3262_v36  ;;  %v2859_v0 = vmax.f32 %v2699_v54, %v2795_v44  ;;  %v2890_v49 = vmax.f32 %v2826_v24, %v2858_v12  ;;  %v8990_v54 = vmax.f32 %v8788_v38, %v8878_v46  ;;  %v10941_v15 = vld [vmem:[#allocation5_spill] sm:$0xff] }
 0x253   : > { %v4253_v16 = vmax.f32 %v4189_v31, %v8972_v34  ;;  %v3938_v17 = vmax.f32 %v3906_v51, %v8887_v29  ;;  %v3939_v56 = vmax.f32 %v3907_v41, %v8912_v9  ;;  %v9000_v31 = vmax.f32 %v8792_v14, %v8966_v39 }
 0x254   : > { %v2891_v7 = vmax.f32 %v2827_v13, %v2859_v0  ;;  %v9004_v29 = vmax.f32 %v8800_v22, %v8972_v34  ;;  %v2922_v38 = vmax.f32 %v2890_v49, %v8774_v1  ;;  %v9011_v9 = vmax.f32 %v8810_v59, %v8897_v58 }
 0x255   : > { %v4281_v28 = vpack.c.bf16 %v4253_v16, %v4252_v26  ;;  %3970 = vst.msk [vmem:[#allocation2 + $0x80] sm:$0xff] %vm280_vm13, %v3938_v17  ;;  %v2017_v24 = vmax.f32 %v8602_v57, %v8756_v19  ;;  %v2048_v14 = vmax.f32 %v8580_v20, %v8978_v61  ;;  %v1922_v1 = vmax.f32 %v1857_v2, %v8985_v10 }
 0x256   : > { %3971 = vst.msk [vmem:[#allocation2 + $0x88] sm:$0xff] %vm280_vm13, %v3939_v56  ;;  %v2923_v33 = vmax.f32 %v2891_v7, %v8781_v3  ;;  %v9022_v22 = vmax.f32 %v8746_v48, %v8993_v45  ;;  %v2019_v3 = vmax.f32 %v8756_v19, %v8995_v4  ;;  %v4190_v27 = vmax.f32 %v8643_v63, %v9000_v31  ;;  %v9046_v36 = vpop.f32.mrf.mxu2  ;;  %v9077_v56 = vld [vmem:[#allocation2 + $0xf8] sm:$0xff] }
 0x257   : > { %5443 = vmatmul.msk.bf16.gmra.mxu0 %vm280_vm13, %v4281_v28  ;;  %2954 = vst.msk [vmem:[#allocation2 + $0xb0] sm:$0xff] %vm280_vm13, %v2922_v38  ;;  %v2049_v59 = vmax.f32 %v1920_v30, %v2017_v24  ;;  %v9028_v57 = vmax.f32 %v2048_v14, %v8993_v45  ;;  %v1281_v37 = vpack.c.bf16 %v10942_v62, %v10941_v15 }
 0x258   : > { %2955 = vst.msk [vmem:[#allocation2 + $0xb8] sm:$0xff] %vm280_vm13, %v2923_v33  ;;  %v2050_v20 = vmax.f32 %v8623_v6, %v9022_v22  ;;  %v4191_v23 = vmax.f32 %v8647_v55, %v9004_v29  ;;  %v3174_v25 = vmax.f32 %v8664_v60, %v8990_v54  ;;  %v3175_v6 = vmax.f32 %v8716_v32, %v9011_v9  ;;  %v9056_v60 = vld [vmem:[#allocation2 + $0xf0] sm:$0xff] }
 0x259   : > { %v9037_v48 = vmax.f32 %v2049_v59, %v8995_v4  ;;  %v2434_v19 = vrot.slane %v9028_v57, 7  ;;  %v2051_v53 = vmax.f32 %v1922_v1, %v2019_v3  ;;  %10943 = vst [vmem:[#allocation9_spill] sm:$0xff] %v9046_v36  ;;  %5419 = vmatmul.msk.bf16.gmra.mxu2 %vm280_vm13, %v1281_v37  ;;  %v2530_v55 = vrot.slane %v9028_v57, 6 }
 0x25a   : > { %v2626_v32 = vrot.slane %v9028_v57, 1  ;;  %v2722_v44 = vrot.slane %v9028_v57, 2  ;;  %v9062_v12 = vmax.f32 %v2050_v20, %v9056_v60 }
 0x25b   : > { %v2135_v8 = vpack.c.bf16 %v9037_v48, %v9028_v57  ;;  %v2450_v13 = vrot.slane %v9037_v48, 7  ;;  %v2546_v2 = vrot.slane %v9037_v48, 6  ;;  %v2642_v51 = vrot.slane %v9037_v48, 1 }
 0x25c   : > { %v9048_v63 = vld [vmem:[#allocation2 + $0x80] sm:$0xff]  ;;  %v2738_v49 = vrot.slane %v9037_v48, 2 }
 0x25d   : > { %v9064_v26 = vld [vmem:[#allocation2 + $0x88] sm:$0xff]  ;;  %v4254_v41 = vmax.f32 %v4190_v27, %v9048_v63  ;;  %v9071_v16 = vmax.f32 %v8966_v39, %v9048_v63  ;;  %5400 = vmatmul.msk.bf16.gmra.mxu1 %vm280_vm13, %v2135_v8  ;;  %v2482_v17 = vsel %vm10728_vm1, %v2450_v13, %v2434_v19  ;;  %v2466_v38 = vsel %vm10728_vm1, %v2434_v19, %v2450_v13 }
 0x25e   : > { %v9067_v0 = vld [vmem:[#allocation2 + $0xb0] sm:$0xff]  ;;  %v4255_v7 = vmax.f32 %v4191_v23, %v9064_v26  ;;  %v9086_v39 = vmax.f32 %v2051_v53, %v9077_v56  ;;  %v2508_v24 = vsel %vm1260_vm5, %v2482_v17, -inf  ;;  %v2562_v14 = vsel %vm1414_vm2, %v2530_v55, %v2546_v2 }
 0x25f   : > { %v9080_v30 = vld [vmem:[#allocation2 + $0xb8] sm:$0xff]  ;;  %v3238_v28 = vmax.f32 %v3174_v25, %v9067_v0  ;;  %v2578_v1 = vsel %vm1414_vm2, %v2546_v2, %v2530_v55  ;;  %v2658_v53 = vsel %vm1511_vm7, %v2626_v32, %v2642_v51 }
 0x260   : > { %v3239_v33 = vmax.f32 %v3175_v6, %v9080_v30  ;;  %v4282_v23 = vpack.c.bf16 %v4255_v7, %v4254_v41  ;;  %v2604_v6 = vsel %vm1262_vm6, %v2578_v1, -inf }
 0x261   : > { %v3453_v3 = vrot.slane %v3238_v28, 7  ;;  %v3549_v59 = vrot.slane %v3238_v28, 6  ;;  %v3645_v20 = vrot.slane %v3238_v28, 1  ;;  %v3741_v27 = vrot.slane %v3238_v28, 2 }
 0x262   : > { %v3469_v15 = vrot.slane %v3239_v33, 7  ;;  %v3565_v62 = vrot.slane %v3239_v33, 6  ;;  %v3661_v37 = vrot.slane %v3239_v33, 1  ;;  %v3757_v19 = vrot.slane %v3239_v33, 2 }
 0x263   : > { %v3263_v25 = vpack.c.bf16 %v3239_v33, %v3238_v28 }
 0x264   : > { %v3485_v8 = vsel %vm10728_vm1, %v3453_v3, %v3469_v15  ;;  %v3501_v13 = vsel %vm10728_vm1, %v3469_v15, %v3453_v3  ;;  %v3581_v55 = vsel %vm1414_vm2, %v3549_v59, %v3565_v62  ;;  %v3597_v2 = vsel %vm1414_vm2, %v3565_v62, %v3549_v59 }
 0x265   : > { %v3524_v41 = vsel %vm1260_vm5, %v3501_v13, -inf  ;;  %v3620_v17 = vsel %vm1262_vm6, %v3597_v2, -inf  ;;  %v3677_v7 = vsel %vm1511_vm7, %v3645_v20, %v3661_v37  ;;  %v3693_v1 = vsel %vm1511_vm7, %v3661_v37, %v3645_v20  ;;  %5430 = vmatmul.msk.bf16.gmra.mxu3 %vm280_vm13, %v3263_v25  ;;  %v9122_v13 = vld [vmem:[#allocation2 + $0xd8] sm:$0xff]  ;;  %v9124_v2 = vpop.f32.mrf.mxu2 }
 0x266   : > { %v3717_v3 = vsel %vm1265_vm9, %v3693_v1, -inf  ;;  %v3773_v59 = vsel %vm10944_vm14, %v3741_v27, %v3757_v19  ;;  %v3789_v15 = vsel %vm10945_vm15, %v3757_v19, %v3741_v27  ;;  %v3844_v62 = vmax.f32 %v3620_v17, %v3524_v41  ;;  %vm10954_vm14 = vmmov %vm10890_vm0 }
 0x267   : > { %5444 = vmatmul.msk.bf16.gmra.mxu0 %vm280_vm13, %v4282_v23  ;;  %v3813_v20 = vsel %vm1267_vm12, %v3789_v15, -inf  ;;  %v3845_v37 = vmax.f32 %v3581_v55, %v3485_v8  ;;  %v3876_v25 = vmax.f32 %v3677_v7, %v3773_v59  ;;  %v2674_v1 = vsel %vm1511_vm7, %v2642_v51, %v2626_v32  ;;  %vm10955_vm15 = vmmov %vm10890_vm0 }
 0x268   : > { %v3877_v36 = vmax.f32 %v3717_v3, %v3813_v20  ;;  %v2701_v52 = vsel %vm1265_vm9, %v2674_v1, -inf  ;;  %v2754_v27 = vsel %vm10890_vm0, %v2722_v44, %v2738_v49  ;;  %v2770_v19 = vsel %vm10946_vm10, %v2738_v49, %v2722_v44  ;;  %vm10956_vm10 = vmmov %vm10890_vm0 }
 0x269   : > { %v3908_v41 = vmax.f32 %v3844_v62, %v3876_v25  ;;  %v2797_v23 = vsel %vm1267_vm12, %v2770_v19, -inf  ;;  %v2828_v17 = vmax.f32 %v2604_v6, %v2508_v24  ;;  %v2829_v8 = vmax.f32 %v2562_v14, %v2466_v38 }
 0x26a   : > { %v3909_v55 = vmax.f32 %v3845_v37, %v3877_v36  ;;  %v2860_v7 = vmax.f32 %v2658_v53, %v2754_v27  ;;  %v2861_v59 = vmax.f32 %v2701_v52, %v2797_v23  ;;  %v1924_v32 = vmax.f32 %v8985_v10, %v9122_v13  ;;  %v9164_v53 = vpop.f32.mrf.mxu1 }
 0x26b   : > { %v3940_v51 = vmax.f32 %v3908_v41, %v3238_v28  ;;  %v9143_v3 = vmax.f32 %v8972_v34, %v9064_v26  ;;  %v2435_v15 = vrot.slane %v9062_v12, 7  ;;  %v9148_v44 = vmax.f32 %v8993_v45, %v9056_v60 }
 0x26c   : > { %v3941_v49 = vmax.f32 %v3909_v55, %v3239_v33  ;;  %v2892_v24 = vmax.f32 %v2828_v17, %v2860_v7  ;;  %v2893_v38 = vmax.f32 %v2829_v8, %v2861_v59  ;;  %v2136_v52 = vpack.c.bf16 %v9086_v39, %v9062_v12  ;;  %v10947_v59 = vld [vmem:[#allocation8_spill] sm:$0xff] }
 0x26d   : > { %3972 = vst.msk [vmem:[#allocation2 + $0x90] sm:$0xff] %vm280_vm13, %v3940_v51  ;;  %v4192_v10 = vmax.f32 %v8815_v42, %v9071_v16  ;;  %v2451_v34 = vrot.slane %v9086_v39, 7  ;;  %v2531_v36 = vrot.slane %v9062_v12, 6  ;;  %v2547_v28 = vrot.slane %v9086_v39, 6  ;;  %v9185_v1 = vpop.f32.mrf.mxu2 }
 0x26e   : > { %3973 = vst.msk [vmem:[#allocation2 + $0x98] sm:$0xff] %vm280_vm13, %v3941_v49  ;;  %v2924_v45 = vmax.f32 %v2892_v24, %v9028_v57  ;;  %v2925_v33 = vmax.f32 %v2893_v38, %v9037_v48  ;;  %5401 = vmatmul.msk.bf16.gmra.mxu1 %vm280_vm13, %v2136_v52  ;;  %v2627_v14 = vrot.slane %v9062_v12, 1  ;;  %v2643_v6 = vrot.slane %v9086_v39, 1 }
 0x26f   : > { %v9168_v42 = vmax.f32 %v8878_v46, %v9067_v0  ;;  %v2467_v62 = vsel %vm10728_vm1, %v2435_v15, %v2451_v34  ;;  %v2483_v57 = vsel %vm10728_vm1, %v2451_v34, %v2435_v15  ;;  %v2579_v48 = vsel %vm1414_vm2, %v2547_v28, %v2531_v36 }
 0x270   : > { %2956 = vst.msk [vmem:[#allocation2 + $0xc0] sm:$0xff] %vm280_vm13, %v2924_v45  ;;  %v2510_v20 = vsel %vm1260_vm5, %v2483_v57, -inf  ;;  %v2563_v37 = vsel %vm1414_vm2, %v2531_v36, %v2547_v28  ;;  %v2606_v46 = vsel %vm1262_vm6, %v2579_v48, -inf  ;;  %v2675_v25 = vsel %vm1511_vm7, %v2643_v6, %v2627_v14  ;;  %v9225_v48 = vld [vmem:[#allocation2 + $0x100] sm:$0xff] }
 0x271   : > { %2957 = vst.msk [vmem:[#allocation2 + $0xc8] sm:$0xff] %vm280_vm13, %v2925_v33  ;;  %v9190_v27 = vmax.f32 %v8897_v58, %v9080_v30  ;;  %v2659_v19 = vsel %vm1511_vm7, %v2627_v14, %v2643_v6  ;;  %v2723_v41 = vrot.slane %v9062_v12, 2  ;;  %v2739_v23 = vrot.slane %v9086_v39, 2  ;;  %v10948_v58 = vld [vmem:[#allocation10_spill] sm:$0xff] }
 0x272   : > { %v4193_v17 = vmax.f32 %v8832_v50, %v9143_v3  ;;  %v2703_v8 = vsel %vm1265_vm9, %v2675_v25, -inf  ;;  %v2830_v55 = vmax.f32 %v2606_v46, %v2510_v20  ;;  %v2021_v7 = vmax.f32 %v8995_v4, %v9077_v56  ;;  %v9236_v46 = vpop.f32.mrf.mxu1 }
 0x273   : > { %v1282_v51 = vpack.c.bf16 %v10948_v58, %v10947_v59  ;;  %v2755_v15 = vsel %vm10949_vm4, %v2723_v41, %v2739_v23  ;;  %v2771_v49 = vsel %vm10950_vm8, %v2739_v23, %v2723_v41  ;;  %v2831_v24 = vmax.f32 %v2563_v37, %v2467_v62  ;;  %v9263_v59 = vld [vmem:[#allocation2 + $0x108] sm:$0xff]  ;;  %vm10961_vm4 = vmmov %vm10890_vm0 }
 0x274   : > { %v9208_v38 = vld [vmem:[#allocation2 + $0x90] sm:$0xff]  ;;  %v3176_v50 = vmax.f32 %v8806_v11, %v9168_v42  ;;  %v2799_v52 = vsel %vm1267_vm12, %v2771_v49, -inf  ;;  %v2862_v34 = vmax.f32 %v2659_v19, %v2755_v15  ;;  %v2052_v4 = vmax.f32 %v8978_v61, %v9148_v44  ;;  %vm10962_vm8 = vmmov %vm10890_vm0 }
 0x275   : > { %v9216_v36 = vld [vmem:[#allocation2 + $0x98] sm:$0xff]  ;;  %v4256_v28 = vmax.f32 %v4192_v10, %v9208_v38  ;;  %v3177_v45 = vmax.f32 %v8837_v18, %v9190_v27  ;;  %5420 = vmatmul.msk.bf16.gmra.mxu2 %vm280_vm13, %v1282_v51  ;;  %v2863_v33 = vmax.f32 %v2703_v8, %v2799_v52  ;;  %v2053_v57 = vmax.f32 %v1924_v32, %v2021_v7 }
 0x276   : > { %v4257_v14 = vmax.f32 %v4193_v17, %v9216_v36  ;;  %v2894_v11 = vmax.f32 %v2830_v55, %v2862_v34  ;;  %v9234_v37 = vmax.f32 %v2052_v4, %v9225_v48 }
 0x277   : > { %v9223_v6 = vld [vmem:[#allocation2 + $0xc0] sm:$0xff]  ;;  %v2895_v62 = vmax.f32 %v2831_v24, %v2863_v33  ;;  %v9272_v49 = vmax.f32 %v2053_v57, %v9263_v59 }
 0x278   : > { %v4283_v61 = vpack.c.bf16 %v4257_v14, %v4256_v28  ;;  %v9227_v20 = vld [vmem:[#allocation2 + $0xc8] sm:$0xff]  ;;  %v9230_v10 = vmax.f32 %v3176_v50, %v9223_v6  ;;  %v2926_v18 = vmax.f32 %v2894_v11, %v9062_v12  ;;  %v9244_v19 = vmax.f32 %v9067_v0, %v9223_v6 }
 0x279   : > { %v9239_v25 = vmax.f32 %v3177_v45, %v9227_v20  ;;  %v2927_v32 = vmax.f32 %v2895_v62, %v9086_v39  ;;  %v9248_v41 = vmax.f32 %v9080_v30, %v9227_v20  ;;  %v9256_v39 = vpop.f32.mrf.mxu2 }
 0x27a   : > { %5445 = vmatmul.msk.bf16.gmra.mxu0 %vm280_vm13, %v4283_v61  ;;  %v3454_v12 = vrot.slane %v9230_v10, 7  ;;  %v3550_v23 = vrot.slane %v9230_v10, 6  ;;  %v3646_v17 = vrot.slane %v9230_v10, 1  ;;  %v3742_v8 = vrot.slane %v9230_v10, 2  ;;  %2958 = vst.msk [vmem:[#allocation2 + $0xd0] sm:$0xff] %vm280_vm13, %v2926_v18 }
 0x27b   : > { %v3470_v0 = vrot.slane %v9239_v25, 7  ;;  %v3566_v55 = vrot.slane %v9239_v25, 6  ;;  %v3662_v30 = vrot.slane %v9239_v25, 1  ;;  %v3758_v7 = vrot.slane %v9239_v25, 2  ;;  %2959 = vst.msk [vmem:[#allocation2 + $0xd8] sm:$0xff] %vm280_vm13, %v2927_v32 }
 0x27c   : > { %v3264_v58 = vpack.c.bf16 %v9239_v25, %v9230_v10  ;;  %v3178_v51 = vmax.f32 %v8990_v54, %v9244_v19  ;;  %v3179_v15 = vmax.f32 %v9011_v9, %v9248_v41  ;;  %v4162_v32 = vmax.f32 %v9048_v63, %v9208_v38 }
 0x27d   : > { %v3486_v24 = vsel %vm10728_vm1, %v3454_v12, %v3470_v0  ;;  %v3502_v50 = vsel %vm10728_vm1, %v3470_v0, %v3454_v12  ;;  %v3582_v52 = vsel %vm1414_vm2, %v3550_v23, %v3566_v55  ;;  %v3598_v34 = vsel %vm1414_vm2, %v3566_v55, %v3550_v23 }
 0x27e   : > { %v3526_v54 = vsel %vm1260_vm5, %v3502_v50, -inf  ;;  %v3622_v9 = vsel %vm1262_vm6, %v3598_v34, -inf  ;;  %v3678_v4 = vsel %vm1511_vm7, %v3646_v17, %v3662_v30  ;;  %v3694_v28 = vsel %vm1511_vm7, %v3662_v30, %v3646_v17  ;;  %5431 = vmatmul.msk.bf16.gmra.mxu3 %vm280_vm13, %v3264_v58 }
 0x27f   : > { %v3719_v45 = vsel %vm1265_vm9, %v3694_v28, -inf  ;;  %v3774_v33 = vsel %vm10951_vm3, %v3742_v8, %v3758_v7  ;;  %v3790_v14 = vsel %vm10952_vm11, %v3758_v7, %v3742_v8  ;;  %v3846_v11 = vmax.f32 %v3622_v9, %v3526_v54  ;;  %v9313_v7 = vpop.f32.mrf.mxu1  ;;  %vm10963_vm3 = vmmov %vm10890_vm0 }
 0x280   : > { %v3815_v62 = vsel %vm1267_vm12, %v3790_v14, -inf  ;;  %v3847_v57 = vmax.f32 %v3582_v52, %v3486_v24  ;;  %v3878_v61 = vmax.f32 %v3678_v4, %v3774_v33  ;;  %v2137_v23 = vpack.c.bf16 %v9272_v49, %v9234_v37  ;;  %vm10964_vm11 = vmmov %vm10890_vm0 }
 0x281   : > { %v3879_v18 = vmax.f32 %v3719_v45, %v3815_v62  ;;  %v9301_v12 = vld [vmem:[#allocation2 + $0xd0] sm:$0xff]  ;;  %v4163_v0 = vmax.f32 %v9064_v26, %v9216_v36  ;;  %v2436_v30 = vrot.slane %v9234_v37, 7  ;;  %v1283_v24 = vpack.c.bf16 %v7791_v40, %v7475_v47  ;;  %v9326_v54 = vpop.f32.mrf.mxu2  ;;  %v9347_v62 = vld [vmem:[#allocation2 + $0xe8] sm:$0xff] }
 0x282   : > { %v3910_v17 = vmax.f32 %v3846_v11, %v3878_v61  ;;  %v9307_v8 = vld [vmem:[#allocation2 + $0xd8] sm:$0xff]  ;;  %v9310_v55 = vmax.f32 %v3178_v51, %v9301_v12  ;;  %5402 = vmatmul.msk.bf16.gmra.mxu1 %vm280_vm13, %v2137_v23  ;;  %v2532_v26 = vrot.slane %v9234_v37, 6  ;;  %v2452_v34 = vrot.slane %v9272_v49, 7  ;;  %10953 = vst [vmem:[#allocation3_spill] sm:$0xff] %v9326_v54 }
 0x283   : > { %v3911_v58 = vmax.f32 %v3847_v57, %v3879_v18  ;;  %v9316_v63 = vmax.f32 %v3179_v15, %v9307_v8  ;;  %v2548_v40 = vrot.slane %v9272_v49, 6  ;;  %v3334_v57 = vpop.f32.mrf.mxu3 }
 0x284   : > { %v3942_v50 = vmax.f32 %v3910_v17, %v9230_v10  ;;  %v3455_v51 = vrot.slane %v9310_v55, 7  ;;  %v3551_v52 = vrot.slane %v9310_v55, 6  ;;  %v3647_v10 = vrot.slane %v9310_v55, 1 }
 0x285   : > { %v3943_v15 = vmax.f32 %v3911_v58, %v9239_v25  ;;  %v3471_v9 = vrot.slane %v9316_v63, 7  ;;  %v3567_v47 = vrot.slane %v9316_v63, 6  ;;  %5421 = vmatmul.msk.bf16.gmra.mxu2 %vm280_vm13, %v1283_v24  ;;  %v3663_v4 = vrot.slane %v9316_v63, 1 }
 0x286   : > { %3974 = vst.msk [vmem:[#allocation2 + $0xa0] sm:$0xff] %vm280_vm13, %v3942_v50  ;;  %v3743_v28 = vrot.slane %v9310_v55, 2  ;;  %v3759_v45 = vrot.slane %v9316_v63, 2 }
 0x287   : > { %3975 = vst.msk [vmem:[#allocation2 + $0xa8] sm:$0xff] %vm280_vm13, %v3943_v15  ;;  %v3487_v25 = vsel %vm10728_vm1, %v3455_v51, %v3471_v9  ;;  %v3503_v33 = vsel %vm10728_vm1, %v3471_v9, %v3455_v51  ;;  %v3583_v14 = vsel %vm1414_vm2, %v3551_v52, %v3567_v47  ;;  %v3599_v11 = vsel %vm1414_vm2, %v3567_v47, %v3551_v52 }
 0x288   : > { %v3528_v61 = vsel %vm1260_vm5, %v3503_v33, -inf  ;;  %v3624_v18 = vsel %vm1262_vm6, %v3599_v11, -inf  ;;  %v3679_v23 = vsel %vm1511_vm7, %v3647_v10, %v3663_v4  ;;  %v3695_v17 = vsel %vm1511_vm7, %v3663_v4, %v3647_v10 }
 0x289   : > { %v3721_v58 = vsel %vm1265_vm9, %v3695_v17, -inf  ;;  %v3775_v24 = vsel %vm10954_vm14, %v3743_v28, %v3759_v45  ;;  %v3791_v50 = vsel %vm10955_vm15, %v3759_v45, %v3743_v28  ;;  %v3848_v51 = vmax.f32 %v3624_v18, %v3528_v61  ;;  %v2211_v45 = vpop.f32.mrf.mxu1 }
 0x28a   : > { %v4194_v52 = vmax.f32 %v9000_v31, %v4162_v32  ;;  %v3817_v15 = vsel %vm1267_vm12, %v3791_v50, -inf  ;;  %v3849_v9 = vmax.f32 %v3583_v14, %v3487_v25  ;;  %v3880_v47 = vmax.f32 %v3679_v23, %v3775_v24 }
 0x28b   : > { %v2345_v10 = vadd.f32 %v8828_v43, %v9164_v53  ;;  %v4195_v4 = vmax.f32 %v9004_v29, %v4163_v0  ;;  %v3881_v33 = vmax.f32 %v3721_v58, %v3817_v15  ;;  %v1926_v11 = vmax.f32 %v9122_v13, %v9347_v62 }
 0x28c   : > { %v3912_v17 = vmax.f32 %v3848_v51, %v3880_v47  ;;  %v3265_v28 = vpack.c.bf16 %v9316_v63, %v9310_v55  ;;  %v2484_v31 = vsel %vm10728_vm1, %v2452_v34, %v2436_v30  ;;  %v2628_v32 = vrot.slane %v9234_v37, 1 }
 0x28d   : > { %v9378_v25 = vld [vmem:[#allocation2 + $0xa0] sm:$0xff]  ;;  %v3913_v43 = vmax.f32 %v3849_v9, %v3881_v33  ;;  %v2580_v29 = vsel %vm1414_vm2, %v2548_v40, %v2532_v26  ;;  %v2644_v13 = vrot.slane %v9272_v49, 1  ;;  %v9385_v53 = vmax.f32 %v9056_v60, %v9225_v48 }
 0x28e   : > { %v9387_v0 = vld [vmem:[#allocation2 + $0xa8] sm:$0xff]  ;;  %v4258_v14 = vmax.f32 %v4194_v52, %v9378_v25  ;;  %v3944_v61 = vmax.f32 %v3912_v17, %v9310_v55  ;;  %5432 = vmatmul.msk.bf16.gmra.mxu3 %vm280_vm13, %v3265_v28  ;;  %v2512_v18 = vsel %vm1260_vm5, %v2484_v31, -inf  ;;  %v2608_v23 = vsel %vm1262_vm6, %v2580_v29, -inf }
 0x28f   : > { %v4259_v58 = vmax.f32 %v4195_v4, %v9387_v0  ;;  %v3945_v24 = vmax.f32 %v3913_v43, %v9316_v63  ;;  %v2468_v60 = vsel %vm10728_vm1, %v2436_v30, %v2452_v34  ;;  %v2564_v55 = vsel %vm1414_vm2, %v2532_v26, %v2548_v40  ;;  %v3336_v40 = vpop.f32.mrf.mxu3 }
 0x290   : > { %3976 = vst.msk [vmem:[#allocation2 + $0xb0] sm:$0xff] %vm280_vm13, %v3944_v61  ;;  %v2660_v50 = vsel %vm1511_vm7, %v2628_v32, %v2644_v13  ;;  %v2676_v51 = vsel %vm1511_vm7, %v2644_v13, %v2628_v32  ;;  %v2724_v52 = vrot.slane %v9234_v37, 2  ;;  %v2740_v63 = vrot.slane %v9272_v49, 2 }
 0x291   : > { %v4284_v15 = vpack.c.bf16 %v4259_v58, %v4258_v14  ;;  %3977 = vst.msk [vmem:[#allocation2 + $0xb8] sm:$0xff] %vm280_vm13, %v3945_v24  ;;  %v4164_v30 = vmax.f32 %v9208_v38, %v9378_v25  ;;  %v2705_v26 = vsel %vm1265_vm9, %v2676_v51, -inf  ;;  %v2832_v34 = vmax.f32 %v2608_v23, %v2512_v18  ;;  %v9431_v14 = vld [vmem:[#allocation2 + $0x110] sm:$0xff]  ;;  %v9437_v58 = vld [vmem:[#allocation2 + $0x118] sm:$0xff] }
 0x292   : > { %v2756_v9 = vsel %vm10890_vm0, %v2724_v52, %v2740_v63  ;;  %v2772_v47 = vsel %vm10956_vm10, %v2740_v63, %v2724_v52  ;;  %v2833_v4 = vmax.f32 %v2564_v55, %v2468_v60  ;;  %v2023_v33 = vmax.f32 %v9077_v56, %v9263_v59  ;;  %v10957_v56 = vld [vmem:[#allocation7_spill] sm:$0xff]  ;;  %v10960_v63 = vld [vmem:[#allocation9_spill] sm:$0xff] }
 0x293   : > { %5446 = vmatmul.msk.bf16.gmra.mxu0 %vm280_vm13, %v4284_v15  ;;  %v4165_v17 = vmax.f32 %v9216_v36, %v9387_v0  ;;  %v2801_v28 = vsel %vm1267_vm12, %v2772_v47, -inf  ;;  %v2864_v31 = vmax.f32 %v2660_v50, %v2756_v9  ;;  %v2054_v32 = vmax.f32 %v9022_v22, %v9385_v53 }
 0x294   : > { %v2347_v43 = vadd.f32 %v8908_v21, %v9236_v46  ;;  %v2865_v29 = vmax.f32 %v2705_v26, %v2801_v28  ;;  %v2055_v13 = vmax.f32 %v1926_v11, %v2023_v33  ;;  %v9435_v61 = vadd.f32 %v10957_v56, %v9313_v7  ;;  %v2214_v7 = vpop.f32.mrf.mxu1  ;;  %v9477_v26 = vld [vmem:[%s10710_s6] ss:$0 sm:$0xff]  ;;  %v9489_v33 = vld [vmem:[#allocation2 + $0xf8] sm:$0xff] }
 0x295   : > { %v3414_v18 = vadd.f32 %v3334_v57, %v2345_v10  ;;  %v2896_v23 = vmax.f32 %v2832_v34, %v2864_v31  ;;  %v9440_v24 = vmax.f32 %v2054_v32, %v9431_v14  ;;  %v9444_v22 = vmax.f32 %v9223_v6, %v9301_v12  ;;  %v9459_v6 = vld [vmem:[%s10709_s5] ss:$0 sm:$0xff] }
 0x296   : > { %v9448_v21 = vmax.f32 %v9227_v20, %v9307_v8  ;;  %v2897_v46 = vmax.f32 %v2833_v4, %v2865_v29  ;;  %v9451_v11 = vmax.f32 %v2055_v13, %v9437_v58  ;;  %v4196_v57 = vmax.f32 %v9071_v16, %v4164_v30 }
 0x297   : > { %10958 = vst [vmem:[#allocation4_spill] sm:$0xff] %v9444_v22  ;;  %v4197_v10 = vmax.f32 %v9143_v3, %v4165_v17  ;;  %v2928_v60 = vmax.f32 %v2896_v23, %v9234_v37  ;;  %v2437_v55 = vrot.slane %v9440_v24, 7  ;;  %v9462_v20 = vld [vmem:[#allocation2 + $0xb0] sm:$0xff]  ;;  %v4356_v52 = vpop.f32.mrf.mxu0  ;;  %v2533_v3 = vrot.slane %v9440_v24, 6 }
 0x298   : > { %10959 = vst [vmem:[#allocation5_spill] sm:$0xff] %v9448_v21  ;;  %v9464_v50 = vld [vmem:[#allocation2 + $0xb8] sm:$0xff]  ;;  %v2929_v51 = vmax.f32 %v2897_v46, %v9272_v49  ;;  %v2453_v16 = vrot.slane %v9451_v11, 7  ;;  %v2549_v37 = vrot.slane %v9451_v11, 6  ;;  %v9471_v15 = vadd.f32 %v10960_v63, %v2211_v45 }
 0x299   : > { %2960 = vst.msk [vmem:[#allocation2 + $0xe0] sm:$0xff] %vm280_vm13, %v2928_v60  ;;  %v4436_v30 = vadd.f32 %v4356_v52, %v3414_v18  ;;  %v2629_v49 = vrot.slane %v9440_v24, 1  ;;  %v2645_v34 = vrot.slane %v9451_v11, 1  ;;  %v9482_v9 = vadd.f32 %v9124_v2, %v2214_v7 }
 0x29a   : > { %v3415_v47 = vadd.f32 %v3336_v40, %v2347_v43  ;;  %v3180_v45 = vmax.f32 %v9168_v42, %v9444_v22  ;;  %2961 = vst.msk [vmem:[#allocation2 + $0xe8] sm:$0xff] %vm280_vm13, %v2929_v51  ;;  %v2485_v4 = vsel %vm10728_vm1, %v2453_v16, %v2437_v55  ;;  %v3181_v17 = vmax.f32 %v9190_v27, %v9448_v21  ;;  %v9496_v40 = vpop.f32.mrf.mxu3 }
 0x29b   : > { %v4260_v28 = vmax.f32 %v4196_v57, %v9462_v20  ;;  %v4261_v31 = vmax.f32 %v4197_v10, %v9464_v50  ;;  %v4472_v2 = vmul.f32 %v9459_v6, %v4436_v30  ;;  %v2469_v42 = vsel %vm10728_vm1, %v2437_v55, %v2453_v16 }
 0x29c   : > { %v2514_v32 = vsel %vm1260_vm5, %v2485_v4, -inf  ;;  %v2581_v43 = vsel %vm1414_vm2, %v2549_v37, %v2533_v3  ;;  %v2725_v29 = vrot.slane %v9440_v24, 2  ;;  %v2565_v13 = vsel %vm1414_vm2, %v2533_v3, %v2549_v37 }
 0x29d   : > { %v9506_v27 = vadd.f32 %v9477_v26, %v4472_v2  ;;  %v2610_v56 = vsel %vm1262_vm6, %v2581_v43, -inf  ;;  %v2677_v18 = vsel %vm1511_vm7, %v2645_v34, %v2629_v49  ;;  %v2741_v23 = vrot.slane %v9451_v11, 2 }
 0x29e   : > { %v2024_v7 = vmax.f32 %v9225_v48, %v9431_v14  ;;  %v2025_v57 = vmax.f32 %v9263_v59, %v9437_v58  ;;  %v4285_v10 = vpack.c.bf16 %v4261_v31, %v4260_v28  ;;  %v2661_v55 = vsel %vm1511_vm7, %v2629_v49, %v2645_v34 }
 0x29f   : > { %v5456_v60 = vmul.f32 -1.442695, %v9506_v27  ;;  %v2707_v51 = vsel %vm1265_vm9, %v2677_v18, -inf  ;;  %v4358_v16 = vpop.f32.mrf.mxu0  ;;  %v2757_v3 = vsel %vm10961_vm4, %v2725_v29, %v2741_v23  ;;  %v2773_v48 = vsel %vm10962_vm8, %v2741_v23, %v2725_v29 }
 0x2a0   : > { %v9526_v52 = vld [vmem:[#allocation2 + $0xe0] sm:$0xff]  ;;  %v2834_v37 = vmax.f32 %v2610_v56, %v2514_v32  ;;  %v2835_v63 = vmax.f32 %v2565_v13, %v2469_v42  ;;  %v4437_v49 = vadd.f32 %v4358_v16, %v3415_v47  ;;  %v2803_v34 = vsel %vm1267_vm12, %v2773_v48, -inf }
 0x2a1   : > { %v9532_v30 = vld [vmem:[#allocation2 + $0xe8] sm:$0xff]  ;;  %v9535_v4 = vmax.f32 %v3180_v45, %v9526_v52  ;;  %5652 = vpow2.f32 %v5456_v60  ;;  %v2138_v31 = vpack.c.bf16 %v9451_v11, %v9440_v24  ;;  %v2866_v2 = vmax.f32 %v2661_v55, %v2757_v3 }
 0x2a2   : > { %v9540_v28 = vmax.f32 %v3181_v17, %v9532_v30  ;;  %v2867_v43 = vmax.f32 %v2707_v51, %v2803_v34  ;;  %v4473_v23 = vmul.f32 %v9459_v6, %v4437_v49  ;;  %v3341_v55 = vpop.f32.mrf.mxu3  ;;  %vm5180_vm0 = vcmask 64512  }
 0x2a3   : > { %5447 = vmatmul.msk.bf16.gmra.mxu0 %vm280_vm13, %v4285_v10  ;;  %v3456_v42 = vrot.slane %v9535_v4, 7  ;;  %v3552_v45 = vrot.slane %v9535_v4, 6  ;;  %v3648_v32 = vrot.slane %v9535_v4, 1  ;;  %v3744_v47 = vrot.slane %v9535_v4, 2  ;;  %5403 = vmatmul.msk.bf16.gmra.mxu1 %vm280_vm13, %v2138_v31 }
 0x2a4   : > { %v3472_v29 = vrot.slane %v9540_v28, 7  ;;  %v3568_v17 = vrot.slane %v9540_v28, 6  ;;  %v3664_v13 = vrot.slane %v9540_v28, 1  ;;  %v3760_v56 = vrot.slane %v9540_v28, 2 }
 0x2a5   : > { %v3266_v18 = vpack.c.bf16 %v9540_v28, %v9535_v4  ;;  %v2898_v10 = vmax.f32 %v2834_v37, %v2866_v2  ;;  %v2899_v60 = vmax.f32 %v2835_v63, %v2867_v43 }
 0x2a6   : > { %v3488_v51 = vsel %vm10728_vm1, %v3456_v42, %v3472_v29  ;;  %v3504_v16 = vsel %vm10728_vm1, %v3472_v29, %v3456_v42  ;;  %v3584_v3 = vsel %vm1414_vm2, %v3552_v45, %v3568_v17  ;;  %v3600_v48 = vsel %vm1414_vm2, %v3568_v17, %v3552_v45 }
 0x2a7   : > { %v5653_v34 = vpop.eup %5652  ;;  %v3530_v31 = vsel %vm1260_vm5, %v3504_v16, -inf  ;;  %v3626_v37 = vsel %vm1262_vm6, %v3600_v48, -inf  ;;  %v3680_v63 = vsel %vm1511_vm7, %v3648_v32, %v3664_v13  ;;  %v3696_v49 = vsel %vm1511_vm7, %v3664_v13, %v3648_v32  ;;  %5433 = vmatmul.msk.bf16.gmra.mxu3 %vm280_vm13, %v3266_v18  ;;  %v4006_v32 = vld [vmem:[#allocation2 + $0x80] sm:$0xff]  ;;  %v4007_v13 = vld [vmem:[#allocation2 + $0x88] sm:$0xff] }
 0x2a8   : > { %v9574_v2 = vadd.f32 1.0, %v5653_v34  ;;  %v3723_v43 = vsel %vm1265_vm9, %v3696_v49, -inf  ;;  %v3776_v42 = vsel %vm10963_vm3, %v3744_v47, %v3760_v56  ;;  %v3792_v45 = vsel %vm10964_vm11, %v3760_v56, %v3744_v47 }
 0x2a9   : > { %v3819_v29 = vsel %vm1267_vm12, %v3792_v45, -inf  ;;  %v3850_v17 = vmax.f32 %v3626_v37, %v3530_v31  ;;  %v3851_v16 = vmax.f32 %v3584_v3, %v3488_v51  ;;  %v3882_v48 = vmax.f32 %v3680_v63, %v3776_v42 }
 0x2aa   : > { %v3416_v18 = vadd.f32 %v9496_v40, %v9435_v61  ;;  %5654 = vrcp.f32 %v9574_v2  ;;  %v4166_v34 = vmax.f32 %v9378_v25, %v9462_v20  ;;  %v2056_v49 = vmax.f32 %v9148_v44, %v2024_v7  ;;  %v4361_v40 = vpop.f32.mrf.mxu0  ;;  %v3344_v45 = vpop.f32.mrf.mxu3 }
 0x2ab   : > { %v3883_v46 = vmax.f32 %v3723_v43, %v3819_v29  ;;  %v3914_v47 = vmax.f32 %v3850_v17, %v3882_v48  ;;  %v9591_v56 = vadd.f32 %v9477_v26, %v4473_v23  ;;  %v2930_v51 = vmax.f32 %v2898_v10, %v9440_v24 }
 0x2ac   : > { %v4070_v3 = vmax.f32 %v4006_v32, %v9208_v38  ;;  %v4071_v31 = vmax.f32 %v4007_v13, %v9216_v36  ;;  %v4167_v61 = vmax.f32 %v9387_v0, %v9464_v50  ;;  %v10965_v44 = vmax.f32 %v9347_v62, %v9489_v33  ;;  %v9615_v62 = vld [vmem:[#allocation2 + $0x120] sm:$0xff] }
 0x2ad   : > { %v3915_v37 = vmax.f32 %v3851_v16, %v3883_v46  ;;  %v3946_v23 = vmax.f32 %v3914_v47, %v9535_v4  ;;  %v5457_v24 = vmul.f32 -1.442695, %v9591_v56  ;;  %v2931_v38 = vmax.f32 %v2899_v60, %v9451_v11  ;;  %2962 = vst.msk [vmem:[#allocation2 + $0xf0] sm:$0xff] %vm280_vm13, %v2930_v51  ;;  %v9620_v11 = vld [vmem:[#allocation2 + $0x128] sm:$0xff] }
 0x2ae   : > { %v2057_v7 = vmax.f32 %v10965_v44, %v2025_v57  ;;  %v4677_v36 = vand.u32 2147483647, %v9574_v2  ;;  %v9609_v10 = vmax.f32 %v4070_v3, %v4166_v34  ;;  %v4438_v63 = vadd.f32 %v4361_v40, %v3416_v18  ;;  %v9650_v18 = vld [vmem:[#allocation2 + $0x90] sm:$0xff] }
 0x2af   : > { %v9613_v43 = vmax.f32 %v9301_v12, %v9526_v52  ;;  %v4679_v46 = vand.u32 2147483648, %v9574_v2  ;;  %v3947_v57 = vmax.f32 %v3915_v37, %v9540_v28  ;;  %3978 = vst.msk [vmem:[#allocation2 + $0xc0] sm:$0xff] %vm280_vm13, %v3946_v23  ;;  %5656 = vpow2.f32 %v5457_v24 }
 0x2b0   : > { %v9623_v4 = vmax.f32 %v2056_v49, %v9615_v62  ;;  %v5655_v60 = vpop.eup %5654  ;;  %v4199_v42 = vmax.f32 %v4071_v31, %v4167_v61  ;;  %2963 = vst.msk [vmem:[#allocation2 + $0xf8] sm:$0xff] %vm280_vm13, %v2931_v38  ;;  %v4474_v12 = vmul.f32 %v9459_v6, %v4438_v63  ;;  %v9629_v29 = vmax.f32 %v9307_v8, %v9532_v30  ;;  %v9656_v49 = vld [vmem:[#allocation2 + $0x98] sm:$0xff] }
 0x2b1   : > { %10966 = vst [vmem:[#allocation6_spill] sm:$0xff] %v9613_v43  ;;  %v9632_v28 = vmax.f32 %v2057_v7, %v9620_v11  ;;  %v4669_v17 = vmul.f32 %v5655_v60, %v9574_v2  ;;  %v9636_v16 = vadd.f32 %v3341_v55, %v9471_v15  ;;  %v3182_v48 = vmax.f32 %v9244_v19, %v9613_v43 }
 0x2b2   : > { %10967 = vst [vmem:[#allocation8_spill] sm:$0xff] %v9629_v29  ;;  %v2438_v32 = vrot.slane %v9623_v4, 7  ;;  %vm4673_vm14 = vweird.f32 %v9574_v2  ;;  %vm9643_vm15 = vcmp.eq.f32.partialorder %v4677_v36, 8.507059e+37  ;;  %v9648_v13 = vadd.f32 %v9477_v26, %v4474_v12 }
 0x2b3   : > { %3979 = vst.msk [vmem:[#allocation2 + $0xc8] sm:$0xff] %vm280_vm13, %v3947_v57  ;;  %v2454_v15 = vrot.slane %v9632_v28, 7  ;;  %v4670_v55 = vsub.f32 1.0, %v4669_v17  ;;  %v4680_v34 = vor.u32 1.1754944e-38, %v4679_v46  ;;  %v9654_v19 = vadd.f32 %v3344_v45, %v9482_v9 }
 0x2b4   : > { %vm4674_vm10 = vweird.f32 %v5655_v60  ;;  %v5458_v51 = vmul.f32 -1.442695, %v9648_v13  ;;  %v3183_v3 = vmax.f32 %v9248_v41, %v9629_v29  ;;  %v9663_v31 = vld [vmem:[#allocation2 + $0xf0] sm:$0xff]  ;;  %v2534_v37 = vrot.slane %v9623_v4, 6 }
 0x2b5   : > { %v5657_v40 = vpop.eup %5656  ;;  %v4671_v9 = vmul.f32 %v5655_v60, %v4670_v55  ;;  %v9668_v44 = vmax.f32 %v3182_v48, %v9663_v31  ;;  %v2486_v7 = vsel %vm10728_vm1, %v2454_v15, %v2438_v32  ;;  %v2550_v41 = vrot.slane %v9632_v28, 6  ;;  %vm4675_vm4 = vmor %vm4673_vm14, %vm4674_vm10 }
 0x2b6   : > { %v9673_v23 = vld [vmem:[#allocation2 + $0xc0] sm:$0xff]  ;;  %v9675_v24 = vadd.f32 1.0, %v5657_v40  ;;  %5658 = vpow2.f32 %v5458_v51  ;;  %v10723_v38 = vrot.slane %v9623_v4, 1  ;;  %v10722_v46 = vrot.slane %v9632_v28, 1  ;;  %vm10972_vm14 = vmmov %vm10964_vm11 }
 0x2b7   : > { %v4672_v36 = vadd.f32 %v5655_v60, %v4671_v9  ;;  %v4262_v63 = vmax.f32 %v9609_v10, %v9673_v23  ;;  %v9690_v12 = vld [vmem:[#allocation2 + $0xf8] sm:$0xff]  ;;  %v9694_v17 = vsel %vm10728_vm1, %v2438_v32, %v2454_v15  ;;  %v9698_v10 = vsel %vm1260_vm5, %v2486_v7, -inf }
 0x2b8   : > { %5660 = vrcp.f32 %v9675_v24  ;;  %v9703_v51 = vmax.f32 %v3183_v3, %v9690_v12  ;;  %v3457_v40 = vrot.slane %v9668_v44, 7  ;;  %v3553_v15 = vrot.slane %v9668_v44, 6 }
 0x2b9   : > { %v4676_v55 = vsel %vm4675_vm4, %v5655_v60, %v4672_v36  ;;  %v3649_v60 = vrot.slane %v9668_v44, 1  ;;  %v4692_v8 = vand.u32 2147483647, %v9675_v24  ;;  %vm4688_vm8 = vweird.f32 %v9675_v24 }
 0x2ba   : > { %v9687_v45 = vld [vmem:[#allocation2 + $0xc8] sm:$0xff]  ;;  %v4681_v32 = vsel %vm9643_vm15, %v4680_v34, %v4676_v55  ;;  %v3473_v7 = vrot.slane %v9703_v51, 7  ;;  %v3569_v36 = vrot.slane %v9703_v51, 6  ;;  %v3665_v34 = vrot.slane %v9703_v51, 1 }
 0x2bb   : > { %v4263_v2 = vmax.f32 %v4199_v42, %v9687_v45  ;;  %v9717_v42 = vsel %vm1414_vm2, %v2534_v37, %v2550_v41  ;;  %v5148_v3 = vmul.f32 %v4681_v32, %v9506_v27  ;;  %v2582_v55 = vsel %vm1414_vm2, %v2550_v41, %v2534_v37 }
 0x2bc   : > { %v5659_v61 = vpop.eup %5658  ;;  %v9732_v27 = vsel %vm1511_vm7, %v10723_v38, %v10722_v46  ;;  %v3745_v37 = vrot.slane %v9668_v44, 2  ;;  %v3761_v41 = vrot.slane %v9703_v51, 2  ;;  %v4694_v47 = vand.u32 2147483648, %v9675_v24  ;;  %v4363_v38 = vpop.f32.mrf.mxu0 }
 0x2bd   : > { %v4286_v9 = vpack.c.bf16 %v4263_v2, %v4262_v63  ;;  %5181 = vst.msk [vmem:[%s9709_s10] sm:$0xff] %vm5180_vm0, %v5148_v3  ;;  %v9738_v63 = vadd.f32 1.0, %v5659_v61  ;;  %v3505_v2 = vsel %vm10728_vm1, %v3473_v7, %v3457_v40  ;;  %v3601_v3 = vsel %vm1414_vm2, %v3569_v36, %v3553_v15 }
 0x2be   : > { %v5661_v32 = vpop.eup %5660  ;;  %v3532_v57 = vsel %vm1260_vm5, %v3505_v2, -inf  ;;  %v3697_v61 = vsel %vm1511_vm7, %v3665_v34, %v3649_v60  ;;  %v3489_v48 = vsel %vm10728_vm1, %v3457_v40, %v3473_v7  ;;  %v3585_v46 = vsel %vm1414_vm2, %v3553_v15, %v3569_v36 }
 0x2bf   : > { %5448 = vmatmul.msk.bf16.gmra.mxu0 %vm280_vm13, %v4286_v9  ;;  %v4684_v9 = vmul.f32 %v5661_v32, %v9675_v24  ;;  %5662 = vrcp.f32 %v9738_v63  ;;  %vm9757_vm3 = vcmp.eq.f32.partialorder %v4692_v8, 8.507059e+37  ;;  %v3628_v2 = vsel %vm1262_vm6, %v3601_v3, -inf }
 0x2c0   : > { %v3681_v54 = vsel %vm1511_vm7, %v3649_v60, %v3665_v34  ;;  %v3725_v43 = vsel %vm1265_vm9, %v3697_v61, -inf  ;;  %v3777_v40 = vsel %vm10964_vm11, %v3745_v37, %v3761_v41  ;;  %v3793_v15 = vsel %vm10972_vm14, %v3761_v41, %v3745_v37 }
 0x2c1   : > { %v4685_v21 = vsub.f32 1.0, %v4684_v9  ;;  %v3852_v7 = vmax.f32 %v3628_v2, %v3532_v57  ;;  %v4695_v36 = vor.u32 1.1754944e-38, %v4694_v47  ;;  %v3821_v8 = vsel %vm1267_vm12, %v3793_v15, -inf  ;;  %v2216_v15 = vpop.f32.mrf.mxu1 }
 0x2c2   : > { %v3853_v22 = vmax.f32 %v3585_v46, %v3489_v48  ;;  %v4168_v3 = vmax.f32 %v9462_v20, %v9673_v23  ;;  %vm4689_vm15 = vweird.f32 %v5661_v32  ;;  %v3884_v34 = vmax.f32 %v3681_v54, %v3777_v40 }
 0x2c3   : > { %v4686_v60 = vmul.f32 %v5661_v32, %v4685_v21  ;;  %v3885_v61 = vmax.f32 %v3725_v43, %v3821_v8  ;;  %vm4703_vm10 = vweird.f32 %v9738_v63  ;;  %v4169_v9 = vmax.f32 %v9464_v50, %v9687_v45  ;;  %vm4690_vm4 = vmor %vm4688_vm8, %vm4689_vm15 }
 0x2c4   : > { %v3267_v57 = vpack.c.bf16 %v9703_v51, %v9668_v44  ;;  %v4439_v47 = vadd.f32 %v4363_v38, %v9636_v16  ;;  %v4707_v46 = vand.u32 2147483647, %v9738_v63  ;;  %v3916_v48 = vmax.f32 %v3852_v7, %v3884_v34 }
 0x2c5   : > { %v5663_v37 = vpop.eup %5662  ;;  %v4687_v41 = vadd.f32 %v5661_v32, %v4686_v60  ;;  %v3917_v2 = vmax.f32 %v3853_v22, %v3885_v61  ;;  %v4709_v21 = vand.u32 2147483648, %v9738_v63  ;;  %v10973_v40 = vrot.slane %v9623_v4, 1 }
 0x2c6   : > { %v4699_v54 = vmul.f32 %v5663_v37, %v9738_v63  ;;  %5434 = vmatmul.msk.bf16.gmra.mxu3 %vm280_vm13, %v3267_v57  ;;  %v4475_v43 = vmul.f32 %v9459_v6, %v4439_v47  ;;  %v10974_v16 = vrot.slane %v9632_v28, 1  ;;  %v3948_v24 = vmax.f32 %v3916_v48, %v9668_v44  ;;  %v3346_v44 = vpop.f32.mrf.mxu3  ;;  %v4366_v47 = vpop.f32.mrf.mxu0 }
 0x2c7   : > { %v4691_v22 = vsel %vm4690_vm4, %v5661_v32, %v4687_v41  ;;  %v3949_v7 = vmax.f32 %v3917_v2, %v9703_v51  ;;  %v2612_v8 = vsel %vm1262_vm6, %v2582_v55, -inf  ;;  %v2139_v57 = vpack.c.bf16 %v9632_v28, %v9623_v4 }
 0x2c8   : > { %v2678_v38 = vsel %vm1511_vm7, %v10974_v16, %v10973_v40  ;;  %v4696_v60 = vsel %vm9757_vm3, %v4695_v36, %v4691_v22  ;;  %v4700_v34 = vsub.f32 1.0, %v4699_v54  ;;  %v9801_v61 = vadd.f32 %v9477_v26, %v4475_v43  ;;  %3980 = vst.msk [vmem:[#allocation2 + $0xd0] sm:$0xff] %vm280_vm13, %v3948_v24  ;;  %vm10977_vm3 = vmmov %vm10964_vm11 }
 0x2c9   : > { %v5149_v32 = vmul.f32 %v4696_v60, %v9591_v56  ;;  %vm4704_vm8 = vweird.f32 %v5663_v37  ;;  %v2709_v51 = vsel %vm1265_vm9, %v2678_v38, -inf  ;;  %v10975_v29 = vrot.slane %v9632_v28, 2  ;;  %3981 = vst.msk [vmem:[#allocation2 + $0xd8] sm:$0xff] %vm280_vm13, %v3949_v7  ;;  %5404 = vmatmul.msk.bf16.gmra.mxu1 %vm280_vm13, %v2139_v57  ;;  %vm10980_vm11 = vmmov %vm10977_vm3 }
 0x2ca   : > { %v10976_v55 = vrot.slane %v9623_v4, 2  ;;  %v4701_v41 = vmul.f32 %v5663_v37, %v4700_v34  ;;  %v5459_v56 = vmul.f32 -1.442695, %v9801_v61  ;;  %v2836_v43 = vmax.f32 %v2612_v8, %v9698_v10  ;;  %vm4705_vm15 = vmor %vm4703_vm10, %vm4704_vm8 }
 0x2cb   : > { %v10979_v2 = vmov %v10975_v29  ;;  %5182 = vst.msk [vmem:[%s9709_s10 + $0x8] sm:$0xff] %vm5180_vm0, %v5149_v32  ;;  %v2837_v16 = vmax.f32 %v9717_v42, %v9694_v17  ;;  %v4440_v22 = vadd.f32 %v4366_v47, %v9654_v19  ;;  %vm4708_vm14 = vcmp.eq.f32.partialorder %v4707_v46, 8.507059e+37  ;;  %v9880_v47 = vld [vmem:[#allocation2 + $0x138] sm:$0xff] }
 0x2cc   : > { %v2758_v36 = vsel %vm10977_vm3, %v10976_v55, %v10975_v29  ;;  %v10978_v48 = vmov %v10976_v55  ;;  %v4702_v24 = vadd.f32 %v5663_v37, %v4701_v41  ;;  %5664 = vpow2.f32 %v5459_v56 }
 0x2cd   : > { %v2774_v54 = vsel %vm10980_vm11, %v10979_v2, %v10978_v48  ;;  %v2868_v38 = vmax.f32 %v9732_v27, %v2758_v36  ;;  %v4710_v10 = vor.u32 1.1754944e-38, %v4709_v21  ;;  %v10981_v8 = vmax.f32 %v9650_v18, %v9378_v25  ;;  %v9890_v2 = vld [vmem:[#allocation2 + $0xa0] sm:$0xff] }
 0x2ce   : > { %v2805_v40 = vsel %vm1267_vm12, %v2774_v54, -inf  ;;  %v4476_v17 = vmul.f32 %v9459_v6, %v4440_v22  ;;  %v4706_v42 = vsel %vm4705_vm15, %v5663_v37, %v4702_v24  ;;  %v10982_v19 = vmax.f32 %v9656_v49, %v9387_v0  ;;  %v2219_v49 = vpop.f32.mrf.mxu1  ;;  %v3349_v36 = vpop.f32.mrf.mxu3 }
 0x2cf   : > { %v2869_v7 = vmax.f32 %v2709_v51, %v2805_v40  ;;  %v4200_v60 = vmax.f32 %v10981_v8, %v4168_v3  ;;  %v2900_v34 = vmax.f32 %v2836_v43, %v2868_v38  ;;  %v2026_v57 = vmax.f32 %v9431_v14, %v9615_v62  ;;  %v9850_v18 = vld [vmem:[#allocation2 + $0xd0] sm:$0xff]  ;;  %v9897_v40 = vld [vmem:[#allocation2 + $0xa8] sm:$0xff] }
 0x2d0   : > { %v4201_v27 = vmax.f32 %v10982_v19, %v4169_v9  ;;  %v4711_v63 = vsel %vm4708_vm14, %v4710_v10, %v4706_v42  ;;  %v9847_v32 = vadd.f32 %v9477_v26, %v4476_v17  ;;  %v1930_v0 = vmax.f32 %v9489_v33, %v9263_v59  ;;  %v9855_v9 = vld [vmem:[#allocation2 + $0xd8] sm:$0xff]  ;;  %vm10987_vm14 = vmmov %vm10980_vm11 }
 0x2d1   : > { %v2901_v46 = vmax.f32 %v2837_v16, %v2869_v7  ;;  %v2932_v21 = vmax.f32 %v2900_v34, %v9623_v4  ;;  %v5150_v25 = vmul.f32 %v4711_v63, %v9648_v13  ;;  %v4264_v14 = vmax.f32 %v4200_v60, %v9850_v18  ;;  %v9864_v13 = vld [vmem:[#allocation2 + $0x130] sm:$0xff]  ;;  %v4368_v60 = vpop.f32.mrf.mxu0  ;;  %v4017_v35 = vld [vmem:[#allocation2 + $0xd8] sm:$0xff] }
 0x2d2   : > { %v5460_v4 = vmul.f32 -1.442695, %v9847_v32  ;;  %v9862_v37 = vmax.f32 %v9526_v52, %v9663_v31  ;;  %v5665_v51 = vpop.eup %5664  ;;  %v4265_v59 = vmax.f32 %v4201_v27, %v9855_v9  ;;  %v9871_v33 = vmax.f32 %v9532_v30, %v9690_v12 }
 0x2d3   : > { %v2933_v3 = vmax.f32 %v2901_v46, %v9632_v28  ;;  %2964 = vst.msk [vmem:[#allocation2 + $0x100] sm:$0xff] %vm280_vm13, %v2932_v21  ;;  %v2027_v28 = vmax.f32 %v9437_v58, %v9620_v11  ;;  %v2058_v29 = vmax.f32 %v9385_v53, %v2026_v57  ;;  %v2357_v55 = vadd.f32 %v9185_v1, %v2216_v15  ;;  %v10983_v53 = vld [vmem:[#allocation4_spill] sm:$0xff] }
 0x2d4   : > { %5183 = vst.msk [vmem:[%s9709_s10 + $0x10] sm:$0xff] %vm5180_vm0, %v5150_v25  ;;  %v9877_v52 = vadd.f32 1.0, %v5665_v51  ;;  %5666 = vpow2.f32 %v5460_v4  ;;  %v2360_v41 = vadd.f32 %v9256_v39, %v2219_v49  ;;  %v4287_v56 = vpack.c.bf16 %v4265_v59, %v4264_v14  ;;  %v10984_v39 = vld [vmem:[#allocation5_spill] sm:$0xff] }
 0x2d5   : > { %2965 = vst.msk [vmem:[#allocation2 + $0x108] sm:$0xff] %vm280_vm13, %v2933_v3  ;;  %v2059_v30 = vmax.f32 %v1930_v0, %v2027_v28  ;;  %v9884_v48 = vmax.f32 %v2058_v29, %v9864_v13  ;;  %v3419_v58 = vadd.f32 %v3346_v44, %v2357_v55  ;;  %v3184_v15 = vmax.f32 %v10983_v53, %v9862_v37 }
 0x2d6   : > { %5668 = vrcp.f32 %v9877_v52  ;;  %v4724_v1 = vand.u32 2147483648, %v9877_v52  ;;  %5449 = vmatmul.msk.bf16.gmra.mxu0 %vm280_vm13, %v4287_v56  ;;  %v9893_v54 = vadd.f32 %v3349_v36, %v2360_v41  ;;  %v3185_v43 = vmax.f32 %v10984_v39, %v9871_v33 }
 0x2d7   : > { %v9902_v16 = vmax.f32 %v2059_v30, %v9880_v47  ;;  %v2439_v7 = vrot.slane %v9884_v48, 7  ;;  %v4722_v10 = vand.u32 2147483647, %v9877_v52  ;;  %v2535_v17 = vrot.slane %v9884_v48, 6 }
 0x2d8   : > { %v4725_v27 = vor.u32 1.1754944e-38, %v4724_v1  ;;  %v2631_v57 = vrot.slane %v9884_v48, 1  ;;  %vm4718_vm10 = vweird.f32 %v9877_v52  ;;  %v4441_v3 = vadd.f32 %v4368_v60, %v3419_v58 }
 0x2d9   : > { %v2455_v34 = vrot.slane %v9902_v16, 7  ;;  %v2551_v42 = vrot.slane %v9902_v16, 6  ;;  %v2647_v0 = vrot.slane %v9902_v16, 1  ;;  %vm9940_vm4 = vcmp.eq.f32.partialorder %v4722_v10, 8.507059e+37 }
 0x2da   : > { %v9912_v8 = vld [vmem:[#allocation2 + $0x100] sm:$0xff]  ;;  %v5667_v19 = vpop.eup %5666 }
 0x2db   : > { %v9918_v46 = vmax.f32 %v3184_v15, %v9912_v8  ;;  %v9923_v21 = vadd.f32 1.0, %v5667_v19  ;;  %v9935_v59 = vsel %vm10728_vm1, %v2439_v7, %v2455_v34  ;;  %v2487_v28 = vsel %vm10728_vm1, %v2455_v34, %v2439_v7 }
 0x2dc   : > { %v9925_v25 = vld [vmem:[#allocation2 + $0x108] sm:$0xff]  ;;  %v5669_v14 = vpop.eup %5668  ;;  %v9952_v41 = vsel %vm1414_vm2, %v2535_v17, %v2551_v42 }
 0x2dd   : > { %v9930_v4 = vmax.f32 %v3185_v43, %v9925_v25  ;;  %v3458_v51 = vrot.slane %v9918_v46, 7  ;;  %v4714_v29 = vmul.f32 %v5669_v14, %v9877_v52  ;;  %5670 = vrcp.f32 %v9923_v21 }
 0x2de   : > { %v3554_v36 = vrot.slane %v9918_v46, 6  ;;  %vm4719_vm8 = vweird.f32 %v5669_v14  ;;  %v3650_v58 = vrot.slane %v9918_v46, 1  ;;  %v3746_v15 = vrot.slane %v9918_v46, 2 }
 0x2df   : > { %v3474_v56 = vrot.slane %v9930_v4, 7  ;;  %v3570_v30 = vrot.slane %v9930_v4, 6  ;;  %v4715_v1 = vsub.f32 1.0, %v4714_v29  ;;  %v3666_v53 = vrot.slane %v9930_v4, 1  ;;  %vm4720_vm15 = vmor %vm4718_vm10, %vm4719_vm8 }
 0x2e0   : > { %v3762_v39 = vrot.slane %v9930_v4, 2  ;;  %v4737_v43 = vand.u32 2147483647, %v9923_v21  ;;  %v4739_v7 = vand.u32 2147483648, %v9923_v21  ;;  %vm4733_vm3 = vweird.f32 %v9923_v21  ;;  %vm10992_vm8 = vmmov %vm10980_vm11 }
 0x2e1   : > { %v3490_v10 = vsel %vm10728_vm1, %v3458_v51, %v3474_v56  ;;  %v3506_v60 = vsel %vm10728_vm1, %v3474_v56, %v3458_v51  ;;  %v4716_v34 = vmul.f32 %v5669_v14, %v4715_v1  ;;  %v3586_v29 = vsel %vm1414_vm2, %v3554_v36, %v3570_v30 }
 0x2e2   : > { %v3534_v19 = vsel %vm1260_vm5, %v3506_v60, -inf  ;;  %v3602_v38 = vsel %vm1414_vm2, %v3570_v30, %v3554_v36  ;;  %v3682_v44 = vsel %vm1511_vm7, %v3650_v58, %v3666_v53  ;;  %v3698_v51 = vsel %vm1511_vm7, %v3666_v53, %v3650_v58 }
 0x2e3   : > { %v3630_v24 = vsel %vm1262_vm6, %v3602_v38, -inf  ;;  %v3778_v56 = vsel %vm10980_vm11, %v3746_v15, %v3762_v39  ;;  %v5671_v1 = vpop.eup %5670  ;;  %v4717_v60 = vadd.f32 %v5669_v14, %v4716_v34  ;;  %v3727_v22 = vsel %vm1265_vm9, %v3698_v51, -inf  ;;  %vm10995_vm11 = vmmov %vm10992_vm8 }
 0x2e4   : > { %v3794_v36 = vsel %vm10987_vm14, %v3762_v39, %v3746_v15  ;;  %v3854_v30 = vmax.f32 %v3630_v24, %v3534_v19  ;;  %v4729_v38 = vmul.f32 %v5671_v1, %v9923_v21  ;;  %vm4734_vm1 = vweird.f32 %v5671_v1 }
 0x2e5   : > { %v3823_v58 = vsel %vm1267_vm12, %v3794_v36, -inf  ;;  %v3855_v53 = vmax.f32 %v3586_v29, %v3490_v10  ;;  %v4721_v63 = vsel %vm4720_vm15, %v5669_v14, %v4717_v60  ;;  %v3886_v34 = vmax.f32 %v3682_v44, %v3778_v56 }
 0x2e6   : > { %v3887_v49 = vmax.f32 %v3727_v22, %v3823_v58  ;;  %v3268_v51 = vpack.c.bf16 %v9930_v4, %v9918_v46  ;;  %v4726_v24 = vsel %vm9940_vm4, %v4725_v27, %v4721_v63  ;;  %v4730_v15 = vsub.f32 1.0, %v4729_v38  ;;  %vm4735_vm4 = vmor %vm4733_vm3, %vm4734_vm1 }
 0x2e7   : > { %v4477_v52 = vmul.f32 %v9459_v6, %v4441_v3  ;;  %v2518_v39 = vsel %vm1260_vm5, %v2487_v28, -inf  ;;  %v5151_v19 = vmul.f32 %v4726_v24, %v9801_v61  ;;  %v3918_v36 = vmax.f32 %v3854_v30, %v3886_v34 }
 0x2e8   : > { %v3919_v10 = vmax.f32 %v3855_v53, %v3887_v49  ;;  %5435 = vmatmul.msk.bf16.gmra.mxu3 %vm280_vm13, %v3268_v51  ;;  %v2583_v44 = vsel %vm1414_vm2, %v2551_v42, %v2535_v17  ;;  %v4731_v22 = vmul.f32 %v5671_v1, %v4730_v15  ;;  %v2140_v63 = vpack.c.bf16 %v9902_v16, %v9884_v48  ;;  %v2221_v42 = vpop.f32.mrf.mxu1  ;;  %v3351_v51 = vpop.f32.mrf.mxu3 }
 0x2e9   : > { %v10007_v27 = vadd.f32 %v9477_v26, %v4477_v52  ;;  %v2614_v61 = vsel %vm1262_vm6, %v2583_v44, -inf  ;;  %5184 = vst.msk [vmem:[%s9709_s10 + $0x18] sm:$0xff] %vm5180_vm0, %v5151_v19  ;;  %vm10015_vm10 = vcmp.eq.f32.partialorder %v4737_v43, 8.507059e+37  ;;  %v4740_v49 = vor.u32 1.1754944e-38, %v4739_v7 }
 0x2ea   : > { %v3950_v14 = vmax.f32 %v3918_v36, %v9918_v46  ;;  %v3951_v17 = vmax.f32 %v3919_v10, %v9930_v4  ;;  %v4732_v28 = vadd.f32 %v5671_v1, %v4731_v22  ;;  %5405 = vmatmul.msk.bf16.gmra.mxu1 %vm280_vm13, %v2140_v63  ;;  %v2663_v43 = vsel %vm1511_vm7, %v2631_v57, %v2647_v0  ;;  %v4371_v4 = vpop.f32.mrf.mxu0 }
 0x2eb   : > { %v5461_v55 = vmul.f32 -1.442695, %v10007_v27  ;;  %v2679_v46 = vsel %vm1511_vm7, %v2647_v0, %v2631_v57  ;;  %v10990_v29 = vrot.slane %v9902_v16, 2  ;;  %v10991_v56 = vrot.slane %v9884_v48, 2 }
 0x2ec   : > { %3982 = vst.msk [vmem:[#allocation2 + $0xe0] sm:$0xff] %vm280_vm13, %v3950_v14  ;;  %v2711_v7 = vsel %vm1265_vm9, %v2679_v46, -inf  ;;  %v2838_v0 = vmax.f32 %v2614_v61, %v2518_v39  ;;  %v4736_v38 = vsel %vm4735_vm4, %v5671_v1, %v4732_v28  ;;  %v2839_v53 = vmax.f32 %v9952_v41, %v9935_v59  ;;  %v10106_v46 = vld [vmem:[#allocation2 + $0xb8] sm:$0xff] }
 0x2ed   : > { %v2759_v60 = vsel %vm10992_vm8, %v10991_v56, %v10990_v29  ;;  %v10993_v30 = vmov %v10991_v56  ;;  %v10994_v57 = vmov %v10990_v29  ;;  %3983 = vst.msk [vmem:[#allocation2 + $0xe8] sm:$0xff] %vm280_vm13, %v3951_v17  ;;  %5672 = vpow2.f32 %v5461_v55  ;;  %v2364_v17 = vpop.f32.mrf.mxu2  ;;  %v11000_v55 = vld [vmem:[#allocation6_spill] sm:$0xff]  ;;  %v11002_v56 = vld [vmem:[#allocation8_spill] sm:$0xff] }
 0x2ee   : > { %v2775_v21 = vsel %vm10995_vm11, %v10994_v57, %v10993_v30  ;;  %v4741_v34 = vsel %vm10015_vm10, %v4740_v49, %v4736_v38  ;;  %v2870_v24 = vmax.f32 %v2663_v43, %v2759_v60  ;;  %v4442_v52 = vadd.f32 %v4371_v4, %v9893_v54  ;;  %v11001_v4 = vld [vmem:[#allocation3_spill] sm:$0xff]  ;;  %vm11007_vm11 = vmmov %vm10992_vm8 }
 0x2ef   : > { %v2807_v58 = vsel %vm1267_vm12, %v2775_v21, -inf  ;;  %v5152_v39 = vmul.f32 %v4741_v34, %v9847_v32  ;;  %v10996_v1 = vmax.f32 %v9673_v23, %v9850_v18  ;;  %v10997_v19 = vmax.f32 %v9890_v2, %v9462_v20 }
 0x2f0   : > { %v2871_v15 = vmax.f32 %v2711_v7, %v2807_v58  ;;  %v2902_v10 = vmax.f32 %v2838_v0, %v2870_v24  ;;  %v4478_v59 = vmul.f32 %v9459_v6, %v4442_v52  ;;  %v10998_v41 = vmax.f32 %v9687_v45, %v9855_v9  ;;  %v3354_v28 = vpop.f32.mrf.mxu3 }
 0x2f1   : > { %v4202_v36 = vmax.f32 %v10997_v19, %v10996_v1  ;;  %5185 = vst.msk [vmem:[%s9709_s10 + $0x20] sm:$0xff] %vm5180_vm0, %v5152_v39  ;;  %v10999_v54 = vmax.f32 %v9897_v40, %v9464_v50  ;;  %v10099_v40 = vmax.f32 %v9690_v12, %v9925_v25  ;;  %v2362_v7 = vadd.f32 %v11001_v4, %v2221_v42 }
 0x2f2   : > { %v2903_v44 = vmax.f32 %v2839_v53, %v2871_v15  ;;  %v2934_v22 = vmax.f32 %v2902_v10, %v9884_v48  ;;  %v10080_v20 = vadd.f32 %v9477_v26, %v4478_v59  ;;  %v10093_v48 = vmax.f32 %v9663_v31, %v9912_v8  ;;  %v10104_v31 = vld [vmem:[#allocation2 + $0xb0] sm:$0xff]  ;;  %v4373_v19 = vpop.f32.mrf.mxu0 }
 0x2f3   : > { %v4203_v32 = vmax.f32 %v10999_v54, %v10998_v41  ;;  %v5673_v2 = vpop.eup %5672  ;;  %v10082_v61 = vld [vmem:[#allocation2 + $0xe0] sm:$0xff]  ;;  %v3187_v60 = vmax.f32 %v11002_v56, %v10099_v40  ;;  %v3421_v30 = vadd.f32 %v3351_v51, %v2362_v7  ;;  %v4076_v0 = vmax.f32 %v10104_v31, %v9673_v23 }
 0x2f4   : > { %v2935_v63 = vmax.f32 %v2903_v44, %v9902_v16  ;;  %v10084_v6 = vld [vmem:[#allocation2 + $0xe8] sm:$0xff]  ;;  %v4266_v3 = vmax.f32 %v4202_v36, %v10082_v61  ;;  %v10087_v49 = vadd.f32 1.0, %v5673_v2  ;;  %2966 = vst.msk [vmem:[#allocation2 + $0x110] sm:$0xff] %vm280_vm13, %v2934_v22  ;;  %v5462_v50 = vmul.f32 -1.442695, %v10080_v20  ;;  %v2224_v16 = vpop.f32.mrf.mxu1 }
 0x2f5   : > { %v4267_v26 = vmax.f32 %v4203_v32, %v10084_v6  ;;  %v3186_v43 = vmax.f32 %v11000_v55, %v10093_v48  ;;  %v2365_v29 = vadd.f32 %v2364_v17, %v2224_v16  ;;  %v4077_v38 = vmax.f32 %v10106_v46, %v9687_v45  ;;  %v10170_v56 = vpop.f32.mrf.mxu2 }
 0x2f6   : > { %2967 = vst.msk [vmem:[#allocation2 + $0x118] sm:$0xff] %vm280_vm13, %v2935_v63  ;;  %5674 = vrcp.f32 %v10087_v49  ;;  %v4752_v12 = vand.u32 2147483647, %v10087_v49  ;;  %vm4748_vm1 = vweird.f32 %v10087_v49  ;;  %v4754_v58 = vand.u32 2147483648, %v10087_v49 }
 0x2f7   : > { %v4288_v14 = vpack.c.bf16 %v4267_v26, %v4266_v3  ;;  %5676 = vpow2.f32 %v5462_v50  ;;  %v10113_v57 = vadd.f32 %v3354_v28, %v2365_v29  ;;  %v4172_v51 = vmax.f32 %v9850_v18, %v10082_v61 }
 0x2f8   : > { %vm10131_vm3 = vcmp.eq.f32.partialorder %v4752_v12, 8.507059e+37  ;;  %v4173_v1 = vmax.f32 %v9855_v9, %v10084_v6  ;;  %v4755_v63 = vor.u32 1.1754944e-38, %v4754_v58  ;;  %v4443_v2 = vadd.f32 %v4373_v19, %v3421_v30 }
 0x2f9   : > { %5450 = vmatmul.msk.bf16.gmra.mxu0 %vm280_vm13, %v4288_v14  ;;  %vm11005_vm15 = vcmp.lt.s32.totalorder %v5916_v5, 1 }
 0x2fa   : > { %vm11006_vm10 = vmmov %vm11005_vm15 }
 0x2fb   : > { %v10115_v21 = vld [vmem:[#allocation2 + $0x110] sm:$0xff] }
 0x2fc   : > { %v5675_v42 = vpop.eup %5674  ;;  %v10126_v34 = vmax.f32 %v3186_v43, %v10115_v21  ;;  %v10155_v14 = vpop.f32.mrf.mxu1  ;;  %v3156_v43 = vmax.f32 %v9912_v8, %v10115_v21 }
 0x2fd   : > { %v10123_v53 = vld [vmem:[#allocation2 + $0x118] sm:$0xff]  ;;  %v5677_v24 = vpop.eup %5676  ;;  %v4744_v15 = vmul.f32 %v5675_v42, %v10087_v49  ;;  %vm4749_vm14 = vweird.f32 %v5675_v42  ;;  %v10186_v49 = vld [vmem:[%s10709_s5] ss:$0 sm:$0xff] }
 0x2fe   : > { %v10136_v39 = vmax.f32 %v3187_v60, %v10123_v53  ;;  %v10140_v36 = vadd.f32 1.0, %v5677_v24  ;;  %v3459_v10 = vrot.slane %v10126_v34, 7  ;;  %v3555_v44 = vrot.slane %v10126_v34, 6  ;;  %vm4750_vm4 = vmor %vm4748_vm1, %vm4749_vm14  ;;  %v10175_v60 = vpop.f32.mrf.mxu3 }
 0x2ff   : > { %v3651_v59 = vrot.slane %v10126_v34, 1  ;;  %v4745_v41 = vsub.f32 1.0, %v4744_v15  ;;  %v3747_v30 = vrot.slane %v10126_v34, 2 }
 0x300   : > { %v3475_v54 = vrot.slane %v10136_v39, 7  ;;  %v3571_v32 = vrot.slane %v10136_v39, 6  ;;  %v3667_v22 = vrot.slane %v10136_v39, 1  ;;  %5678 = vrcp.f32 %v10140_v36 }
 0x301   : > { %v4746_v3 = vmul.f32 %v5675_v42, %v4745_v41  ;;  %v4769_v17 = vand.u32 2147483648, %v10140_v36  ;;  %v3763_v58 = vrot.slane %v10136_v39, 2  ;;  %vm4763_vm1 = vweird.f32 %v10140_v36 }
 0x302   : > { %v3491_v50 = vsel %vm11005_vm15, %v3459_v10, %v3475_v54  ;;  %v3507_v26 = vsel %vm11006_vm10, %v3475_v54, %v3459_v10  ;;  %v3587_v16 = vsel %vm1414_vm2, %v3555_v44, %v3571_v32  ;;  %v3603_v55 = vsel %vm1414_vm2, %v3571_v32, %v3555_v44 }
 0x303   : > { %v3536_v28 = vsel %vm1260_vm5, %v3507_v26, -inf  ;;  %v4747_v4 = vadd.f32 %v5675_v42, %v4746_v3  ;;  %v3632_v7 = vsel %vm1262_vm6, %v3603_v55, -inf  ;;  %v3683_v29 = vsel %vm1511_vm7, %v3651_v59, %v3667_v22  ;;  %v4376_v55 = vpop.f32.mrf.mxu0 }
 0x304   : > { %v3699_v12 = vsel %vm1511_vm7, %v3667_v22, %v3651_v59  ;;  %v3856_v24 = vmax.f32 %v3632_v7, %v3536_v28  ;;  %v3857_v19 = vmax.f32 %v3587_v16, %v3491_v50  ;;  %v3269_v10 = vpack.c.bf16 %v10136_v39, %v10126_v34  ;;  %v10206_v50 = vld [vmem:[%s10710_s6] ss:$0 sm:$0xff] }
 0x305   : > { %v3729_v8 = vsel %vm1265_vm9, %v3699_v12, -inf  ;;  %v4751_v15 = vsel %vm4750_vm4, %v5675_v42, %v4747_v4  ;;  %v4479_v44 = vmul.f32 %v10186_v49, %v4443_v2  ;;  %v3779_v54 = vsel %vm10992_vm8, %v3747_v30, %v3763_v58  ;;  %vm11008_vm4 = vmmov %vm11006_vm10 }
 0x306   : > { %v5679_v59 = vpop.eup %5678  ;;  %v4756_v41 = vsel %vm10131_vm3, %v4755_v63, %v4751_v15  ;;  %v3795_v42 = vsel %vm11007_vm11, %v3763_v58, %v3747_v30  ;;  %v3157_v32 = vmax.f32 %v9925_v25, %v10123_v53  ;;  %5436 = vmatmul.msk.bf16.gmra.mxu3 %vm280_vm13, %v3269_v10  ;;  %v3888_v52 = vmax.f32 %v3683_v29, %v3779_v54  ;;  %vm11009_vm11 = vmmov %vm10992_vm8 }
 0x307   : > { %v5153_v22 = vmul.f32 %v4756_v41, %v10007_v27  ;;  %v4759_v3 = vmul.f32 %v5679_v59, %v10140_v36  ;;  %v3825_v2 = vsel %vm1267_vm12, %v3795_v42, -inf  ;;  %v10209_v25 = vadd.f32 %v10206_v50, %v4479_v44  ;;  %v2369_v44 = vpop.f32.mrf.mxu2  ;;  %v3359_v41 = vpop.f32.mrf.mxu3 }
 0x308   : > { %v3889_v63 = vmax.f32 %v3729_v8, %v3825_v2  ;;  %v3188_v27 = vmax.f32 %v9862_v37, %v3156_v43  ;;  %v4767_v16 = vand.u32 2147483647, %v10140_v36  ;;  %v4770_v28 = vor.u32 1.1754944e-38, %v4769_v17  ;;  %v2229_v43 = vpop.f32.mrf.mxu1 }
 0x309   : > { %5186 = vst.msk [vmem:[%s9709_s10 + $0x28] sm:$0xff] %vm5180_vm0, %v5153_v22  ;;  %v4760_v26 = vsub.f32 1.0, %v4759_v3  ;;  %v3189_v4 = vmax.f32 %v9871_v33, %v3157_v32  ;;  %v3920_v7 = vmax.f32 %v3856_v24, %v3888_v52  ;;  %v5463_v12 = vmul.f32 -1.442695, %v10209_v25 }
 0x30a   : > { %v3921_v29 = vmax.f32 %v3857_v19, %v3889_v63  ;;  %v4444_v8 = vadd.f32 %v4376_v55, %v10113_v57  ;;  %vm4764_vm3 = vweird.f32 %v5679_v59  ;;  %v10219_v58 = vmax.f32 %v3188_v27, %v9615_v62 }
 0x30b   : > { %v4761_v30 = vmul.f32 %v5679_v59, %v4760_v26  ;;  %v10222_v37 = vmax.f32 %v3189_v4, %v9620_v11  ;;  %v3952_v17 = vmax.f32 %v3920_v7, %v10126_v34  ;;  %5680 = vpow2.f32 %v5463_v12  ;;  %vm4765_vm14 = vmor %vm4763_vm1, %vm4764_vm3 }
 0x30c   : > { %v3953_v15 = vmax.f32 %v3921_v29, %v10136_v39  ;;  %v4480_v33 = vmul.f32 %v10186_v49, %v4444_v8  ;;  %v3460_v19 = vrot.slane %v10219_v58, 7  ;;  %v3556_v10 = vrot.slane %v10219_v58, 6 }
 0x30d   : > { %v4762_v24 = vadd.f32 %v5679_v59, %v4761_v30  ;;  %v3476_v57 = vrot.slane %v10222_v37, 7  ;;  %3984 = vst.msk [vmem:[#allocation2 + $0xf0] sm:$0xff] %vm280_vm13, %v3952_v17  ;;  %v3572_v39 = vrot.slane %v10222_v37, 6  ;;  %v3652_v54 = vrot.slane %v10219_v58, 1 }
 0x30e   : > { %v10234_v34 = vadd.f32 %v10206_v50, %v4480_v33  ;;  %v3668_v42 = vrot.slane %v10222_v37, 1  ;;  %vm4768_vm15 = vcmp.eq.f32.partialorder %v4767_v16, 8.507059e+37  ;;  %3985 = vst.msk [vmem:[#allocation2 + $0xf8] sm:$0xff] %vm280_vm13, %v3953_v15  ;;  %v4204_v36 = vmax.f32 %v4076_v0, %v4172_v51 }
 0x30f   : > { %v4766_v32 = vsel %vm4765_vm14, %v5679_v59, %v4762_v24  ;;  %v3508_v22 = vsel %vm11006_vm10, %v3476_v57, %v3460_v19  ;;  %v3492_v59 = vsel %vm11008_vm4, %v3460_v19, %v3476_v57  ;;  %v3748_v52 = vrot.slane %v10219_v58, 2 }
 0x310   : > { %v4771_v3 = vsel %vm4768_vm15, %v4770_v28, %v4766_v32  ;;  %v5464_v2 = vmul.f32 -1.442695, %v10234_v34  ;;  %v3538_v27 = vsel %vm1260_vm5, %v3508_v22, -inf  ;;  %v3588_v23 = vsel %vm1414_vm2, %v3556_v10, %v3572_v39  ;;  %v10287_v30 = vpop.f32.mrf.mxu1  ;;  %v10302_v32 = vpop.f32.mrf.mxu3  ;;  %v4015_v22 = vld [vmem:[#allocation2 + $0xc8] sm:$0xff] }
 0x311   : > { %v5154_v63 = vmul.f32 %v4771_v3, %v10080_v20  ;;  %v3604_v31 = vsel %vm1414_vm2, %v3572_v39, %v3556_v10  ;;  %v5681_v0 = vpop.eup %5680  ;;  %v3700_v26 = vsel %vm1511_vm7, %v3668_v42, %v3652_v54  ;;  %v3764_v16 = vrot.slane %v10222_v37, 2  ;;  %v4014_v10 = vld [vmem:[#allocation2 + $0xc0] sm:$0xff]  ;;  %v10298_v39 = vpop.f32.mrf.mxu2 }
 0x312   : > { %5682 = vpow2.f32 %v5464_v2  ;;  %v3634_v51 = vsel %vm1262_vm6, %v3604_v31, -inf  ;;  %v4205_v20 = vmax.f32 %v4077_v38, %v4173_v1  ;;  %v10272_v28 = vadd.f32 1.0, %v5681_v0  ;;  %v4378_v1 = vpop.f32.mrf.mxu0 }
 0x313   : > { %5187 = vst.msk [vmem:[%s9709_s10 + $0x30] sm:$0xff] %vm5180_vm0, %v5154_v63  ;;  %v3684_v55 = vsel %vm1511_vm7, %v3652_v54, %v3668_v42  ;;  %v3731_v4 = vsel %vm1265_vm9, %v3700_v26, -inf  ;;  %v3780_v7 = vsel %vm10992_vm8, %v3748_v52, %v3764_v16  ;;  %v3796_v29 = vsel %vm11009_vm11, %v3764_v16, %v3748_v52 }
 0x314   : > { %v3858_v12 = vmax.f32 %v3634_v51, %v3538_v27  ;;  %v2367_v8 = vadd.f32 %v10170_v56, %v10155_v14  ;;  %v2370_v45 = vadd.f32 %v2369_v44, %v2229_v43  ;;  %v10284_v46 = vld [vmem:[#allocation2 + $0xf0] sm:$0xff]  ;;  %5684 = vrcp.f32 %v10272_v28 }
 0x315   : > { %v3859_v38 = vmax.f32 %v3588_v23, %v3492_v59  ;;  %v10289_v17 = vld [vmem:[#allocation2 + $0xf8] sm:$0xff]  ;;  %v4268_v15 = vmax.f32 %v4204_v36, %v10284_v46  ;;  %v3827_v33 = vsel %vm1267_vm12, %v3796_v29, -inf  ;;  %v3890_v24 = vmax.f32 %v3684_v55, %v3780_v7 }
 0x316   : > { %v3158_v14 = vmax.f32 %v10115_v21, %v9615_v62  ;;  %v3423_v56 = vadd.f32 %v10175_v60, %v2367_v8  ;;  %v4269_v43 = vmax.f32 %v4205_v20, %v10289_v17  ;;  %v3424_v19 = vadd.f32 %v3359_v41, %v2370_v45 }
 0x317   : > { %v3891_v57 = vmax.f32 %v3731_v4, %v3827_v33  ;;  %v4782_v54 = vand.u32 2147483647, %v10272_v28  ;;  %v4784_v42 = vand.u32 2147483648, %v10272_v28  ;;  %v3922_v36 = vmax.f32 %v3858_v12, %v3890_v24 }
 0x318   : > { %v5683_v44 = vpop.eup %5682  ;;  %v3270_v62 = vpack.c.bf16 %v10222_v37, %v10219_v58  ;;  %v4289_v21 = vpack.c.bf16 %v4269_v43, %v4268_v15  ;;  %v4445_v3 = vadd.f32 %v4378_v1, %v3423_v56  ;;  %v4078_v59 = vmax.f32 %v4014_v10, %v9850_v18  ;;  %v10350_v29 = vpop.f32.mrf.mxu1 }
 0x319   : > { %v10306_v60 = vadd.f32 1.0, %v5683_v44  ;;  %v3923_v41 = vmax.f32 %v3859_v38, %v3891_v57  ;;  %v3954_v2 = vmax.f32 %v3922_v36, %v10219_v58  ;;  %v3159_v52 = vmax.f32 %v10123_v53, %v9620_v11 }
 0x31a   : > { %5437 = vmatmul.msk.bf16.gmra.mxu3 %vm280_vm13, %v3270_v62  ;;  %v3190_v63 = vmax.f32 %v10093_v48, %v3158_v14  ;;  %v5685_v27 = vpop.eup %5684  ;;  %5451 = vmatmul.msk.bf16.gmra.mxu0 %vm280_vm13, %v4289_v21  ;;  %v4079_v23 = vmax.f32 %v4015_v22, %v9855_v9  ;;  %v10319_v31 = vmax.f32 %v10082_v61, %v10284_v46  ;;  %vm4778_vm1 = vweird.f32 %v10272_v28  ;;  %v4381_v7 = vpop.f32.mrf.mxu0 }
 0x31b   : > { %5686 = vrcp.f32 %v10306_v60  ;;  %v10323_v18 = vmax.f32 %v10084_v6, %v10289_v17  ;;  %v4774_v58 = vmul.f32 %v5685_v27, %v10272_v28  ;;  %v3955_v11 = vmax.f32 %v3923_v41, %v10222_v37  ;;  %3986 = vst.msk [vmem:[#allocation2 + $0x100] sm:$0xff] %vm280_vm13, %v3954_v2 }
 0x31c   : > { %v4481_v48 = vmul.f32 %v10186_v49, %v4445_v3  ;;  %vm10330_vm3 = vcmp.eq.f32.partialorder %v4782_v54, 8.507059e+37  ;;  %v4785_v53 = vor.u32 1.1754944e-38, %v4784_v42  ;;  %v3191_v0 = vmax.f32 %v10099_v40, %v3159_v52 }
 0x31d   : > { %v10336_v51 = vmax.f32 %v3190_v63, %v9864_v13  ;;  %v4775_v26 = vsub.f32 1.0, %v4774_v58  ;;  %v4797_v16 = vand.u32 2147483647, %v10306_v60  ;;  %v4799_v20 = vand.u32 2147483648, %v10306_v60  ;;  %3987 = vst.msk [vmem:[#allocation2 + $0x108] sm:$0xff] %vm280_vm13, %v3955_v11 }
 0x31e   : > { %v10342_v37 = vadd.f32 %v10206_v50, %v4481_v48  ;;  %v4206_v55 = vmax.f32 %v4078_v59, %v10319_v31  ;;  %v4207_v4 = vmax.f32 %v4079_v23, %v10323_v18  ;;  %v10347_v40 = vmax.f32 %v3191_v0, %v9880_v47  ;;  %v10357_v47 = vpop.f32.mrf.mxu2 }
 0x31f   : > { %v3461_v13 = vrot.slane %v10336_v51, 7  ;;  %v4776_v12 = vmul.f32 %v5685_v27, %v4775_v26  ;;  %vm4779_vm14 = vweird.f32 %v5685_v27  ;;  %v4446_v45 = vadd.f32 %v4381_v7, %v3424_v19  ;;  %v10364_v19 = vpop.f32.mrf.mxu3 }
 0x320   : > { %v5465_v8 = vmul.f32 -1.442695, %v10342_v37  ;;  %vm4793_vm15 = vweird.f32 %v10306_v60  ;;  %v3477_v1 = vrot.slane %v10347_v40, 7  ;;  %v3557_v15 = vrot.slane %v10336_v51, 6  ;;  %vm4780_vm4 = vmor %vm4778_vm1, %vm4779_vm14 }
 0x321   : > { %v5687_v38 = vpop.eup %5686  ;;  %v3573_v33 = vrot.slane %v10347_v40, 6  ;;  %v4777_v24 = vadd.f32 %v5685_v27, %v4776_v12  ;;  %vm10360_vm10 = vcmp.eq.f32.partialorder %v4797_v16, 8.507059e+37  ;;  %v4800_v43 = vor.u32 1.1754944e-38, %v4799_v20 }
 0x322   : > { %v4789_v14 = vmul.f32 %v5687_v38, %v10306_v60  ;;  %5688 = vpow2.f32 %v5465_v8  ;;  %v10369_v57 = vld [vmem:[#allocation2 + $0x100] sm:$0xff]  ;;  %v4482_v10 = vmul.f32 %v10186_v49, %v4446_v45  ;;  %vm11014_vm8 = vcmp.lt.s32.totalorder %v5916_v5, 1  ;;  %v4383_v8 = vpop.f32.mrf.mxu0 }
 0x323   : > { %v3509_v44 = vsel %vm11014_vm8, %v3477_v1, %v3461_v13  ;;  %v3653_v54 = vrot.slane %v10336_v51, 1  ;;  %v3669_v42 = vrot.slane %v10347_v40, 1  ;;  %v4781_v36 = vsel %vm4780_vm4, %v5685_v27, %v4777_v24  ;;  %vm11015_vm1 = vmmov %vm11014_vm8 }
 0x324   : > { %v4790_v22 = vsub.f32 1.0, %v4789_v14  ;;  %vm4794_vm11 = vweird.f32 %v5687_v38  ;;  %v4270_v62 = vmax.f32 %v4206_v55, %v10369_v57  ;;  %v4786_v28 = vsel %vm10330_vm3, %v4785_v53, %v4781_v36  ;;  %v10379_v21 = vld [vmem:[#allocation2 + $0x108] sm:$0xff] }
 0x325   : > { %v10382_v41 = vadd.f32 %v10206_v50, %v4482_v10  ;;  %v3493_v3 = vsel %vm11015_vm1, %v3461_v13, %v3477_v1  ;;  %v3605_v2 = vsel %vm1414_vm2, %v3573_v33, %v3557_v15  ;;  %v5155_v59 = vmul.f32 %v4786_v28, %v10209_v25 }
 0x326   : > { %v4791_v52 = vmul.f32 %v5687_v38, %v4790_v22  ;;  %v4271_v63 = vmax.f32 %v4207_v4, %v10379_v21  ;;  %v3540_v27 = vsel %vm1260_vm5, %v3509_v44, -inf  ;;  %v3636_v58 = vsel %vm1262_vm6, %v3605_v2, -inf  ;;  %vm4795_vm5 = vmor %vm4793_vm15, %vm4794_vm11  ;;  %v10412_v4 = vpop.f32.mrf.mxu1 }
 0x327   : > { %v5466_v23 = vmul.f32 -1.442695, %v10382_v41  ;;  %v3701_v11 = vsel %vm1511_vm7, %v3669_v42, %v3653_v54  ;;  %v3749_v48 = vrot.slane %v10336_v51, 2  ;;  %5188 = vst.msk [vmem:[%s9709_s10 + $0x38] sm:$0xff] %vm5180_vm0, %v5155_v59  ;;  %v3589_v0 = vsel %vm1414_vm2, %v3557_v15, %v3573_v33  ;;  %v2376_v15 = vpop.f32.mrf.mxu2  ;;  %v10425_v24 = vpop.f32.mrf.mxu3 }
 0x328   : > { %v5689_v9 = vpop.eup %5688  ;;  %v4792_v25 = vadd.f32 %v5687_v38, %v4791_v52  ;;  %v4290_v53 = vpack.c.bf16 %v4271_v63, %v4270_v62  ;;  %v3765_v26 = vrot.slane %v10347_v40, 2  ;;  %v3685_v20 = vsel %vm1511_vm7, %v3653_v54, %v3669_v42  ;;  %v4016_v54 = vld [vmem:[#allocation2 + $0xd0] sm:$0xff] }
 0x329   : > { %v10406_v16 = vadd.f32 1.0, %v5689_v9  ;;  %5690 = vpow2.f32 %v5466_v23  ;;  %v3733_v55 = vsel %vm1265_vm9, %v3701_v11, -inf  ;;  %vm11016_vm2 = vcmp.lt.s32.totalorder %v5916_v5, 6 }
 0x32a   : > { %v4796_v7 = vsel %vm4795_vm5, %v5687_v38, %v4792_v25  ;;  %v3781_v13 = vsel %vm11016_vm2, %v3749_v48, %v3765_v26  ;;  %vm11017_vm6 = vmmov %vm11016_vm2  ;;  %v3860_v12 = vmax.f32 %v3636_v58, %v3540_v27  ;;  %v2372_v45 = vadd.f32 %v10298_v39, %v10287_v30  ;;  %5452 = vmatmul.msk.bf16.gmra.mxu0 %vm280_vm13, %v4290_v53 }
 0x32b   : > { %v3797_v60 = vsel %vm11017_vm6, %v3765_v26, %v3749_v48  ;;  %v4801_v1 = vsel %vm10360_vm10, %v4800_v43, %v4796_v7  ;;  %5692 = vrcp.f32 %v10406_v16  ;;  %v3861_v38 = vmax.f32 %v3589_v0, %v3493_v3 }
 0x32c   : > { %v5156_v33 = vmul.f32 %v4801_v1, %v10234_v34  ;;  %v3829_v5 = vsel %vm1267_vm12, %v3797_v60, -inf  ;;  %v3892_v14 = vmax.f32 %v3685_v20, %v3781_v13  ;;  %v3425_v10 = vadd.f32 %v10302_v32, %v2372_v45 }
 0x32d   : > { %v3893_v30 = vmax.f32 %v3733_v55, %v3829_v5  ;;  %v3271_v56 = vpack.c.bf16 %v10347_v40, %v10336_v51  ;;  %v2375_v32 = vadd.f32 %v10357_v47, %v10350_v29  ;;  %v4080_v2 = vmax.f32 %v4016_v54, %v10082_v61  ;;  %v4386_v61 = vpop.f32.mrf.mxu0 }
 0x32e   : > { %5189 = vst.msk [vmem:[%s9709_s10 + $0x40] sm:$0xff] %vm5180_vm0, %v5156_v33  ;;  %v3924_v39 = vmax.f32 %v3860_v12, %v3892_v14  ;;  %v4447_v42 = vadd.f32 %v4383_v8, %v3425_v10  ;;  %v10455_v29 = vmax.f32 %v10289_v17, %v10379_v21  ;;  %v2239_v52 = vpop.f32.mrf.mxu1  ;;  %v4814_v27 = vand.u32 2147483648, %v10406_v16 }
 0x32f   : > { %v5691_v43 = vpop.eup %5690  ;;  %v3925_v44 = vmax.f32 %v3861_v38, %v3893_v30  ;;  %5438 = vmatmul.msk.bf16.gmra.mxu3 %vm280_vm13, %v3271_v56  ;;  %v3426_v59 = vadd.f32 %v10364_v19, %v2375_v32  ;;  %v2379_v19 = vpop.f32.mrf.mxu2  ;;  %vm4808_vm9 = vweird.f32 %v10406_v16  ;;  %v2377_v7 = vadd.f32 %v2376_v15, %v10412_v4 }
 0x330   : > { %v10434_v34 = vadd.f32 1.0, %v5691_v43  ;;  %v3956_v36 = vmax.f32 %v3924_v39, %v10336_v51  ;;  %v4483_v28 = vmul.f32 %v10186_v49, %v4447_v42  ;;  %v10448_v51 = vmax.f32 %v10284_v46, %v10369_v57  ;;  %v3369_v17 = vpop.f32.mrf.mxu3 }
 0x331   : > { %v5693_v22 = vpop.eup %5692  ;;  %v3957_v62 = vmax.f32 %v3925_v44, %v10347_v40  ;;  %v4081_v40 = vmax.f32 %v4017_v35, %v10084_v6  ;;  %v4448_v23 = vadd.f32 %v4386_v61, %v3426_v59  ;;  %v4812_v6 = vand.u32 2147483647, %v10406_v16 }
 0x332   : > { %v4804_v3 = vmul.f32 %v5693_v22, %v10406_v16  ;;  %5694 = vrcp.f32 %v10434_v34  ;;  %3988 = vst.msk [vmem:[#allocation2 + $0x110] sm:$0xff] %vm280_vm13, %v3956_v36  ;;  %v10458_v47 = vadd.f32 %v10206_v50, %v4483_v28  ;;  %vm4809_vm7 = vweird.f32 %v5693_v22 }
 0x333   : > { %3989 = vst.msk [vmem:[#allocation2 + $0x118] sm:$0xff] %vm280_vm13, %v3957_v62  ;;  %v4208_v11 = vmax.f32 %v4080_v2, %v10448_v51  ;;  %v4209_v48 = vmax.f32 %v4081_v40, %v10455_v29  ;;  %v4484_v9 = vmul.f32 %v10186_v49, %v4448_v23  ;;  %vm4810_vm12 = vmor %vm4808_vm9, %vm4809_vm7  ;;  %v4815_v0 = vor.u32 1.1754944e-38, %v4814_v27  ;;  %v4242_v23 = vld [vmem:[#allocation2 + $0x120] sm:$0xff] }
 0x334   : > { %v4805_v63 = vsub.f32 1.0, %v4804_v3  ;;  %v5467_v46 = vmul.f32 -1.442695, %v10458_v47  ;;  %vm4813_vm3 = vcmp.eq.f32.partialorder %v4812_v6, 8.507059e+37  ;;  %v4827_v33 = vand.u32 2147483647, %v10434_v34 }
 0x335   : > { %v10471_v55 = vadd.f32 %v10206_v50, %v4484_v9  ;;  %v4829_v5 = vand.u32 2147483648, %v10434_v34  ;;  %v3427_v4 = vadd.f32 %v10425_v24, %v2377_v7  ;;  %v4388_v15 = vpop.f32.mrf.mxu0  ;;  %vm4823_vm15 = vweird.f32 %v10434_v34 }
 0x336   : > { %v4806_v58 = vmul.f32 %v5693_v22, %v4805_v63  ;;  %5696 = vpow2.f32 %v5467_v46  ;;  %v2241_v39 = vpop.f32.mrf.mxu1  ;;  %v2380_v54 = vadd.f32 %v2379_v19, %v2239_v52  ;;  %vm4828_vm4 = vcmp.eq.f32.partialorder %v4827_v33, 8.507059e+37  ;;  %v4243_v19 = vld [vmem:[#allocation2 + $0x128] sm:$0xff] }
 0x337   : > { %v5468_v1 = vmul.f32 -1.442695, %v10471_v55  ;;  %v4449_v43 = vadd.f32 %v4388_v15, %v3427_v4  ;;  %v4830_v24 = vor.u32 1.1754944e-38, %v4829_v5 }
 0x338   : > { %v5695_v25 = vpop.eup %5694  ;;  %v4807_v53 = vadd.f32 %v5693_v22, %v4806_v58  ;;  %v3371_v42 = vpop.f32.mrf.mxu3  ;;  %v3428_v3 = vadd.f32 %v3369_v17, %v2380_v54 }
 0x339   : > { %v4819_v26 = vmul.f32 %v5695_v25, %v10434_v34  ;;  %v10468_v20 = vld [vmem:[#allocation2 + $0x110] sm:$0xff]  ;;  %vm4824_vm14 = vweird.f32 %v5695_v25  ;;  %5698 = vpow2.f32 %v5468_v1  ;;  %v4485_v34 = vmul.f32 %v10186_v49, %v4449_v43 }
 0x33a   : > { %v4811_v13 = vsel %vm4810_vm12, %v5693_v22, %v4807_v53  ;;  %v10474_v60 = vld [vmem:[#allocation2 + $0x118] sm:$0xff]  ;;  %v4272_v12 = vmax.f32 %v4208_v11, %v10468_v20  ;;  %vm4825_vm10 = vmor %vm4823_vm15, %vm4824_vm14  ;;  %v4178_v35 = vmax.f32 %v10369_v57, %v10468_v20  ;;  %v4180_v33 = vmax.f32 %v10468_v20, %v4242_v23 }
 0x33b   : > { %v4816_v8 = vsel %vm4813_vm3, %v4815_v0, %v4811_v13  ;;  %v4820_v16 = vsub.f32 1.0, %v4819_v26  ;;  %v4273_v45 = vmax.f32 %v4209_v48, %v10474_v60  ;;  %v4179_v22 = vmax.f32 %v10379_v21, %v10474_v60 }
 0x33c   : > { %v5157_v38 = vmul.f32 %v4816_v8, %v10342_v37  ;;  %v5697_v14 = vpop.eup %5696  ;;  %v2381_v37 = vpop.f32.mrf.mxu2  ;;  %v10497_v2 = vadd.f32 %v10206_v50, %v4485_v34  ;;  %v4210_v57 = vmax.f32 %v10319_v31, %v4178_v35 }
 0x33d   : > { %v4821_v10 = vmul.f32 %v5695_v25, %v4820_v16  ;;  %v4291_v30 = vpack.c.bf16 %v4273_v45, %v4272_v12  ;;  %v10485_v56 = vadd.f32 1.0, %v5697_v14  ;;  %v4391_v40 = vpop.f32.mrf.mxu0  ;;  %v4211_v52 = vmax.f32 %v10323_v18, %v4179_v22 }
 0x33e   : > { %5190 = vst.msk [vmem:[%s9709_s10 + $0x48] sm:$0xff] %vm5180_vm0, %v5157_v38  ;;  %v5469_v21 = vmul.f32 -1.442695, %v10497_v2  ;;  %v4450_v63 = vadd.f32 %v4391_v40, %v3428_v3  ;;  %v2244_v46 = vpop.f32.mrf.mxu1  ;;  %v4274_v6 = vmax.f32 %v4210_v57, %v4242_v23  ;;  %v2382_v17 = vadd.f32 %v2381_v37, %v2241_v39  ;;  %v4244_v57 = vld [vmem:[#allocation2 + $0x130] sm:$0xff] }
 0x33f   : > { %v4822_v44 = vadd.f32 %v5695_v25, %v4821_v10  ;;  %5453 = vmatmul.msk.bf16.gmra.mxu0 %vm280_vm13, %v4291_v30  ;;  %5700 = vrcp.f32 %v10485_v56  ;;  %v5699_v62 = vpop.eup %5698  ;;  %v4275_v11 = vmax.f32 %v4211_v52, %v4243_v19  ;;  %v4844_v48 = vand.u32 2147483648, %v10485_v56  ;;  %v4245_v52 = vld [vmem:[#allocation2 + $0x138] sm:$0xff] }
 0x340   : > { %v10499_v59 = vadd.f32 1.0, %v5699_v62  ;;  %v4486_v27 = vmul.f32 %v10186_v49, %v4450_v63  ;;  %v3374_v9 = vpop.f32.mrf.mxu3  ;;  %v4842_v53 = vand.u32 2147483647, %v10485_v56  ;;  %vm4838_vm11 = vweird.f32 %v10485_v56 }
 0x341   : > { %v4826_v36 = vsel %vm4825_vm10, %v5695_v25, %v4822_v44  ;;  %v3429_v7 = vadd.f32 %v3371_v42, %v2382_v17  ;;  %v4292_v45 = vpack.c.bf16 %v4275_v11, %v4274_v6  ;;  %v4845_v1 = vor.u32 1.1754944e-38, %v4844_v48 }
 0x342   : > { %v4831_v32 = vsel %vm4828_vm4, %v4830_v24, %v4826_v36  ;;  %5702 = vrcp.f32 %v10499_v59  ;;  %v10510_v31 = vadd.f32 %v10206_v50, %v4486_v27  ;;  %vm4843_vm5 = vcmp.eq.f32.partialorder %v4842_v53, 8.507059e+37 }
 0x343   : > { %v5158_v28 = vmul.f32 %v4831_v32, %v10382_v41  ;;  %5704 = vpow2.f32 %v5469_v21  ;;  %v4181_v14 = vmax.f32 %v10474_v60, %v4243_v19  ;;  %v4857_v30 = vand.u32 2147483647, %v10499_v59 }
 0x344   : > { %v2384_v18 = vpop.f32.mrf.mxu2  ;;  %v5470_v0 = vmul.f32 -1.442695, %v10510_v31  ;;  %v4859_v39 = vand.u32 2147483648, %v10499_v59  ;;  %vm4853_vm6 = vweird.f32 %v10499_v59  ;;  %v4212_v22 = vmax.f32 %v10448_v51, %v4180_v33 }
 0x345   : > { %5191 = vst.msk [vmem:[%s9709_s10 + $0x50] sm:$0xff] %vm5180_vm0, %v5158_v28  ;;  %v5701_v61 = vpop.eup %5700  ;;  %v4393_v13 = vpop.f32.mrf.mxu0  ;;  %v2385_v42 = vadd.f32 %v2384_v18, %v2244_v46  ;;  %vm4858_vm9 = vcmp.eq.f32.partialorder %v4857_v30, 8.507059e+37  ;;  %v4213_v32 = vmax.f32 %v10455_v29, %v4181_v14 }
 0x346   : > { %v4834_v41 = vmul.f32 %v5701_v61, %v10485_v56  ;;  %vm4839_vm8 = vweird.f32 %v5701_v61  ;;  %5706 = vpow2.f32 %v5470_v0  ;;  %v4451_v5 = vadd.f32 %v4393_v13, %v3429_v7  ;;  %v2246_v44 = vpop.f32.mrf.mxu1 }
 0x347   : > { %vm4840_vm1 = vmor %vm4838_vm11, %vm4839_vm8  ;;  %v4860_v36 = vor.u32 1.1754944e-38, %v4859_v39  ;;  %v3430_v40 = vadd.f32 %v3374_v9, %v2385_v42  ;;  %v4276_v29 = vmax.f32 %v4212_v22, %v4244_v57 }
 0x348   : > { %v4835_v58 = vsub.f32 1.0, %v4834_v41  ;;  %v5703_v26 = vpop.eup %5702  ;;  %v4487_v20 = vmul.f32 %v10186_v49, %v4451_v5  ;;  %v4277_v41 = vmax.f32 %v4213_v32, %v4245_v52 }
 0x349   : > { %v5705_v12 = vpop.eup %5704  ;;  %v4849_v16 = vmul.f32 %v5703_v26, %v10499_v59  ;;  %vm4854_vm2 = vweird.f32 %v5703_v26 }
 0x34a   : > { %v4836_v25 = vmul.f32 %v5701_v61, %v4835_v58  ;;  %v10517_v38 = vadd.f32 1.0, %v5705_v12  ;;  %v10531_v60 = vadd.f32 %v10206_v50, %v4487_v20  ;;  %vm4855_vm7 = vmor %vm4853_vm6, %vm4854_vm2  ;;  %v4293_v9 = vpack.c.bf16 %v4277_v41, %v4276_v29 }
 0x34b   : > { %v4850_v15 = vsub.f32 1.0, %v4849_v16 }
 0x34c   : > { %v4837_v8 = vadd.f32 %v5701_v61, %v4836_v25  ;;  %5708 = vrcp.f32 %v10517_v38  ;;  %v5707_v37 = vpop.eup %5706  ;;  %v2386_v24 = vpop.f32.mrf.mxu2  ;;  %v5471_v62 = vmul.f32 -1.442695, %v10531_v60  ;;  %v4872_v46 = vand.u32 2147483647, %v10517_v38 }
 0x34d   : > { %v4851_v43 = vmul.f32 %v5703_v26, %v4850_v15  ;;  %v10533_v35 = vadd.f32 1.0, %v5707_v37  ;;  %v4396_v28 = vpop.f32.mrf.mxu0  ;;  %v2387_v27 = vadd.f32 %v2386_v24, %v2246_v44  ;;  %v4874_v23 = vand.u32 2147483648, %v10517_v38 }
 0x34e   : > { %v4841_v4 = vsel %vm4840_vm1, %v5701_v61, %v4837_v8  ;;  %v4452_v51 = vadd.f32 %v4396_v28, %v3430_v40  ;;  %vm4868_vm3 = vweird.f32 %v10517_v38  ;;  %vm4873_vm15 = vcmp.eq.f32.partialorder %v4872_v46, 8.507059e+37 }
 0x34f   : > { %5454 = vmatmul.msk.bf16.gmra.mxu0 %vm280_vm13, %v4292_v45  ;;  %v4846_v10 = vsel %vm4843_vm5, %v4845_v1, %v4841_v4  ;;  %v4852_v54 = vadd.f32 %v5703_v26, %v4851_v43  ;;  %5710 = vrcp.f32 %v10533_v35  ;;  %v4887_v45 = vand.u32 2147483647, %v10533_v35 }
 0x350   : > { %v5159_v56 = vmul.f32 %v4846_v10, %v10458_v47  ;;  %v3376_v47 = vpop.f32.mrf.mxu3  ;;  %5712 = vpow2.f32 %v5471_v62  ;;  %v4488_v19 = vmul.f32 %v10186_v49, %v4452_v51  ;;  %v4889_v33 = vand.u32 2147483648, %v10533_v35 }
 0x351   : > { %v4856_v34 = vsel %vm4855_vm7, %v5703_v26, %v4852_v54  ;;  %v3431_v11 = vadd.f32 %v3376_v47, %v2387_v27  ;;  %v4875_v26 = vor.u32 1.1754944e-38, %v4874_v23  ;;  %vm4888_vm8 = vcmp.eq.f32.partialorder %v4887_v45, 8.507059e+37 }
 0x352   : > { %5192 = vst.msk [vmem:[%s9709_s10 + $0x58] sm:$0xff] %vm5180_vm0, %v5159_v56  ;;  %v5709_v3 = vpop.eup %5708  ;;  %v4861_v59 = vsel %vm4858_vm9, %v4860_v36, %v4856_v34  ;;  %v10547_v18 = vadd.f32 %v10206_v50, %v4488_v19  ;;  %v4890_v39 = vor.u32 1.1754944e-38, %v4889_v33 }
 0x353   : > { %v5160_v21 = vmul.f32 %v4861_v59, %v10471_v55  ;;  %v4864_v63 = vmul.f32 %v5709_v3, %v10517_v38  ;;  %vm4869_vm12 = vweird.f32 %v5709_v3  ;;  %v2249_v55 = vpop.f32.mrf.mxu1 }
 0x354   : > { %v2389_v0 = vpop.f32.mrf.mxu2  ;;  %vm4870_vm14 = vmor %vm4868_vm3, %vm4869_vm12  ;;  %v5472_v13 = vmul.f32 -1.442695, %v10547_v18 }
 0x355   : > { %5193 = vst.msk [vmem:[%s9709_s10 + $0x60] sm:$0xff] %vm5180_vm0, %v5160_v21  ;;  %v4865_v61 = vsub.f32 1.0, %v4864_v63  ;;  %v5711_v6 = vpop.eup %5710  ;;  %v4398_v25 = vpop.f32.mrf.mxu0  ;;  %v2390_v14 = vadd.f32 %v2389_v0, %v2249_v55 }
 0x356   : > { %v4879_v48 = vmul.f32 %v5711_v6, %v10533_v35  ;;  %v5713_v53 = vpop.eup %5712  ;;  %v4453_v12 = vadd.f32 %v4398_v25, %v3431_v11  ;;  %5714 = vpow2.f32 %v5472_v13  ;;  %vm4884_vm10 = vweird.f32 %v5711_v6 }
 0x357   : > { %v4866_v58 = vmul.f32 %v5709_v3, %v4865_v61  ;;  %v4651_v1 = vadd.f32 1.0, %v5713_v53 }
 0x358   : > { %v3379_v7 = vpop.f32.mrf.mxu3  ;;  %v4880_v16 = vsub.f32 1.0, %v4879_v48  ;;  %v4489_v5 = vmul.f32 %v10186_v49, %v4453_v12 }
 0x359   : > { %v4867_v17 = vadd.f32 %v5709_v3, %v4866_v58  ;;  %5716 = vrcp.f32 %v4651_v1  ;;  %v3432_v56 = vadd.f32 %v3379_v7, %v2390_v14  ;;  %v4904_v59 = vand.u32 2147483648, %v4651_v1 }
 0x35a   : > { %v4881_v15 = vmul.f32 %v5711_v6, %v4880_v16  ;;  %v10558_v10 = vadd.f32 %v10206_v50, %v4489_v5  ;;  %vm4898_vm1 = vweird.f32 %v4651_v1 }
 0x35b   : > { %v4871_v8 = vsel %vm4870_vm14, %v5709_v3, %v4867_v17  ;;  %v2251_v37 = vpop.f32.mrf.mxu1  ;;  %v4905_v27 = vor.u32 1.1754944e-38, %v4904_v59 }
 0x35c   : > { %v4876_v38 = vsel %vm4873_vm15, %v4875_v26, %v4871_v8  ;;  %v4882_v30 = vadd.f32 %v5711_v6, %v4881_v15  ;;  %v5473_v43 = vmul.f32 -1.442695, %v10558_v10  ;;  %v5715_v44 = vpop.eup %5714  ;;  %v2391_v22 = vpop.f32.mrf.mxu2 }
 0x35d   : > { %v5161_v4 = vmul.f32 %v4876_v38, %v10497_v2  ;;  %v4401_v2 = vpop.f32.mrf.mxu0  ;;  %v4652_v47 = vadd.f32 1.0, %v5715_v44  ;;  %v2392_v62 = vadd.f32 %v2391_v22, %v2251_v37 }
 0x35e   : > { %5718 = vpow2.f32 %v5473_v43  ;;  %v4454_v24 = vadd.f32 %v4401_v2, %v3432_v56 }
 0x35f   : > { %5455 = vmatmul.msk.bf16.gmra.mxu0 %vm280_vm13, %v4293_v9  ;;  %5194 = vst.msk [vmem:[%s9709_s10 + $0x68] sm:$0xff] %vm5180_vm0, %v5161_v4  ;;  %vm4883_vm13 = vweird.f32 %v10533_v35  ;;  %v5717_v42 = vpop.eup %5716  ;;  %5720 = vrcp.f32 %v4652_v47  ;;  %v4919_v53 = vand.u32 2147483648, %v4652_v47  ;;  %v4917_v7 = vand.u32 2147483647, %v4652_v47 }
 0x360   : > { %vm4885_vm4 = vmor %vm4883_vm13, %vm4884_vm10  ;;  %v4894_v35 = vmul.f32 %v5717_v42, %v4651_v1  ;;  %v3381_v34 = vpop.f32.mrf.mxu3  ;;  %v4490_v32 = vmul.f32 %v10186_v49, %v4454_v24  ;;  %vm4899_vm11 = vweird.f32 %v5717_v42  ;;  %vm4913_vm7 = vweird.f32 %v4652_v47 }
 0x361   : > { %v4886_v20 = vsel %vm4885_vm4, %v5711_v6, %v4882_v30  ;;  %v3433_v40 = vadd.f32 %v3381_v34, %v2392_v62  ;;  %vm4900_vm5 = vmor %vm4898_vm1, %vm4899_vm11  ;;  %v4920_v38 = vor.u32 1.1754944e-38, %v4919_v53  ;;  %vm4918_vm12 = vcmp.eq.f32.partialorder %v4917_v7, 8.507059e+37 }
 0x362   : > { %v4891_v54 = vsel %vm4888_vm8, %v4890_v39, %v4886_v20  ;;  %v4895_v28 = vsub.f32 1.0, %v4894_v35  ;;  %v10569_v3 = vadd.f32 %v10206_v50, %v4490_v32 }
 0x363   : > { %v5162_v36 = vmul.f32 %v4891_v54, %v10510_v31  ;;  %v4902_v31 = vand.u32 2147483647, %v4651_v1  ;;  %v2254_v46 = vpop.f32.mrf.mxu1 }
 0x364   : > { %v5719_v57 = vpop.eup %5718  ;;  %v4896_v52 = vmul.f32 %v5717_v42, %v4895_v28  ;;  %v5474_v21 = vmul.f32 -1.442695, %v10569_v3  ;;  %v2394_v55 = vpop.f32.mrf.mxu2 }
 0x365   : > { %5195 = vst.msk [vmem:[%s9709_s10 + $0x70] sm:$0xff] %vm5180_vm0, %v5162_v36  ;;  %v10572_v63 = vadd.f32 1.0, %v5719_v57  ;;  %v4403_v51 = vpop.f32.mrf.mxu0  ;;  %v5721_v41 = vpop.eup %5720  ;;  %vm4903_vm2 = vcmp.eq.f32.partialorder %v4902_v31, 8.507059e+37  ;;  %v2395_v25 = vadd.f32 %v2394_v55, %v2254_v46  ;;  %v10601_v31 = vld [vmem:[%s10709_s5] ss:$0 sm:$0xff] }
 0x366   : > { %v4897_v61 = vadd.f32 %v5717_v42, %v4896_v52  ;;  %5722 = vpow2.f32 %v5474_v21  ;;  %v4455_v29 = vadd.f32 %v4403_v51, %v3433_v40  ;;  %v4909_v19 = vmul.f32 %v5721_v41, %v4652_v47 }
 0x367   : > { %5724 = vrcp.f32 %v10572_v63  ;;  %vm4914_vm6 = vweird.f32 %v5721_v41  ;;  %v4932_v14 = vand.u32 2147483647, %v10572_v63  ;;  %v4934_v30 = vand.u32 2147483648, %v10572_v63 }
 0x368   : > { %v4901_v23 = vsel %vm4900_vm5, %v5717_v42, %v4897_v61  ;;  %v4491_v58 = vmul.f32 %v10186_v49, %v4455_v29  ;;  %v4910_v17 = vsub.f32 1.0, %v4909_v19  ;;  %v3384_v48 = vpop.f32.mrf.mxu3  ;;  %vm4915_vm9 = vmor %vm4913_vm7, %vm4914_vm6  ;;  %vm4928_vm14 = vweird.f32 %v10572_v63  ;;  %v10607_v61 = vld [vmem:[%s10710_s6] ss:$0 sm:$0xff] }
 0x369   : > { %v4906_v6 = vsel %vm4903_vm2, %v4905_v27, %v4901_v23  ;;  %v3434_v8 = vadd.f32 %v3384_v48, %v2395_v25  ;;  %vm4933_vm10 = vcmp.eq.f32.partialorder %v4932_v14, 8.507059e+37 }
 0x36a   : > { %v5163_v11 = vmul.f32 %v4906_v6, %v10531_v60  ;;  %v10578_v9 = vadd.f32 %v10206_v50, %v4491_v58  ;;  %v4911_v26 = vmul.f32 %v5721_v41, %v4910_v17 }
 0x36b   : > { %v2256_v39 = vpop.f32.mrf.mxu1 }
 0x36c   : > { %v5723_v0 = vpop.eup %5722  ;;  %5196 = vst.msk [vmem:[%s9709_s10 + $0x78] sm:$0xff] %vm5180_vm0, %v5163_v11  ;;  %v5475_v13 = vmul.f32 -1.442695, %v10578_v9  ;;  %v4912_v45 = vadd.f32 %v5721_v41, %v4911_v26  ;;  %v2396_v44 = vpop.f32.mrf.mxu2 }
 0x36d   : > { %v5725_v12 = vpop.eup %5724  ;;  %v4654_v16 = vadd.f32 1.0, %v5723_v0  ;;  %v2397_v36 = vadd.f32 %v2396_v44, %v2256_v39 }
 0x36e   : > { %v4924_v60 = vmul.f32 %v5725_v12, %v10572_v63  ;;  %5726 = vpow2.f32 %v5475_v13  ;;  %v4916_v33 = vsel %vm4915_vm9, %v5721_v41, %v4912_v45  ;;  %vm4929_vm3 = vweird.f32 %v5725_v12 }
 0x36f   : > { %5728 = vrcp.f32 %v4654_v16  ;;  %v4921_v15 = vsel %vm4918_vm12, %v4920_v38, %v4916_v33  ;;  %vm4930_vm15 = vmor %vm4928_vm14, %vm4929_vm3  ;;  %v4947_v52 = vand.u32 2147483647, %v4654_v16  ;;  %vm4943_vm4 = vweird.f32 %v4654_v16 }
 0x370   : > { %v4925_v5 = vsub.f32 1.0, %v4924_v60  ;;  %v5164_v56 = vmul.f32 %v4921_v15, %v10547_v18  ;;  %v3386_v54 = vpop.f32.mrf.mxu3  ;;  %v4935_v18 = vor.u32 1.1754944e-38, %v4934_v30 }
 0x371   : > { %v3435_v62 = vadd.f32 %v3386_v54, %v2397_v36  ;;  %vm4948_vm11 = vcmp.eq.f32.partialorder %v4947_v52, 8.507059e+37 }
 0x372   : > { %v4926_v43 = vmul.f32 %v5725_v12, %v4925_v5  ;;  %5197 = vst.msk [vmem:[%s9709_s10 + $0x80] sm:$0xff] %vm5180_vm0, %v5164_v56 }
 0x373   : > { %v2259_v23 = vpop.f32.mrf.mxu1 }
 0x374   : > { %v5727_v2 = vpop.eup %5726  ;;  %v4927_v37 = vadd.f32 %v5725_v12, %v4926_v43  ;;  %v2399_v17 = vpop.f32.mrf.mxu2 }
 0x375   : > { %v5729_v42 = vpop.eup %5728  ;;  %v4655_v47 = vadd.f32 1.0, %v5727_v2  ;;  %v2400_v30 = vadd.f32 %v2399_v17, %v2259_v23 }
 0x376   : > { %v4406_v1 = vpop.f32.mrf.mxu0  ;;  %v4931_v22 = vsel %vm4930_vm15, %v5725_v12, %v4927_v37  ;;  %vm4944_vm13 = vweird.f32 %v5729_v42 }
 0x377   : > { %v4456_v4 = vadd.f32 %v4406_v1, %v3434_v8  ;;  %v4936_v32 = vsel %vm4933_vm10, %v4935_v18, %v4931_v22  ;;  %5730 = vrcp.f32 %v4655_v47  ;;  %vm4945_vm8 = vmor %vm4943_vm4, %vm4944_vm13  ;;  %v4964_v48 = vand.u32 2147483648, %v4655_v47 }
 0x378   : > { %v5165_v28 = vmul.f32 %v4936_v32, %v10558_v10  ;;  %v3389_v25 = vpop.f32.mrf.mxu3  ;;  %v4962_v0 = vand.u32 2147483647, %v4655_v47  ;;  %vm4958_vm5 = vweird.f32 %v4655_v47 }
 0x379   : > { %v4492_v20 = vmul.f32 %v10186_v49, %v4456_v4  ;;  %v4939_v49 = vmul.f32 %v5729_v42, %v4654_v16  ;;  %v4965_v7 = vor.u32 1.1754944e-38, %v4964_v48  ;;  %v3436_v56 = vadd.f32 %v3389_v25, %v2400_v30 }
 0x37a   : > { %5198 = vst.msk [vmem:[%s9709_s10 + $0x88] sm:$0xff] %vm5180_vm0, %v5165_v28  ;;  %vm4963_vm6 = vcmp.eq.f32.partialorder %v4962_v0, 8.507059e+37 }
 0x37b   : > { %v10592_v24 = vadd.f32 %v10206_v50, %v4492_v20  ;;  %v4940_v59 = vsub.f32 1.0, %v4939_v49  ;;  %v4949_v50 = vand.u32 2147483648, %v4654_v16  ;;  %v2261_v60 = vpop.f32.mrf.mxu1 }
 0x37c   : > { %v2401_v33 = vpop.f32.mrf.mxu2 }
 0x37d   : > { %v5476_v35 = vmul.f32 -1.442695, %v10592_v24  ;;  %v4941_v57 = vmul.f32 %v5729_v42, %v4940_v59  ;;  %v5731_v51 = vpop.eup %5730  ;;  %v4950_v10 = vor.u32 1.1754944e-38, %v4949_v50  ;;  %v2402_v49 = vadd.f32 %v2401_v33, %v2261_v60 }
 0x37e   : > { %v4408_v34 = vpop.f32.mrf.mxu0  ;;  %v4954_v46 = vmul.f32 %v5731_v51, %v4655_v47  ;;  %vm4959_vm1 = vweird.f32 %v5731_v51 }
 0x37f   : > { %5732 = vpow2.f32 %v5476_v35  ;;  %v4457_v40 = vadd.f32 %v4408_v34, %v3435_v62  ;;  %v4942_v63 = vadd.f32 %v5729_v42, %v4941_v57  ;;  %vm4960_vm2 = vmor %vm4958_vm5, %vm4959_vm1 }
 0x380   : > { %v4955_v11 = vsub.f32 1.0, %v4954_v46  ;;  %v3391_v4 = vpop.f32.mrf.mxu3 }
 0x381   : > { %v4493_v21 = vmul.f32 %v10601_v31, %v4457_v40  ;;  %v4946_v27 = vsel %vm4945_vm8, %v5729_v42, %v4942_v63  ;;  %v3437_v59 = vadd.f32 %v3391_v4, %v2402_v49 }
 0x382   : > { %v4951_v19 = vsel %vm4948_vm11, %v4950_v10, %v4946_v27  ;;  %v4956_v53 = vmul.f32 %v5731_v51, %v4955_v11 }
 0x383   : > { %v10610_v29 = vadd.f32 %v10607_v61, %v4493_v21  ;;  %v5166_v55 = vmul.f32 %v4951_v19, %v10569_v3  ;;  %v2264_v36 = vpop.f32.mrf.mxu1 }
 0x384   : > { %v4957_v26 = vadd.f32 %v5731_v51, %v4956_v53  ;;  %v2404_v22 = vpop.f32.mrf.mxu2 }
 0x385   : > { %v5733_v41 = vpop.eup %5732  ;;  %v5477_v6 = vmul.f32 -1.442695, %v10610_v29  ;;  %5199 = vst.msk [vmem:[%s9709_s10 + $0x90] sm:$0xff] %vm5180_vm0, %v5166_v55 }
 0x386   : > { %v4656_v58 = vadd.f32 1.0, %v5733_v41  ;;  %v4961_v13 = vsel %vm4960_vm2, %v5731_v51, %v4957_v26  ;;  %v2405_v41 = vadd.f32 %v2404_v22, %v2264_v36 }
 0x387   : > { %v4966_v3 = vsel %vm4963_vm6, %v4965_v7, %v4961_v13 }
 0x388   : > { %5734 = vrcp.f32 %v4656_v58  ;;  %v5167_v16 = vmul.f32 %v4966_v3, %v10578_v9  ;;  %v4979_v5 = vand.u32 2147483648, %v4656_v58  ;;  %v4977_v14 = vand.u32 2147483647, %v4656_v58  ;;  %v3394_v34 = vpop.f32.mrf.mxu3 }
 0x389   : > { %5736 = vpow2.f32 %v5477_v6  ;;  %vm4973_vm9 = vweird.f32 %v4656_v58 }
 0x38a   : > { %5200 = vst.msk [vmem:[%s9709_s10 + $0x98] sm:$0xff] %vm5180_vm0, %v5167_v16  ;;  %v4980_v9 = vor.u32 1.1754944e-38, %v4979_v5  ;;  %vm4978_vm3 = vcmp.eq.f32.partialorder %v4977_v14, 8.507059e+37 }
 0x38b   : > { %v2266_v27 = vpop.f32.mrf.mxu1 }
 0x38c   : > { %v2406_v19 = vpop.f32.mrf.mxu2 }
 0x38d   : > { %v2407_v25 = vadd.f32 %v2406_v19, %v2266_v27 }
 0x38e   : > { %v5735_v12 = vpop.eup %5734 }
 0x38f   : > { %v5737_v8 = vpop.eup %5736  ;;  %v4969_v45 = vmul.f32 %v5735_v12, %v4656_v58  ;;  %vm4974_vm7 = vweird.f32 %v5735_v12  ;;  %v3438_v58 = vadd.f32 %v3394_v34, %v2405_v41 }
 0x390   : > { %v4657_v1 = vadd.f32 1.0, %v5737_v8  ;;  %vm4975_vm12 = vmor %vm4973_vm9, %vm4974_vm7  ;;  %v3396_v6 = vpop.f32.mrf.mxu3 }
 0x391   : > { %v4970_v38 = vsub.f32 1.0, %v4969_v45  ;;  %v3439_v7 = vadd.f32 %v3396_v6, %v2407_v25 }
 0x392   : > { %5738 = vrcp.f32 %v4657_v1  ;;  %v4994_v35 = vand.u32 2147483648, %v4657_v1  ;;  %v4992_v28 = vand.u32 2147483647, %v4657_v1  ;;  %vm4988_vm15 = vweird.f32 %v4657_v1 }
 0x393   : > { %v4971_v15 = vmul.f32 %v5735_v12, %v4970_v38  ;;  %v2269_v26 = vpop.f32.mrf.mxu1 }
 0x394   : > { %v4995_v57 = vor.u32 1.1754944e-38, %v4994_v35  ;;  %vm4993_vm13 = vcmp.eq.f32.partialorder %v4992_v28, 8.507059e+37  ;;  %v2409_v16 = vpop.f32.mrf.mxu2 }
 0x395   : > { %v4972_v39 = vadd.f32 %v5735_v12, %v4971_v15 }
 0x397   : > { %v4976_v43 = vsel %vm4975_vm12, %v5735_v12, %v4972_v39  ;;  %v4411_v20 = vpop.f32.mrf.mxu0 }
 0x398   : > { %v5739_v2 = vpop.eup %5738  ;;  %v4981_v44 = vsel %vm4978_vm3, %v4980_v9, %v4976_v43  ;;  %v4458_v37 = vadd.f32 %v4411_v20, %v3436_v56  ;;  %v3399_v60 = vpop.f32.mrf.mxu3  ;;  %v2410_v43 = vadd.f32 %v2409_v16, %v2269_v26 }
 0x399   : > { %v5168_v54 = vmul.f32 %v4981_v44, %v10592_v24  ;;  %v4984_v42 = vmul.f32 %v5739_v2, %v4657_v1  ;;  %vm4989_vm14 = vweird.f32 %v5739_v2 }
 0x39a   : > { %v4494_v18 = vmul.f32 %v10601_v31, %v4458_v37  ;;  %vm4990_vm10 = vmor %vm4988_vm15, %vm4989_vm14  ;;  %v3440_v22 = vadd.f32 %v3399_v60, %v2410_v43 }
 0x39b   : > { %5201 = vst.msk [vmem:[%s9709_s10 + $0xa0] sm:$0xff] %vm5180_vm0, %v5168_v54  ;;  %v4985_v47 = vsub.f32 1.0, %v4984_v42  ;;  %v2271_v44 = vpop.f32.mrf.mxu1 }
 0x39c   : > { %v10624_v32 = vadd.f32 %v10607_v61, %v4494_v18  ;;  %v2411_v36 = vpop.f32.mrf.mxu2 }
 0x39d   : > { %v4986_v62 = vmul.f32 %v5739_v2, %v4985_v47 }
 0x39e   : > { %v5478_v24 = vmul.f32 -1.442695, %v10624_v32 }
 0x39f   : > { %v4987_v50 = vadd.f32 %v5739_v2, %v4986_v62  ;;  %v4413_v40 = vpop.f32.mrf.mxu0 }
 0x3a0   : > { %5740 = vpow2.f32 %v5478_v24  ;;  %v4459_v52 = vadd.f32 %v4413_v40, %v3437_v59  ;;  %v3401_v49 = vpop.f32.mrf.mxu3 }
 0x3a1   : > { %v4991_v21 = vsel %vm4990_vm10, %v5739_v2, %v4987_v50 }
 0x3a2   : > { %v4996_v63 = vsel %vm4993_vm13, %v4995_v57, %v4991_v21  ;;  %v4495_v51 = vmul.f32 %v10601_v31, %v4459_v52  ;;  %v2412_v52 = vadd.f32 %v2411_v36, %v2271_v44 }
 0x3a3   : > { %v5169_v10 = vmul.f32 %v4996_v63, %v10610_v29  ;;  %v2274_v27 = vpop.f32.mrf.mxu1 }
 0x3a4   : > { %v10630_v46 = vadd.f32 %v10607_v61, %v4495_v51 }
 0x3a5   : > { %5202 = vst.msk [vmem:[%s9709_s10 + $0xa8] sm:$0xff] %vm5180_vm0, %v5169_v10 }
 0x3a6   : > { %v5741_v23 = vpop.eup %5740  ;;  %v5479_v55 = vmul.f32 -1.442695, %v10630_v46 }
 0x3a7   : > { %v4658_v11 = vadd.f32 1.0, %v5741_v23  ;;  %v4416_v17 = vpop.f32.mrf.mxu0 }
 0x3a8   : > { %5742 = vpow2.f32 %v5479_v55  ;;  %v4460_v48 = vadd.f32 %v4416_v17, %v3438_v58  ;;  %v3441_v58 = vadd.f32 %v3401_v49, %v2412_v52  ;;  %v3404_v25 = vpop.f32.mrf.mxu3 }
 0x3a9   : > { %5744 = vrcp.f32 %v4658_v11  ;;  %v5009_v5 = vand.u32 2147483648, %v4658_v11  ;;  %v5007_v15 = vand.u32 2147483647, %v4658_v11  ;;  %vm5003_vm8 = vweird.f32 %v4658_v11 }
 0x3aa   : > { %v4496_v29 = vmul.f32 %v10601_v31, %v4460_v48  ;;  %v2414_v48 = vpop.f32.mrf.mxu2 }
 0x3ab   : > { %v5010_v20 = vor.u32 1.1754944e-38, %v5009_v5  ;;  %vm5008_vm1 = vcmp.eq.f32.partialorder %v5007_v15, 8.507059e+37 }
 0x3ac   : > { %v10637_v53 = vadd.f32 %v10607_v61, %v4496_v29 }
 0x3ae   : > { %v5743_v0 = vpop.eup %5742  ;;  %v5480_v13 = vmul.f32 -1.442695, %v10637_v53 }
 0x3af   : > { %v5745_v12 = vpop.eup %5744  ;;  %v4659_v3 = vadd.f32 1.0, %v5743_v0  ;;  %v4418_v8 = vpop.f32.mrf.mxu0 }
 0x3b0   : > { %v4999_v45 = vmul.f32 %v5745_v12, %v4658_v11  ;;  %5746 = vpow2.f32 %v5480_v13  ;;  %v4461_v1 = vadd.f32 %v4418_v8, %v3439_v7  ;;  %vm5004_vm4 = vweird.f32 %v5745_v12 }
 0x3b1   : > { %5748 = vrcp.f32 %v4659_v3  ;;  %vm5005_vm11 = vmor %vm5003_vm8, %vm5004_vm4  ;;  %v5024_v35 = vand.u32 2147483648, %v4659_v3  ;;  %v5022_v28 = vand.u32 2147483647, %v4659_v3  ;;  %vm5018_vm2 = vweird.f32 %v4659_v3 }
 0x3b2   : > { %v5000_v38 = vsub.f32 1.0, %v4999_v45  ;;  %v4497_v33 = vmul.f32 %v10601_v31, %v4461_v1  ;;  %v2415_v13 = vadd.f32 %v2414_v48, %v2274_v27 }
 0x3b3   : > { %vm5023_vm7 = vcmp.eq.f32.partialorder %v5022_v28, 8.507059e+37 }
 0x3b4   : > { %v5001_v4 = vmul.f32 %v5745_v12, %v5000_v38  ;;  %v10642_v14 = vadd.f32 %v10607_v61, %v4497_v33  ;;  %v3442_v33 = vadd.f32 %v3404_v25, %v2415_v13 }
 0x3b6   : > { %v5747_v30 = vpop.eup %5746  ;;  %v5002_v39 = vadd.f32 %v5745_v12, %v5001_v4  ;;  %v5481_v56 = vmul.f32 -1.442695, %v10642_v14 }
 0x3b7   : > { %v5749_v9 = vpop.eup %5748  ;;  %v4660_v2 = vadd.f32 1.0, %v5747_v30 }
 0x3b8   : > { %v5006_v37 = vsel %vm5005_vm11, %v5745_v12, %v5002_v39  ;;  %v5014_v54 = vmul.f32 %v5749_v9, %v4659_v3  ;;  %5750 = vpow2.f32 %v5481_v56  ;;  %vm5019_vm5 = vweird.f32 %v5749_v9  ;;  %v2276_v56 = vpop.f32.mrf.mxu1 }
 0x3b9   : > { %v5011_v42 = vsel %vm5008_vm1, %v5010_v20, %v5006_v37  ;;  %5752 = vrcp.f32 %v4660_v2  ;;  %vm5020_vm6 = vmor %vm5018_vm2, %vm5019_vm5  ;;  %v5037_v55 = vand.u32 2147483647, %v4660_v2  ;;  %v5039_v11 = vand.u32 2147483648, %v4660_v2  ;;  %v2416_v20 = vpop.f32.mrf.mxu2 }
 0x3ba   : > { %v5170_v18 = vmul.f32 %v5011_v42, %v10624_v32  ;;  %v5015_v47 = vsub.f32 1.0, %v5014_v54  ;;  %v5025_v32 = vor.u32 1.1754944e-38, %v5024_v35  ;;  %vm5033_vm12 = vweird.f32 %v4660_v2 }
 0x3bb   : > { %v5040_v12 = vor.u32 1.1754944e-38, %v5039_v11  ;;  %vm5038_vm14 = vcmp.eq.f32.partialorder %v5037_v55, 8.507059e+37  ;;  %v2417_v54 = vadd.f32 %v2416_v20, %v2276_v56 }
 0x3bc   : > { %v4421_v34 = vpop.f32.mrf.mxu0  ;;  %5203 = vst.msk [vmem:[%s9709_s10 + $0xb0] sm:$0xff] %vm5180_vm0, %v5170_v18  ;;  %v5016_v62 = vmul.f32 %v5749_v9, %v5015_v47 }
 0x3bd   : > { %v4462_v59 = vadd.f32 %v4421_v34, %v3440_v22 }
 0x3be   : > { %v5751_v24 = vpop.eup %5750  ;;  %v5017_v50 = vadd.f32 %v5749_v9, %v5016_v62 }
 0x3bf   : > { %v4498_v40 = vmul.f32 %v10601_v31, %v4462_v59  ;;  %v5753_v57 = vpop.eup %5752  ;;  %v4661_v21 = vadd.f32 1.0, %v5751_v24 }
 0x3c0   : > { %v5021_v63 = vsel %vm5020_vm6, %v5749_v9, %v5017_v50  ;;  %v5029_v51 = vmul.f32 %v5753_v57, %v4660_v2  ;;  %vm5034_vm9 = vweird.f32 %v5753_v57  ;;  %v2279_v50 = vpop.f32.mrf.mxu1 }
 0x3c1   : > { %v10650_v10 = vadd.f32 %v10607_v61, %v4498_v40  ;;  %v5026_v41 = vsel %vm5023_vm7, %v5025_v32, %v5021_v63  ;;  %5754 = vrcp.f32 %v4661_v21  ;;  %vm5035_vm3 = vmor %vm5033_vm12, %vm5034_vm9  ;;  %v5052_v4 = vand.u32 2147483647, %v4661_v21  ;;  %v2419_v32 = vpop.f32.mrf.mxu2 }
 0x3c2   : > { %v5171_v23 = vmul.f32 %v5026_v41, %v10630_v46  ;;  %v5030_v19 = vsub.f32 1.0, %v5029_v51  ;;  %v5054_v15 = vand.u32 2147483648, %v4661_v21  ;;  %vm5048_vm10 = vweird.f32 %v4661_v21 }
 0x3c3   : > { %v5482_v6 = vmul.f32 -1.442695, %v10650_v10  ;;  %vm5053_vm4 = vcmp.eq.f32.partialorder %v5052_v4, 8.507059e+37  ;;  %v2420_v41 = vadd.f32 %v2419_v32, %v2279_v50 }
 0x3c4   : > { %v4423_v17 = vpop.f32.mrf.mxu0  ;;  %5204 = vst.msk [vmem:[%s9709_s10 + $0xb8] sm:$0xff] %vm5180_vm0, %v5171_v23  ;;  %v5031_v29 = vmul.f32 %v5753_v57, %v5030_v19  ;;  %v5055_v37 = vor.u32 1.1754944e-38, %v5054_v15 }
 0x3c5   : > { %5756 = vpow2.f32 %v5482_v6  ;;  %v4463_v0 = vadd.f32 %v4423_v17, %v3441_v58 }
 0x3c6   : > { %v5032_v26 = vadd.f32 %v5753_v57, %v5031_v29 }
 0x3c7   : > { %v4499_v7 = vmul.f32 %v10601_v31, %v4463_v0  ;;  %v5755_v46 = vpop.eup %5754 }
 0x3c8   : > { %v5036_v3 = vsel %vm5035_vm3, %v5753_v57, %v5032_v26  ;;  %v5044_v8 = vmul.f32 %v5755_v46, %v4661_v21  ;;  %vm5049_vm15 = vweird.f32 %v5755_v46  ;;  %v2281_v13 = vpop.f32.mrf.mxu1 }
 0x3c9   : > { %v10658_v16 = vadd.f32 %v10607_v61, %v4499_v7  ;;  %v5041_v45 = vsel %vm5038_vm14, %v5040_v12, %v5036_v3  ;;  %vm5050_vm13 = vmor %vm5048_vm10, %vm5049_vm15 }
 0x3ca   : > { %v5172_v1 = vmul.f32 %v5041_v45, %v10637_v53  ;;  %v5045_v38 = vsub.f32 1.0, %v5044_v8  ;;  %v3406_v53 = vpop.f32.mrf.mxu3 }
 0x3cb   : > { %v5757_v60 = vpop.eup %5756  ;;  %v5483_v5 = vmul.f32 -1.442695, %v10658_v16  ;;  %v3443_v49 = vadd.f32 %v3406_v53, %v2417_v54 }
 0x3cc   : > { %v4662_v30 = vadd.f32 1.0, %v5757_v60  ;;  %v4426_v39 = vpop.f32.mrf.mxu0  ;;  %5205 = vst.msk [vmem:[%s9709_s10 + $0xc0] sm:$0xff] %vm5180_vm0, %v5172_v1  ;;  %v5046_v9 = vmul.f32 %v5755_v46, %v5045_v38  ;;  %v2421_v60 = vpop.f32.mrf.mxu2 }
 0x3cd   : > { %5758 = vpow2.f32 %v5483_v5  ;;  %v4464_v43 = vadd.f32 %v4426_v39, %v3442_v33  ;;  %v2422_v5 = vadd.f32 %v2421_v60, %v2281_v13 }
 0x3ce   : > { %5760 = vrcp.f32 %v4662_v30  ;;  %v5047_v2 = vadd.f32 %v5755_v46, %v5046_v9  ;;  %v5069_v52 = vand.u32 2147483648, %v4662_v30  ;;  %vm5063_vm11 = vweird.f32 %v4662_v30 }
 0x3cf   : > { %v4500_v44 = vmul.f32 %v10601_v31, %v4464_v43 }
 0x3d0   : > { %v5051_v42 = vsel %vm5050_vm13, %v5755_v46, %v5047_v2  ;;  %v5070_v6 = vor.u32 1.1754944e-38, %v5069_v52 }
 0x3d1   : > { %v10666_v36 = vadd.f32 %v10607_v61, %v4500_v44  ;;  %v5056_v18 = vsel %vm5053_vm4, %v5055_v37, %v5051_v42 }
 0x3d2   : > { %v5173_v22 = vmul.f32 %v5056_v18, %v10642_v14  ;;  %v5067_v14 = vand.u32 2147483647, %v4662_v30  ;;  %v3409_v63 = vpop.f32.mrf.mxu3 }
 0x3d3   : > { %v5759_v47 = vpop.eup %5758  ;;  %v5484_v35 = vmul.f32 -1.442695, %v10666_v36  ;;  %v3444_v55 = vadd.f32 %v3409_v63, %v2420_v41 }
 0x3d4   : > { %v5761_v34 = vpop.eup %5760  ;;  %v4663_v62 = vadd.f32 1.0, %v5759_v47  ;;  %v4428_v28 = vpop.f32.mrf.mxu0  ;;  %5206 = vst.msk [vmem:[%s9709_s10 + $0xc8] sm:$0xff] %vm5180_vm0, %v5173_v22  ;;  %vm5068_vm5 = vcmp.eq.f32.partialorder %v5067_v14, 8.507059e+37 }
 0x3d5   : > { %v5059_v59 = vmul.f32 %v5761_v34, %v4662_v30  ;;  %5762 = vpow2.f32 %v5484_v35  ;;  %v4465_v24 = vadd.f32 %v4428_v28, %v3443_v49  ;;  %vm5064_vm8 = vweird.f32 %v5761_v34 }
 0x3d6   : > { %5764 = vrcp.f32 %v4663_v62  ;;  %vm5065_vm1 = vmor %vm5063_vm11, %vm5064_vm8  ;;  %v5084_v46 = vand.u32 2147483648, %v4663_v62  ;;  %v5082_v3 = vand.u32 2147483647, %v4663_v62  ;;  %vm5078_vm6 = vweird.f32 %v4663_v62 }
 0x3d7   : > { %v5060_v40 = vsub.f32 1.0, %v5059_v59  ;;  %v4501_v57 = vmul.f32 %v10601_v31, %v4465_v24 }
 0x3d8   : > { %v5085_v4 = vor.u32 1.1754944e-38, %v5084_v46  ;;  %vm5083_vm9 = vcmp.eq.f32.partialorder %v5082_v3, 8.507059e+37 }
 0x3d9   : > { %v5061_v21 = vmul.f32 %v5761_v34, %v5060_v40  ;;  %v10674_v51 = vadd.f32 %v10607_v61, %v4501_v57 }
 0x3da   : > { %v3411_v38 = vpop.f32.mrf.mxu3 }
 0x3db   : > { %v5763_v27 = vpop.eup %5762  ;;  %v5062_v23 = vadd.f32 %v5761_v34, %v5061_v21  ;;  %v5485_v19 = vmul.f32 -1.442695, %v10674_v51  ;;  %v3445_v20 = vadd.f32 %v3411_v38, %v2422_v5 }
 0x3dc   : > { %v5765_v58 = vpop.eup %5764  ;;  %v4664_v11 = vadd.f32 1.0, %v5763_v27  ;;  %v4431_v17 = vpop.f32.mrf.mxu0 }
 0x3dd   : > { %v5066_v48 = vsel %vm5065_vm1, %v5761_v34, %v5062_v23  ;;  %v5074_v29 = vmul.f32 %v5765_v58, %v4663_v62  ;;  %5766 = vpow2.f32 %v5485_v19  ;;  %v4466_v7 = vadd.f32 %v4431_v17, %v3444_v55 }
 0x3de   : > { %v5071_v25 = vsel %vm5068_vm5, %v5070_v6, %v5066_v48  ;;  %5768 = vrcp.f32 %v4664_v11  ;;  %vm5079_vm2 = vweird.f32 %v5765_v58  ;;  %v5099_v44 = vand.u32 2147483648, %v4664_v11 }
 0x3df   : > { %v5174_v0 = vmul.f32 %v5071_v25, %v10650_v10  ;;  %v5075_v26 = vsub.f32 1.0, %v5074_v29  ;;  %v4502_v8 = vmul.f32 %v10601_v31, %v4466_v7  ;;  %vm5080_vm7 = vmor %vm5078_vm6, %vm5079_vm2  ;;  %v5097_v42 = vand.u32 2147483647, %v4664_v11 }
 0x3e0   : > { %vm5093_vm3 = vweird.f32 %v4664_v11  ;;  %v5100_v49 = vor.u32 1.1754944e-38, %v5099_v44 }
 0x3e1   : > { %5207 = vst.msk [vmem:[%s9709_s10 + $0xd0] sm:$0xff] %vm5180_vm0, %v5174_v0  ;;  %v5076_v12 = vmul.f32 %v5765_v58, %v5075_v26  ;;  %v10682_v33 = vadd.f32 %v10607_v61, %v4502_v8  ;;  %vm5098_vm15 = vcmp.eq.f32.partialorder %v5097_v42, 8.507059e+37 }
 0x3e3   : > { %v5767_v45 = vpop.eup %5766  ;;  %v5077_v1 = vadd.f32 %v5765_v58, %v5076_v12  ;;  %v5486_v56 = vmul.f32 -1.442695, %v10682_v33 }
 0x3e4   : > { %v5769_v10 = vpop.eup %5768  ;;  %v4665_v15 = vadd.f32 1.0, %v5767_v45  ;;  %v4433_v9 = vpop.f32.mrf.mxu0 }
 0x3e5   : > { %v5081_v30 = vsel %vm5080_vm7, %v5765_v58, %v5077_v1  ;;  %v5089_v39 = vmul.f32 %v5769_v10, %v4664_v11  ;;  %v4467_v37 = vadd.f32 %v4433_v9, %v3445_v20  ;;  %vm5094_vm12 = vweird.f32 %v5769_v10 }
 0x3e6   : > { %v5086_v43 = vsel %vm5083_vm9, %v5085_v4, %v5081_v30  ;;  %5770 = vrcp.f32 %v4665_v15  ;;  %vm5095_vm14 = vmor %vm5093_vm3, %vm5094_vm12  ;;  %v5114_v57 = vand.u32 2147483648, %v4665_v15  ;;  %v5112_v52 = vand.u32 2147483647, %v4665_v15 }
 0x3e7   : > { %v5175_v2 = vmul.f32 %v5086_v43, %v10658_v16  ;;  %v5090_v53 = vsub.f32 1.0, %v5089_v39  ;;  %5772 = vpow2.f32 %v5486_v56  ;;  %v4503_v18 = vmul.f32 %v10601_v31, %v4467_v37 }
 0x3e8   : > { %vm5108_vm13 = vweird.f32 %v4665_v15  ;;  %v5115_v32 = vor.u32 1.1754944e-38, %v5114_v57  ;;  %vm5113_vm8 = vcmp.eq.f32.partialorder %v5112_v52, 8.507059e+37 }
 0x3e9   : > { %5208 = vst.msk [vmem:[%s9709_s10 + $0xd8] sm:$0xff] %vm5180_vm0, %v5175_v2  ;;  %v5091_v54 = vmul.f32 %v5769_v10, %v5090_v53  ;;  %v4539_v35 = vadd.f32 %v10607_v61, %v4503_v18 }
 0x3eb   : > { %v5092_v47 = vadd.f32 %v5769_v10, %v5091_v54  ;;  %v5487_v24 = vmul.f32 -1.442695, %v4539_v35 }
 0x3ec   : > { %v5771_v22 = vpop.eup %5770 }
 0x3ed   : > { %v5773_v16 = vpop.eup %5772  ;;  %v5096_v34 = vsel %vm5095_vm14, %v5769_v10, %v5092_v47  ;;  %v5104_v62 = vmul.f32 %v5771_v22, %v4665_v15  ;;  %vm5109_vm10 = vweird.f32 %v5771_v22 }
 0x3ee   : > { %v5101_v28 = vsel %vm5098_vm15, %v5100_v49, %v5096_v34  ;;  %v4666_v59 = vadd.f32 1.0, %v5773_v16  ;;  %vm5110_vm4 = vmor %vm5108_vm13, %vm5109_vm10 }
 0x3ef   : > { %v5176_v50 = vmul.f32 %v5101_v28, %v10666_v36  ;;  %v5105_v40 = vsub.f32 1.0, %v5104_v62 }
 0x3f0   : > { %5774 = vrcp.f32 %v4666_v59  ;;  %v5129_v58 = vand.u32 2147483648, %v4666_v59  ;;  %v5127_v55 = vand.u32 2147483647, %v4666_v59  ;;  %vm5123_vm1 = vweird.f32 %v4666_v59 }
 0x3f1   : > { %5209 = vst.msk [vmem:[%s9709_s10 + $0xe0] sm:$0xff] %vm5180_vm0, %v5176_v50  ;;  %v5106_v31 = vmul.f32 %v5771_v22, %v5105_v40  ;;  %5776 = vpow2.f32 %v5487_v24 }
 0x3f2   : > { %v5130_v17 = vor.u32 1.1754944e-38, %v5129_v58  ;;  %vm5128_vm2 = vcmp.eq.f32.partialorder %v5127_v55, 8.507059e+37 }
 0x3f3   : > { %v5107_v61 = vadd.f32 %v5771_v22, %v5106_v31 }
 0x3f5   : > { %v5111_v21 = vsel %vm5110_vm4, %v5771_v22, %v5107_v61 }
 0x3f6   : > { %v5775_v14 = vpop.eup %5774  ;;  %v5116_v63 = vsel %vm5113_vm8, %v5115_v32, %v5111_v21 }
 0x3f7   : > { %v5777_v41 = vpop.eup %5776  ;;  %v5177_v36 = vmul.f32 %v5116_v63, %v10674_v51  ;;  %v5119_v27 = vmul.f32 %v5775_v14, %v4666_v59  ;;  %vm5124_vm11 = vweird.f32 %v5775_v14 }
 0x3f8   : > { %v4667_v23 = vadd.f32 1.0, %v5777_v41  ;;  %vm5125_vm5 = vmor %vm5123_vm1, %vm5124_vm11 }
 0x3f9   : > { %5210 = vst.msk [vmem:[%s9709_s10 + $0xe8] sm:$0xff] %vm5180_vm0, %v5177_v36  ;;  %v5120_v19 = vsub.f32 1.0, %v5119_v27 }
 0x3fa   : > { %5778 = vrcp.f32 %v4667_v23  ;;  %v5144_v7 = vand.u32 2147483648, %v4667_v23  ;;  %v5142_v13 = vand.u32 2147483647, %v4667_v23  ;;  %vm5138_vm7 = vweird.f32 %v4667_v23 }
 0x3fb   : > { %v5121_v6 = vmul.f32 %v5775_v14, %v5120_v19 }
 0x3fc   : > { %v5145_v3 = vor.u32 1.1754944e-38, %v5144_v7  ;;  %vm5143_vm12 = vcmp.eq.f32.partialorder %v5142_v13, 8.507059e+37 }
 0x3fd   : > { %v5122_v11 = vadd.f32 %v5775_v14, %v5121_v6 }
 0x3ff   : > { %v5126_v48 = vsel %vm5125_vm5, %v5775_v14, %v5122_v11 }
 0x400   : > { %v5779_v29 = vpop.eup %5778  ;;  %v5131_v25 = vsel %vm5128_vm2, %v5130_v17, %v5126_v48 }
 0x401   : > { %v5178_v51 = vmul.f32 %v5131_v25, %v10682_v33  ;;  %v5134_v0 = vmul.f32 %v5779_v29, %v4667_v23  ;;  %vm5139_vm6 = vweird.f32 %v5779_v29 }
 0x402   : > { %vm5140_vm9 = vmor %vm5138_vm7, %vm5139_vm6 }
 0x403   : > { %5211 = vst.msk [vmem:[%s9709_s10 + $0xf0] sm:$0xff] %vm5180_vm0, %v5178_v51  ;;  %v5135_v26 = vsub.f32 1.0, %v5134_v0 }
 0x405   : > { %v5136_v46 = vmul.f32 %v5779_v29, %v5135_v26 }
 0x407   : > { %v5137_v12 = vadd.f32 %v5779_v29, %v5136_v46 }
 0x409   : > { %v5141_v8 = vsel %vm5140_vm9, %v5779_v29, %v5137_v12 }
 0x40a   : > { %v5146_v45 = vsel %vm5143_vm12, %v5145_v3, %v5141_v8 }
 0x40b   : > { %v5179_v60 = vmul.f32 %v5146_v45, %v4539_v35 }
 0x40d   : > { %5212 = vst.msk [vmem:[%s9709_s10 + $0xf8] sm:$0xff] %vm5180_vm0, %v5179_v60 }
 0x40e PF: > { %s17_s24 = sadd.s32 1, %s5792_s24  }
 0x40f   : > { %p14_p4 = scmp.ge.s32.totalorder %s17_s24, 4  }
 0x411   :  { %16 = sbr.rel (!%p14_p4) target bundleno = 1 (0x1), region = 86 }

</bundles_post_ra>
